<compile_context>
chip_gen: v7x
topology: tpu7x:2x2x1
jax: 0.10.0
libtpu: 0.0.40
codegen_flags: <defaults>
</compile_context>

<pallas_src>
import jax
import jax.numpy as jnp
from jax.experimental import pallas as pl
from jax.experimental.pallas import tpu as pltpu


def _round_up(n, m):
    return ((n + m - 1) // m) * m


# ----------------------------------------------------------------------------
# Kernel 1: fused MelLinear + StopLinear (+ sigmoid on the stop column)
#   x:(tile_n, in_dim) @ w:(in_dim, out_dim+1) -> y:(tile_n, out_dim+1)
#   last column gets the sigmoid; wrapper splits mel / stop.
# ----------------------------------------------------------------------------
def _linear_kernel(x_ref, w_ref, b_ref, out_ref):
    x = x_ref[...]                                                  # (tile_n, in_dim)
    y = jnp.dot(x, w_ref[...], preferred_element_type=jnp.float32) + b_ref[...]
    out_w = out_ref.shape[-1]
    col = jax.lax.broadcasted_iota(jnp.int32, y.shape, 1)
    y = jnp.where(col == out_w - 1, jax.nn.sigmoid(y), y)
    out_ref[...] = y.astype(out_ref.dtype)


def speech_linear(x_flat, w_cat, b_cat, *, tile_n):
    Np, in_dim = x_flat.shape
    out_w = w_cat.shape[1]
    assert Np % tile_n == 0  # wrapper guarantees this via padding
    return pl.pallas_call(
        _linear_kernel,
        out_shape=jax.ShapeDtypeStruct((Np, out_w), jnp.float32),
        grid=(Np // tile_n,),
        in_specs=[
            pl.BlockSpec((tile_n, in_dim), lambda i: (i, 0)),
            pl.BlockSpec((in_dim, out_w), lambda i: (0, 0)),
            pl.BlockSpec((1, out_w), lambda i: (0, 0)),
        ],
        out_specs=pl.BlockSpec((tile_n, out_w), lambda i: (i, 0)),
        compiler_params=pltpu.CompilerParams(dimension_semantics=("parallel",)),
    )(x_flat, w_cat, b_cat)


# ----------------------------------------------------------------------------
# Kernel 2: fused 5-layer PostNet (Conv1d k=3, pad=1, no activations).
# One grid step per batch row; activations live in VMEM scratch ping-pong
# buffers with zeroed border rows emulating each layer's zero padding.
# ----------------------------------------------------------------------------
def _postnet_kernel(x_ref, w1_ref, b1_ref, w2_ref, b2_ref, w3_ref, b3_ref,
                    w4_ref, b4_ref, w5_ref, b5_ref, out_ref,
                    xin_ref, ha_ref, hb_ref):
    T = out_ref.shape[1]

    def conv_same(src_ref, w_ref, b_ref):
        # src_ref: (T+2, Cin) VMEM buffer with zero rows at 0 and T+1.
        # out[t] = sum_k src[t+k] @ w[k] + b     (k = 0..2, "same" conv)
        acc = jnp.dot(src_ref[0:T, :], w_ref[0],
                      preferred_element_type=jnp.float32)
        acc += jnp.dot(src_ref[1:T + 1, :], w_ref[1],
                       preferred_element_type=jnp.float32)
        acc += jnp.dot(src_ref[2:T + 2, :], w_ref[2],
                       preferred_element_type=jnp.float32)
        return acc + b_ref[...]

    cin = xin_ref.shape[1]
    h = ha_ref.shape[1]

    # Stage input into the zero-padded VMEM buffer.
    xin_ref[0:1, :] = jnp.zeros((1, cin), jnp.float32)
    xin_ref[T + 1:T + 2, :] = jnp.zeros((1, cin), jnp.float32)
    xin_ref[1:T + 1, :] = x_ref[0].astype(jnp.float32)

    # Layer 1: Cin -> H
    ha_ref[0:1, :] = jnp.zeros((1, h), jnp.float32)
    ha_ref[T + 1:T + 2, :] = jnp.zeros((1, h), jnp.float32)
    ha_ref[1:T + 1, :] = conv_same(xin_ref, w1_ref, b1_ref)

    # Layer 2: H -> H
    hb_ref[0:1, :] = jnp.zeros((1, h), jnp.float32)
    hb_ref[T + 1:T + 2, :] = jnp.zeros((1, h), jnp.float32)
    hb_ref[1:T + 1, :] = conv_same(ha_ref, w2_ref, b2_ref)

    # Layer 3: H -> H   (borders of ha are already zero)
    ha_ref[1:T + 1, :] = conv_same(hb_ref, w3_ref, b3_ref)

    # Layer 4: H -> H
    hb_ref[1:T + 1, :] = conv_same(ha_ref, w4_ref, b4_ref)

    # Layer 5: H -> Cout, written straight to the output block.
    out_ref[...] = conv_same(hb_ref, w5_ref, b5_ref)[None].astype(out_ref.dtype)


def postnet_fused(x_btc, postnet_params):
    # x_btc: (B, T, Cin) channels-last
    B, T, Cin = x_btc.shape
    (w1, b1), (w2, b2), (w3, b3), (w4, b4), (w5, b5) = postnet_params
    H = w1.shape[2]
    Cout = w5.shape[2]
    # TODO(synk): for very long T on v7x (64 MiB VMEM), tile the T axis with a
    # 5-row halo + per-layer boundary masking instead of full-T blocks.
    return pl.pallas_call(
        _postnet_kernel,
        out_shape=jax.ShapeDtypeStruct((B, T, Cout), jnp.float32),
        grid=(B,),
        in_specs=[
            pl.BlockSpec((1, T, Cin), lambda i: (i, 0, 0)),
            pl.BlockSpec((3, Cin, H), lambda i: (0, 0, 0)),
            pl.BlockSpec((1, H), lambda i: (0, 0)),
            pl.BlockSpec((3, H, H), lambda i: (0, 0, 0)),
            pl.BlockSpec((1, H), lambda i: (0, 0)),
            pl.BlockSpec((3, H, H), lambda i: (0, 0, 0)),
            pl.BlockSpec((1, H), lambda i: (0, 0)),
            pl.BlockSpec((3, H, H), lambda i: (0, 0, 0)),
            pl.BlockSpec((1, H), lambda i: (0, 0)),
            pl.BlockSpec((3, H, Cout), lambda i: (0, 0, 0)),
            pl.BlockSpec((1, Cout), lambda i: (0, 0)),
        ],
        out_specs=pl.BlockSpec((1, T, Cout), lambda i: (i, 0, 0)),
        scratch_shapes=[
            pltpu.VMEM((T + 2, Cin), jnp.float32),
            pltpu.VMEM((T + 2, H), jnp.float32),
            pltpu.VMEM((T + 2, H), jnp.float32),
        ],
        compiler_params=pltpu.CompilerParams(dimension_semantics=("parallel",)),
    )(x_btc, w1, b1.reshape(1, H), w2, b2.reshape(1, H), w3, b3.reshape(1, H),
      w4, b4.reshape(1, H), w5, b5.reshape(1, Cout))


# ----------------------------------------------------------------------------
# SpeechOutput forward (glue in plain JAX, hot paths in Pallas)
# ----------------------------------------------------------------------------
def init_params(key, in_dim, out_dim, n_hidden=256, kernel_size=3):
    ks = jax.random.split(key, 16)
    p = {}
    p["mel_w"] = jax.random.normal(ks[0], (in_dim, out_dim), jnp.float32) / jnp.sqrt(in_dim)
    p["mel_b"] = jax.random.normal(ks[1], (1, out_dim), jnp.float32) * 0.01
    p["stop_w"] = jax.random.normal(ks[2], (in_dim, 1), jnp.float32) / jnp.sqrt(in_dim)
    p["stop_b"] = jax.random.normal(ks[3], (1, 1), jnp.float32) * 0.01
    # PostNet: out_dim -> 256 -> 256 -> 256 -> 256 -> out_dim, weights as (K, Cin, Cout)
    chans = [out_dim, n_hidden, n_hidden, n_hidden, n_hidden, out_dim]
    post = []
    for li in range(5):
        cin, cout = chans[li], chans[li + 1]
        w = jax.random.normal(ks[4 + 2 * li], (kernel_size, cin, cout), jnp.float32)
        w = w / jnp.sqrt(float(cin * kernel_size))
        b = jax.random.normal(ks[5 + 2 * li], (cout,), jnp.float32) * 0.01
        post.append((w, b))
    p["postnet"] = post
    return p


@jax.jit
def speech_output_forward(src, params):
    # src: (T, B, in_dim)   (sequence-first, like the PyTorch module)
    T, B, in_dim = src.shape
    out_dim = params["mel_w"].shape[1]
    N = T * B

    # ---- fused Mel + Stop linear -------------------------------------------
    w_cat = jnp.concatenate([params["mel_w"], params["stop_w"]], axis=1)   # (in_dim, out_dim+1)
    b_cat = jnp.concatenate([params["mel_b"], params["stop_b"]], axis=1)   # (1, out_dim+1)

    tile_n = min(512, _round_up(N, 8))          # big row tile; multiple of 8
    Np = _round_up(N, tile_n)
    x_flat = src.reshape(N, in_dim)
    if Np != N:
        x_flat = jnp.pad(x_flat, ((0, Np - N), (0, 0)))

    y = speech_linear(x_flat, w_cat, b_cat, tile_n=tile_n)[:N]   # (N, out_dim+1)
    mel_flat = y[:, :out_dim]                                    # (N, out_dim)
    stop = jnp.transpose(y[:, out_dim].reshape(T, B), (1, 0))    # (B, T), sigmoid already applied

    # ---- PostNet (single transpose to channels-last, fused 5-layer kernel) --
    h = jnp.transpose(mel_flat.reshape(T, B, out_dim), (1, 0, 2))   # (B, T, out_dim)
    mel_btc = postnet_fused(h, params["postnet"])                   # (B, T, out_dim)
    mel = jnp.transpose(mel_btc, (0, 2, 1))                         # (B, out_dim, T)
    return mel, stop


# ----------------------------------------------------------------------------
# Pure-JAX reference (for correctness check only)
# ----------------------------------------------------------------------------
def reference_forward(src, params):
    T, B, in_dim = src.shape
    out_dim = params["mel_w"].shape[1]
    x = src.reshape(T * B, in_dim)
    mel_flat = x @ params["mel_w"] + params["mel_b"][0]
    stop_flat = jax.nn.sigmoid(x @ params["stop_w"] + params["stop_b"][0])
    mel_logit = jnp.transpose(mel_flat.reshape(T, B, out_dim), (1, 2, 0))
    stop = jnp.transpose(stop_flat.reshape(T, B), (1, 0))
    h = jnp.transpose(mel_logit, (0, 2, 1))                  # (B, T, C)
    for w, b in params["postnet"]:
        h = jax.lax.conv_general_dilated(
            h, w, window_strides=(1,), padding="SAME",
            dimension_numbers=("NWC", "WIO", "NWC"),
        ) + b
    mel = jnp.transpose(h, (0, 2, 1))
    return mel, stop


if __name__ == "__main__":
    # Small shapes: seq T=8, batch B=2, in_dim=32, out_dim=16 (PostNet hidden=256)
    T, B, IN_DIM, OUT_DIM = 8, 2, 32, 16
    key = jax.random.PRNGKey(0)
    k_src, k_par = jax.random.split(key)
    src = jax.random.normal(k_src, (T, B, IN_DIM), jnp.float32)
    params = init_params(k_par, IN_DIM, OUT_DIM)

    mel, stop = speech_output_forward(src, params)
    jax.block_until_ready((mel, stop))

    mel_ref, stop_ref = reference_forward(src, params)
    assert mel.shape == (B, OUT_DIM, T) and stop.shape == (B, T)
    assert jnp.allclose(mel, mel_ref, rtol=2e-2, atol=2e-2)
    assert jnp.allclose(stop, stop_ref, rtol=2e-2, atol=2e-2)

    print("KERNEL_OK")
</pallas_src>

<mosaic_0001>
module attributes {stable_mosaic.version = 11 : i64} {
  func.func @_linear_kernel(%arg0: i32, %arg1: memref<16x32xf32, #tpu.memory_space<vmem>>, %arg2: memref<32x17xf32, #tpu.memory_space<vmem>>, %arg3: memref<1x17xf32, #tpu.memory_space<vmem>>, %arg4: memref<16x17xf32, #tpu.memory_space<vmem>>) attributes {dimension_semantics = [#tpu.dimension_semantics<parallel>], iteration_bounds = array<i64: 1>, scalar_prefetch = 0 : i64, scratch_operands = 0 : i64, tpu.core_type = #tpu.core_type<tc>, window_params = [{transform_indices = @transform_0, window_bounds = array<i64: 16, 32>}, {pipeline_mode = #tpu.pipeline_mode<synchronous>, transform_indices = @transform_1, window_bounds = array<i64: 32, 17>}, {pipeline_mode = #tpu.pipeline_mode<synchronous>, transform_indices = @transform_2, window_bounds = array<i64: 1, 17>}, {transform_indices = @transform_3, window_bounds = array<i64: 16, 17>}]} {
    %c0 = arith.constant 0 : index
    %c0_0 = arith.constant 0 : index
    %0 = vector.load %arg1[%c0, %c0_0] : memref<16x32xf32, #tpu.memory_space<vmem>>, vector<16x32xf32>
    %c0_1 = arith.constant 0 : index
    %c0_2 = arith.constant 0 : index
    %1 = vector.load %arg2[%c0_1, %c0_2] : memref<32x17xf32, #tpu.memory_space<vmem>>, vector<32x17xf32>
    %cst = arith.constant dense<0.000000e+00> : vector<16x17xf32>
    %2 = tpu.matmul %0, %1, %cst {dimension_numbers = #tpu.dot_dimension_numbers<[1], [0], [0], [1], [0, 0, 1, 1], [], []>} : vector<16x32xf32>, vector<32x17xf32>, vector<16x17xf32> -> vector<16x17xf32>
    %c0_3 = arith.constant 0 : index
    %c0_4 = arith.constant 0 : index
    %3 = vector.load %arg3[%c0_3, %c0_4] : memref<1x17xf32, #tpu.memory_space<vmem>>, vector<1x17xf32>
    %4 = vector.broadcast %3 : vector<1x17xf32> to vector<16x17xf32>
    %5 = arith.addf %2, %4 : vector<16x17xf32>
    %6 = tpu.iota {dimensions = array<i32: 1>} : vector<16x17xi32>
    %c16_i32 = arith.constant 16 : i32
    %7 = vector.broadcast %c16_i32 : i32 to vector<16x17xi32>
    %8 = arith.cmpi eq, %6, %7 : vector<16x17xi32>
    %9 = arith.negf %5 : vector<16x17xf32>
    %10 = math.exp %9 : vector<16x17xf32>
    %cst_5 = arith.constant 1.000000e+00 : f32
    %11 = vector.broadcast %cst_5 : f32 to vector<16x17xf32>
    %12 = arith.addf %11, %10 : vector<16x17xf32>
    %13 = arith.divf %11, %12 : vector<16x17xf32>
    %14 = arith.select %8, %13, %5 : vector<16x17xi1>, vector<16x17xf32>
    %c0_6 = arith.constant 0 : index
    %c0_7 = arith.constant 0 : index
    %15 = vector.load %arg4[%c0_6, %c0_7] : memref<16x17xf32, #tpu.memory_space<vmem>>, vector<16x17xf32>
    tpu.vector_store %arg4[%c0_6, %c0_7], %14 {strides = array<i32>} : memref<16x17xf32, #tpu.memory_space<vmem>>, vector<16x17xf32>,
    return
  }
  func.func @transform_0(%arg0: i32) -> (i32, i32) {
    %c0_i32 = arith.constant 0 : i32
    %c0_i32_0 = arith.constant 0 : i32
    return %arg0, %c0_i32 : i32, i32
  }
  func.func @transform_1(%arg0: i32) -> (i32, i32) {
    %c0_i32 = arith.constant 0 : i32
    %c0_i32_0 = arith.constant 0 : i32
    %c0_i32_1 = arith.constant 0 : i32
    return %c0_i32, %c0_i32_0 : i32, i32
  }
  func.func @transform_2(%arg0: i32) -> (i32, i32) {
    %c0_i32 = arith.constant 0 : i32
    %c0_i32_0 = arith.constant 0 : i32
    %c0_i32_1 = arith.constant 0 : i32
    return %c0_i32, %c0_i32_0 : i32, i32
  }
  func.func @transform_3(%arg0: i32) -> (i32, i32) {
    %c0_i32 = arith.constant 0 : i32
    %c0_i32_0 = arith.constant 0 : i32
    return %arg0, %c0_i32 : i32, i32
  }
}

module attributes {stable_mosaic.version = 11 : i64} {
  func.func @_postnet_kernel(%arg0: i32, %arg1: memref<1x8x16xf32, #tpu.memory_space<vmem>>, %arg2: memref<3x16x256xf32, #tpu.memory_space<vmem>>, %arg3: memref<1x256xf32, #tpu.memory_space<vmem>>, %arg4: memref<3x256x256xf32, #tpu.memory_space<vmem>>, %arg5: memref<1x256xf32, #tpu.memory_space<vmem>>, %arg6: memref<3x256x256xf32, #tpu.memory_space<vmem>>, %arg7: memref<1x256xf32, #tpu.memory_space<vmem>>, %arg8: memref<3x256x256xf32, #tpu.memory_space<vmem>>, %arg9: memref<1x256xf32, #tpu.memory_space<vmem>>, %arg10: memref<3x256x16xf32, #tpu.memory_space<vmem>>, %arg11: memref<1x16xf32, #tpu.memory_space<vmem>>, %arg12: memref<1x8x16xf32, #tpu.memory_space<vmem>>, %arg13: memref<10x16xf32, #tpu.memory_space<vmem>>, %arg14: memref<10x256xf32, #tpu.memory_space<vmem>>, %arg15: memref<10x256xf32, #tpu.memory_space<vmem>>) attributes {dimension_semantics = [#tpu.dimension_semantics<parallel>], iteration_bounds = array<i64: 2>, scalar_prefetch = 0 : i64, scratch_operands = 3 : i64, tpu.core_type = #tpu.core_type<tc>, window_params = [{transform_indices = @transform_0, window_bounds = array<i64: 1, 8, 16>}, {pipeline_mode = #tpu.pipeline_mode<synchronous>, transform_indices = @transform_1, window_bounds = array<i64: 3, 16, 256>}, {pipeline_mode = #tpu.pipeline_mode<synchronous>, transform_indices = @transform_2, window_bounds = array<i64: 1, 256>}, {pipeline_mode = #tpu.pipeline_mode<synchronous>, transform_indices = @transform_3, window_bounds = array<i64: 3, 256, 256>}, {pipeline_mode = #tpu.pipeline_mode<synchronous>, transform_indices = @transform_4, window_bounds = array<i64: 1, 256>}, {pipeline_mode = #tpu.pipeline_mode<synchronous>, transform_indices = @transform_5, window_bounds = array<i64: 3, 256, 256>}, {pipeline_mode = #tpu.pipeline_mode<synchronous>, transform_indices = @transform_6, window_bounds = array<i64: 1, 256>}, {pipeline_mode = #tpu.pipeline_mode<synchronous>, transform_indices = @transform_7, window_bounds = array<i64: 3, 256, 256>}, {pipeline_mode = #tpu.pipeline_mode<synchronous>, transform_indices = @transform_8, window_bounds = array<i64: 1, 256>}, {pipeline_mode = #tpu.pipeline_mode<synchronous>, transform_indices = @transform_9, window_bounds = array<i64: 3, 256, 16>}, {pipeline_mode = #tpu.pipeline_mode<synchronous>, transform_indices = @transform_10, window_bounds = array<i64: 1, 16>}, {transform_indices = @transform_11, window_bounds = array<i64: 1, 8, 16>}]} {
    %cst = arith.constant 0.000000e+00 : f32
    %0 = vector.broadcast %cst : f32 to vector<1x16xf32>
    %c0 = arith.constant 0 : index
    %c0_0 = arith.constant 0 : index
    %1 = vector.load %arg13[%c0, %c0_0] : memref<10x16xf32, #tpu.memory_space<vmem>>, vector<1x16xf32>
    tpu.vector_store %arg13[%c0, %c0_0], %0 {strides = array<i32>} : memref<10x16xf32, #tpu.memory_space<vmem>>, vector<1x16xf32>,
    %cst_1 = arith.constant 0.000000e+00 : f32
    %2 = vector.broadcast %cst_1 : f32 to vector<1x16xf32>
    %c9 = arith.constant 9 : index
    %c0_2 = arith.constant 0 : index
    %3 = vector.load %arg13[%c9, %c0_2] : memref<10x16xf32, #tpu.memory_space<vmem>>, vector<1x16xf32>
    tpu.vector_store %arg13[%c9, %c0_2], %2 {strides = array<i32>} : memref<10x16xf32, #tpu.memory_space<vmem>>, vector<1x16xf32>,
    %c0_3 = arith.constant 0 : index
    %c0_4 = arith.constant 0 : index
    %c0_5 = arith.constant 0 : index
    %4 = vector.load %arg1[%c0_3, %c0_4, %c0_5] : memref<1x8x16xf32, #tpu.memory_space<vmem>>, vector<1x8x16xf32>
    %5 = vector.shape_cast %4 : vector<1x8x16xf32> to vector<8x16xf32>
    %c1 = arith.constant 1 : index
    %c0_6 = arith.constant 0 : index
    %6 = vector.load %arg13[%c1, %c0_6] : memref<10x16xf32, #tpu.memory_space<vmem>>, vector<8x16xf32>
    tpu.vector_store %arg13[%c1, %c0_6], %5 {strides = array<i32>} : memref<10x16xf32, #tpu.memory_space<vmem>>, vector<8x16xf32>,
    %cst_7 = arith.constant 0.000000e+00 : f32
    %7 = vector.broadcast %cst_7 : f32 to vector<1x256xf32>
    %c0_8 = arith.constant 0 : index
    %c0_9 = arith.constant 0 : index
    %8 = vector.load %arg14[%c0_8, %c0_9] : memref<10x256xf32, #tpu.memory_space<vmem>>, vector<1x256xf32>
    tpu.vector_store %arg14[%c0_8, %c0_9], %7 {strides = array<i32>} : memref<10x256xf32, #tpu.memory_space<vmem>>, vector<1x256xf32>,
    %cst_10 = arith.constant 0.000000e+00 : f32
    %9 = vector.broadcast %cst_10 : f32 to vector<1x256xf32>
    %c9_11 = arith.constant 9 : index
    %c0_12 = arith.constant 0 : index
    %10 = vector.load %arg14[%c9_11, %c0_12] : memref<10x256xf32, #tpu.memory_space<vmem>>, vector<1x256xf32>
    tpu.vector_store %arg14[%c9_11, %c0_12], %9 {strides = array<i32>} : memref<10x256xf32, #tpu.memory_space<vmem>>, vector<1x256xf32>,
    %c0_13 = arith.constant 0 : index
    %c0_14 = arith.constant 0 : index
    %11 = vector.load %arg13[%c0_13, %c0_14] : memref<10x16xf32, #tpu.memory_space<vmem>>, vector<8x16xf32>
    %c0_15 = arith.constant 0 : index
    %c0_16 = arith.constant 0 : index
    %c0_17 = arith.constant 0 : index
    %12 = vector.load %arg2[%c0_15, %c0_16, %c0_17] : memref<3x16x256xf32, #tpu.memory_space<vmem>>, vector<1x16x256xf32>
    %13 = vector.shape_cast %12 : vector<1x16x256xf32> to vector<16x256xf32>
    %cst_18 = arith.constant dense<0.000000e+00> : vector<8x256xf32>
    %14 = tpu.matmul %11, %13, %cst_18 {dimension_numbers = #tpu.dot_dimension_numbers<[1], [0], [0], [1], [0, 0, 1, 1], [], []>} : vector<8x16xf32>, vector<16x256xf32>, vector<8x256xf32> -> vector<8x256xf32>
    %c1_19 = arith.constant 1 : index
    %c0_20 = arith.constant 0 : index
    %15 = vector.load %arg13[%c1_19, %c0_20] : memref<10x16xf32, #tpu.memory_space<vmem>>, vector<8x16xf32>
    %c1_21 = arith.constant 1 : index
    %c0_22 = arith.constant 0 : index
    %c0_23 = arith.constant 0 : index
    %16 = vector.load %arg2[%c1_21, %c0_22, %c0_23] : memref<3x16x256xf32, #tpu.memory_space<vmem>>, vector<1x16x256xf32>
    %17 = vector.shape_cast %16 : vector<1x16x256xf32> to vector<16x256xf32>
    %cst_24 = arith.constant dense<0.000000e+00> : vector<8x256xf32>
    %18 = tpu.matmul %15, %17, %cst_24 {dimension_numbers = #tpu.dot_dimension_numbers<[1], [0], [0], [1], [0, 0, 1, 1], [], []>} : vector<8x16xf32>, vector<16x256xf32>, vector<8x256xf32> -> vector<8x256xf32>
    %19 = arith.addf %14, %18 : vector<8x256xf32>
    %c2 = arith.constant 2 : index
    %c0_25 = arith.constant 0 : index
    %20 = vector.load %arg13[%c2, %c0_25] : memref<10x16xf32, #tpu.memory_space<vmem>>, vector<8x16xf32>
    %c2_26 = arith.constant 2 : index
    %c0_27 = arith.constant 0 : index
    %c0_28 = arith.constant 0 : index
    %21 = vector.load %arg2[%c2_26, %c0_27, %c0_28] : memref<3x16x256xf32, #tpu.memory_space<vmem>>, vector<1x16x256xf32>
    %22 = vector.shape_cast %21 : vector<1x16x256xf32> to vector<16x256xf32>
    %cst_29 = arith.constant dense<0.000000e+00> : vector<8x256xf32>
    %23 = tpu.matmul %20, %22, %cst_29 {dimension_numbers = #tpu.dot_dimension_numbers<[1], [0], [0], [1], [0, 0, 1, 1], [], []>} : vector<8x16xf32>, vector<16x256xf32>, vector<8x256xf32> -> vector<8x256xf32>
    %24 = arith.addf %19, %23 : vector<8x256xf32>
    %c0_30 = arith.constant 0 : index
    %c0_31 = arith.constant 0 : index
    %25 = vector.load %arg3[%c0_30, %c0_31] : memref<1x256xf32, #tpu.memory_space<vmem>>, vector<1x256xf32>
    %26 = vector.broadcast %25 : vector<1x256xf32> to vector<8x256xf32>
    %27 = arith.addf %24, %26 : vector<8x256xf32>
    %c1_32 = arith.constant 1 : index
    %c0_33 = arith.constant 0 : index
    %28 = vector.load %arg14[%c1_32, %c0_33] : memref<10x256xf32, #tpu.memory_space<vmem>>, vector<8x256xf32>
    tpu.vector_store %arg14[%c1_32, %c0_33], %27 {strides = array<i32>} : memref<10x256xf32, #tpu.memory_space<vmem>>, vector<8x256xf32>,
    %cst_34 = arith.constant 0.000000e+00 : f32
    %29 = vector.broadcast %cst_34 : f32 to vector<1x256xf32>
    %c0_35 = arith.constant 0 : index
    %c0_36 = arith.constant 0 : index
    %30 = vector.load %arg15[%c0_35, %c0_36] : memref<10x256xf32, #tpu.memory_space<vmem>>, vector<1x256xf32>
    tpu.vector_store %arg15[%c0_35, %c0_36], %29 {strides = array<i32>} : memref<10x256xf32, #tpu.memory_space<vmem>>, vector<1x256xf32>,
    %cst_37 = arith.constant 0.000000e+00 : f32
    %31 = vector.broadcast %cst_37 : f32 to vector<1x256xf32>
    %c9_38 = arith.constant 9 : index
    %c0_39 = arith.constant 0 : index
    %32 = vector.load %arg15[%c9_38, %c0_39] : memref<10x256xf32, #tpu.memory_space<vmem>>, vector<1x256xf32>
    tpu.vector_store %arg15[%c9_38, %c0_39], %31 {strides = array<i32>} : memref<10x256xf32, #tpu.memory_space<vmem>>, vector<1x256xf32>,
    %c0_40 = arith.constant 0 : index
    %c0_41 = arith.constant 0 : index
    %33 = vector.load %arg14[%c0_40, %c0_41] : memref<10x256xf32, #tpu.memory_space<vmem>>, vector<8x256xf32>
    %c0_42 = arith.constant 0 : index
    %c0_43 = arith.constant 0 : index
    %c0_44 = arith.constant 0 : index
    %34 = vector.load %arg4[%c0_42, %c0_43, %c0_44] : memref<3x256x256xf32, #tpu.memory_space<vmem>>, vector<1x256x256xf32>
    %35 = vector.shape_cast %34 : vector<1x256x256xf32> to vector<256x256xf32>
    %cst_45 = arith.constant dense<0.000000e+00> : vector<8x256xf32>
    %36 = tpu.matmul %33, %35, %cst_45 {dimension_numbers = #tpu.dot_dimension_numbers<[1], [0], [0], [1], [0, 0, 1, 1], [], []>} : vector<8x256xf32>, vector<256x256xf32>, vector<8x256xf32> -> vector<8x256xf32>
    %c1_46 = arith.constant 1 : index
    %c0_47 = arith.constant 0 : index
    %37 = vector.load %arg14[%c1_46, %c0_47] : memref<10x256xf32, #tpu.memory_space<vmem>>, vector<8x256xf32>
    %c1_48 = arith.constant 1 : index
    %c0_49 = arith.constant 0 : index
    %c0_50 = arith.constant 0 : index
    %38 = vector.load %arg4[%c1_48, %c0_49, %c0_50] : memref<3x256x256xf32, #tpu.memory_space<vmem>>, vector<1x256x256xf32>
    %39 = vector.shape_cast %38 : vector<1x256x256xf32> to vector<256x256xf32>
    %cst_51 = arith.constant dense<0.000000e+00> : vector<8x256xf32>
    %40 = tpu.matmul %37, %39, %cst_51 {dimension_numbers = #tpu.dot_dimension_numbers<[1], [0], [0], [1], [0, 0, 1, 1], [], []>} : vector<8x256xf32>, vector<256x256xf32>, vector<8x256xf32> -> vector<8x256xf32>
    %41 = arith.addf %36, %40 : vector<8x256xf32>
    %c2_52 = arith.constant 2 : index
    %c0_53 = arith.constant 0 : index
    %42 = vector.load %arg14[%c2_52, %c0_53] : memref<10x256xf32, #tpu.memory_space<vmem>>, vector<8x256xf32>
    %c2_54 = arith.constant 2 : index
    %c0_55 = arith.constant 0 : index
    %c0_56 = arith.constant 0 : index
    %43 = vector.load %arg4[%c2_54, %c0_55, %c0_56] : memref<3x256x256xf32, #tpu.memory_space<vmem>>, vector<1x256x256xf32>
    %44 = vector.shape_cast %43 : vector<1x256x256xf32> to vector<256x256xf32>
    %cst_57 = arith.constant dense<0.000000e+00> : vector<8x256xf32>
    %45 = tpu.matmul %42, %44, %cst_57 {dimension_numbers = #tpu.dot_dimension_numbers<[1], [0], [0], [1], [0, 0, 1, 1], [], []>} : vector<8x256xf32>, vector<256x256xf32>, vector<8x256xf32> -> vector<8x256xf32>
    %46 = arith.addf %41, %45 : vector<8x256xf32>
    %c0_58 = arith.constant 0 : index
    %c0_59 = arith.constant 0 : index
    %47 = vector.load %arg5[%c0_58, %c0_59] : memref<1x256xf32, #tpu.memory_space<vmem>>, vector<1x256xf32>
    %48 = vector.broadcast %47 : vector<1x256xf32> to vector<8x256xf32>
    %49 = arith.addf %46, %48 : vector<8x256xf32>
    %c1_60 = arith.constant 1 : index
    %c0_61 = arith.constant 0 : index
    %50 = vector.load %arg15[%c1_60, %c0_61] : memref<10x256xf32, #tpu.memory_space<vmem>>, vector<8x256xf32>
    tpu.vector_store %arg15[%c1_60, %c0_61], %49 {strides = array<i32>} : memref<10x256xf32, #tpu.memory_space<vmem>>, vector<8x256xf32>,
    %c0_62 = arith.constant 0 : index
    %c0_63 = arith.constant 0 : index
    %51 = vector.load %arg15[%c0_62, %c0_63] : memref<10x256xf32, #tpu.memory_space<vmem>>, vector<8x256xf32>
    %c0_64 = arith.constant 0 : index
    %c0_65 = arith.constant 0 : index
    %c0_66 = arith.constant 0 : index
    %52 = vector.load %arg6[%c0_64, %c0_65, %c0_66] : memref<3x256x256xf32, #tpu.memory_space<vmem>>, vector<1x256x256xf32>
    %53 = vector.shape_cast %52 : vector<1x256x256xf32> to vector<256x256xf32>
    %cst_67 = arith.constant dense<0.000000e+00> : vector<8x256xf32>
    %54 = tpu.matmul %51, %53, %cst_67 {dimension_numbers = #tpu.dot_dimension_numbers<[1], [0], [0], [1], [0, 0, 1, 1], [], []>} : vector<8x256xf32>, vector<256x256xf32>, vector<8x256xf32> -> vector<8x256xf32>
    %c1_68 = arith.constant 1 : index
    %c0_69 = arith.constant 0 : index
    %55 = vector.load %arg15[%c1_68, %c0_69] : memref<10x256xf32, #tpu.memory_space<vmem>>, vector<8x256xf32>
    %c1_70 = arith.constant 1 : index
    %c0_71 = arith.constant 0 : index
    %c0_72 = arith.constant 0 : index
    %56 = vector.load %arg6[%c1_70, %c0_71, %c0_72] : memref<3x256x256xf32, #tpu.memory_space<vmem>>, vector<1x256x256xf32>
    %57 = vector.shape_cast %56 : vector<1x256x256xf32> to vector<256x256xf32>
    %cst_73 = arith.constant dense<0.000000e+00> : vector<8x256xf32>
    %58 = tpu.matmul %55, %57, %cst_73 {dimension_numbers = #tpu.dot_dimension_numbers<[1], [0], [0], [1], [0, 0, 1, 1], [], []>} : vector<8x256xf32>, vector<256x256xf32>, vector<8x256xf32> -> vector<8x256xf32>
    %59 = arith.addf %54, %58 : vector<8x256xf32>
    %c2_74 = arith.constant 2 : index
    %c0_75 = arith.constant 0 : index
    %60 = vector.load %arg15[%c2_74, %c0_75] : memref<10x256xf32, #tpu.memory_space<vmem>>, vector<8x256xf32>
    %c2_76 = arith.constant 2 : index
    %c0_77 = arith.constant 0 : index
    %c0_78 = arith.constant 0 : index
    %61 = vector.load %arg6[%c2_76, %c0_77, %c0_78] : memref<3x256x256xf32, #tpu.memory_space<vmem>>, vector<1x256x256xf32>
    %62 = vector.shape_cast %61 : vector<1x256x256xf32> to vector<256x256xf32>
    %cst_79 = arith.constant dense<0.000000e+00> : vector<8x256xf32>
    %63 = tpu.matmul %60, %62, %cst_79 {dimension_numbers = #tpu.dot_dimension_numbers<[1], [0], [0], [1], [0, 0, 1, 1], [], []>} : vector<8x256xf32>, vector<256x256xf32>, vector<8x256xf32> -> vector<8x256xf32>
    %64 = arith.addf %59, %63 : vector<8x256xf32>
    %c0_80 = arith.constant 0 : index
    %c0_81 = arith.constant 0 : index
    %65 = vector.load %arg7[%c0_80, %c0_81] : memref<1x256xf32, #tpu.memory_space<vmem>>, vector<1x256xf32>
    %66 = vector.broadcast %65 : vector<1x256xf32> to vector<8x256xf32>
    %67 = arith.addf %64, %66 : vector<8x256xf32>
    %c1_82 = arith.constant 1 : index
    %c0_83 = arith.constant 0 : index
    %68 = vector.load %arg14[%c1_82, %c0_83] : memref<10x256xf32, #tpu.memory_space<vmem>>, vector<8x256xf32>
    tpu.vector_store %arg14[%c1_82, %c0_83], %67 {strides = array<i32>} : memref<10x256xf32, #tpu.memory_space<vmem>>, vector<8x256xf32>,
    %c0_84 = arith.constant 0 : index
    %c0_85 = arith.constant 0 : index
    %69 = vector.load %arg14[%c0_84, %c0_85] : memref<10x256xf32, #tpu.memory_space<vmem>>, vector<8x256xf32>
    %c0_86 = arith.constant 0 : index
    %c0_87 = arith.constant 0 : index
    %c0_88 = arith.constant 0 : index
    %70 = vector.load %arg8[%c0_86, %c0_87, %c0_88] : memref<3x256x256xf32, #tpu.memory_space<vmem>>, vector<1x256x256xf32>
    %71 = vector.shape_cast %70 : vector<1x256x256xf32> to vector<256x256xf32>
    %cst_89 = arith.constant dense<0.000000e+00> : vector<8x256xf32>
    %72 = tpu.matmul %69, %71, %cst_89 {dimension_numbers = #tpu.dot_dimension_numbers<[1], [0], [0], [1], [0, 0, 1, 1], [], []>} : vector<8x256xf32>, vector<256x256xf32>, vector<8x256xf32> -> vector<8x256xf32>
    %c1_90 = arith.constant 1 : index
    %c0_91 = arith.constant 0 : index
    %73 = vector.load %arg14[%c1_90, %c0_91] : memref<10x256xf32, #tpu.memory_space<vmem>>, vector<8x256xf32>
    %c1_92 = arith.constant 1 : index
    %c0_93 = arith.constant 0 : index
    %c0_94 = arith.constant 0 : index
    %74 = vector.load %arg8[%c1_92, %c0_93, %c0_94] : memref<3x256x256xf32, #tpu.memory_space<vmem>>, vector<1x256x256xf32>
    %75 = vector.shape_cast %74 : vector<1x256x256xf32> to vector<256x256xf32>
    %cst_95 = arith.constant dense<0.000000e+00> : vector<8x256xf32>
    %76 = tpu.matmul %73, %75, %cst_95 {dimension_numbers = #tpu.dot_dimension_numbers<[1], [0], [0], [1], [0, 0, 1, 1], [], []>} : vector<8x256xf32>, vector<256x256xf32>, vector<8x256xf32> -> vector<8x256xf32>
    %77 = arith.addf %72, %76 : vector<8x256xf32>
    %c2_96 = arith.constant 2 : index
    %c0_97 = arith.constant 0 : index
    %78 = vector.load %arg14[%c2_96, %c0_97] : memref<10x256xf32, #tpu.memory_space<vmem>>, vector<8x256xf32>
    %c2_98 = arith.constant 2 : index
    %c0_99 = arith.constant 0 : index
    %c0_100 = arith.constant 0 : index
    %79 = vector.load %arg8[%c2_98, %c0_99, %c0_100] : memref<3x256x256xf32, #tpu.memory_space<vmem>>, vector<1x256x256xf32>
    %80 = vector.shape_cast %79 : vector<1x256x256xf32> to vector<256x256xf32>
    %cst_101 = arith.constant dense<0.000000e+00> : vector<8x256xf32>
    %81 = tpu.matmul %78, %80, %cst_101 {dimension_numbers = #tpu.dot_dimension_numbers<[1], [0], [0], [1], [0, 0, 1, 1], [], []>} : vector<8x256xf32>, vector<256x256xf32>, vector<8x256xf32> -> vector<8x256xf32>
    %82 = arith.addf %77, %81 : vector<8x256xf32>
    %c0_102 = arith.constant 0 : index
    %c0_103 = arith.constant 0 : index
    %83 = vector.load %arg9[%c0_102, %c0_103] : memref<1x256xf32, #tpu.memory_space<vmem>>, vector<1x256xf32>
    %84 = vector.broadcast %83 : vector<1x256xf32> to vector<8x256xf32>
    %85 = arith.addf %82, %84 : vector<8x256xf32>
    %c1_104 = arith.constant 1 : index
    %c0_105 = arith.constant 0 : index
    %86 = vector.load %arg15[%c1_104, %c0_105] : memref<10x256xf32, #tpu.memory_space<vmem>>, vector<8x256xf32>
    tpu.vector_store %arg15[%c1_104, %c0_105], %85 {strides = array<i32>} : memref<10x256xf32, #tpu.memory_space<vmem>>, vector<8x256xf32>,
    %c0_106 = arith.constant 0 : index
    %c0_107 = arith.constant 0 : index
    %87 = vector.load %arg15[%c0_106, %c0_107] : memref<10x256xf32, #tpu.memory_space<vmem>>, vector<8x256xf32>
    %c0_108 = arith.constant 0 : index
    %c0_109 = arith.constant 0 : index
    %c0_110 = arith.constant 0 : index
    %88 = vector.load %arg10[%c0_108, %c0_109, %c0_110] : memref<3x256x16xf32, #tpu.memory_space<vmem>>, vector<1x256x16xf32>
    %89 = vector.shape_cast %88 : vector<1x256x16xf32> to vector<256x16xf32>
    %cst_111 = arith.constant dense<0.000000e+00> : vector<8x16xf32>
    %90 = tpu.matmul %87, %89, %cst_111 {dimension_numbers = #tpu.dot_dimension_numbers<[1], [0], [0], [1], [0, 0, 1, 1], [], []>} : vector<8x256xf32>, vector<256x16xf32>, vector<8x16xf32> -> vector<8x16xf32>
    %c1_112 = arith.constant 1 : index
    %c0_113 = arith.constant 0 : index
    %91 = vector.load %arg15[%c1_112, %c0_113] : memref<10x256xf32, #tpu.memory_space<vmem>>, vector<8x256xf32>
    %c1_114 = arith.constant 1 : index
    %c0_115 = arith.constant 0 : index
    %c0_116 = arith.constant 0 : index
    %92 = vector.load %arg10[%c1_114, %c0_115, %c0_116] : memref<3x256x16xf32, #tpu.memory_space<vmem>>, vector<1x256x16xf32>
    %93 = vector.shape_cast %92 : vector<1x256x16xf32> to vector<256x16xf32>
    %cst_117 = arith.constant dense<0.000000e+00> : vector<8x16xf32>
    %94 = tpu.matmul %91, %93, %cst_117 {dimension_numbers = #tpu.dot_dimension_numbers<[1], [0], [0], [1], [0, 0, 1, 1], [], []>} : vector<8x256xf32>, vector<256x16xf32>, vector<8x16xf32> -> vector<8x16xf32>
    %95 = arith.addf %90, %94 : vector<8x16xf32>
    %c2_118 = arith.constant 2 : index
    %c0_119 = arith.constant 0 : index
    %96 = vector.load %arg15[%c2_118, %c0_119] : memref<10x256xf32, #tpu.memory_space<vmem>>, vector<8x256xf32>
    %c2_120 = arith.constant 2 : index
    %c0_121 = arith.constant 0 : index
    %c0_122 = arith.constant 0 : index
    %97 = vector.load %arg10[%c2_120, %c0_121, %c0_122] : memref<3x256x16xf32, #tpu.memory_space<vmem>>, vector<1x256x16xf32>
    %98 = vector.shape_cast %97 : vector<1x256x16xf32> to vector<256x16xf32>
    %cst_123 = arith.constant dense<0.000000e+00> : vector<8x16xf32>
    %99 = tpu.matmul %96, %98, %cst_123 {dimension_numbers = #tpu.dot_dimension_numbers<[1], [0], [0], [1], [0, 0, 1, 1], [], []>} : vector<8x256xf32>, vector<256x16xf32>, vector<8x16xf32> -> vector<8x16xf32>
    %100 = arith.addf %95, %99 : vector<8x16xf32>
    %c0_124 = arith.constant 0 : index
    %c0_125 = arith.constant 0 : index
    %101 = vector.load %arg11[%c0_124, %c0_125] : memref<1x16xf32, #tpu.memory_space<vmem>>, vector<1x16xf32>
    %102 = vector.broadcast %101 : vector<1x16xf32> to vector<8x16xf32>
    %103 = arith.addf %100, %102 : vector<8x16xf32>
    %104 = vector.shape_cast %103 : vector<8x16xf32> to vector<1x8x16xf32>
    %c0_126 = arith.constant 0 : index
    %c0_127 = arith.constant 0 : index
    %c0_128 = arith.constant 0 : index
    %105 = vector.load %arg12[%c0_126, %c0_127, %c0_128] : memref<1x8x16xf32, #tpu.memory_space<vmem>>, vector<1x8x16xf32>
    tpu.vector_store %arg12[%c0_126, %c0_127, %c0_128], %104 {strides = array<i32>} : memref<1x8x16xf32, #tpu.memory_space<vmem>>, vector<1x8x16xf32>,
    return
  }
  func.func @transform_0(%arg0: i32) -> (i32, i32, i32) {
    %c0_i32 = arith.constant 0 : i32
    %c0_i32_0 = arith.constant 0 : i32
    %c0_i32_1 = arith.constant 0 : i32
    return %arg0, %c0_i32, %c0_i32_0 : i32, i32, i32
  }
  func.func @transform_1(%arg0: i32) -> (i32, i32, i32) {
    %c0_i32 = arith.constant 0 : i32
    %c0_i32_0 = arith.constant 0 : i32
    %c0_i32_1 = arith.constant 0 : i32
    %c0_i32_2 = arith.constant 0 : i32
    return %c0_i32, %c0_i32_0, %c0_i32_1 : i32, i32, i32
  }
  func.func @transform_2(%arg0: i32) -> (i32, i32) {
    %c0_i32 = arith.constant 0 : i32
    %c0_i32_0 = arith.constant 0 : i32
    %c0_i32_1 = arith.constant 0 : i32
    return %c0_i32, %c0_i32_0 : i32, i32
  }
  func.func @transform_3(%arg0: i32) -> (i32, i32, i32) {
    %c0_i32 = arith.constant 0 : i32
    %c0_i32_0 = arith.constant 0 : i32
    %c0_i32_1 = arith.constant 0 : i32
    %c0_i32_2 = arith.constant 0 : i32
    return %c0_i32, %c0_i32_0, %c0_i32_1 : i32, i32, i32
  }
  func.func @transform_4(%arg0: i32) -> (i32, i32) {
    %c0_i32 = arith.constant 0 : i32
    %c0_i32_0 = arith.constant 0 : i32
    %c0_i32_1 = arith.constant 0 : i32
    return %c0_i32, %c0_i32_0 : i32, i32
  }
  func.func @transform_5(%arg0: i32) -> (i32, i32, i32) {
    %c0_i32 = arith.constant 0 : i32
    %c0_i32_0 = arith.constant 0 : i32
    %c0_i32_1 = arith.constant 0 : i32
    %c0_i32_2 = arith.constant 0 : i32
    return %c0_i32, %c0_i32_0, %c0_i32_1 : i32, i32, i32
  }
  func.func @transform_6(%arg0: i32) -> (i32, i32) {
    %c0_i32 = arith.constant 0 : i32
    %c0_i32_0 = arith.constant 0 : i32
    %c0_i32_1 = arith.constant 0 : i32
    return %c0_i32, %c0_i32_0 : i32, i32
  }
  func.func @transform_7(%arg0: i32) -> (i32, i32, i32) {
    %c0_i32 = arith.constant 0 : i32
    %c0_i32_0 = arith.constant 0 : i32
    %c0_i32_1 = arith.constant 0 : i32
    %c0_i32_2 = arith.constant 0 : i32
    return %c0_i32, %c0_i32_0, %c0_i32_1 : i32, i32, i32
  }
  func.func @transform_8(%arg0: i32) -> (i32, i32) {
    %c0_i32 = arith.constant 0 : i32
    %c0_i32_0 = arith.constant 0 : i32
    %c0_i32_1 = arith.constant 0 : i32
    return %c0_i32, %c0_i32_0 : i32, i32
  }
  func.func @transform_9(%arg0: i32) -> (i32, i32, i32) {
    %c0_i32 = arith.constant 0 : i32
    %c0_i32_0 = arith.constant 0 : i32
    %c0_i32_1 = arith.constant 0 : i32
    %c0_i32_2 = arith.constant 0 : i32
    return %c0_i32, %c0_i32_0, %c0_i32_1 : i32, i32, i32
  }
  func.func @transform_10(%arg0: i32) -> (i32, i32) {
    %c0_i32 = arith.constant 0 : i32
    %c0_i32_0 = arith.constant 0 : i32
    %c0_i32_1 = arith.constant 0 : i32
    return %c0_i32, %c0_i32_0 : i32, i32
  }
  func.func @transform_11(%arg0: i32) -> (i32, i32, i32) {
    %c0_i32 = arith.constant 0 : i32
    %c0_i32_0 = arith.constant 0 : i32
    %c0_i32_1 = arith.constant 0 : i32
    return %arg0, %c0_i32, %c0_i32_0 : i32, i32, i32
  }
}

</mosaic_0001>

<bundles_post_ra>
// kernel: squeeze.1
= control target key start
LH: loop header
LB: loop body
LE: loop exit
PB: predicated region body
PF: predicated region fallthrough
CT: control target
= control target key end

     0   :  { %s66_s8 = smov 122   ;;  %vm7_vm0 = vcmask 15360   ;;  %s67_s11 = smov 124   ;;  %s117_s0 = inlined_call_operand.vmem [shape: f32[16], index: 0, kind: input, shape index: {}]   ;;  %s118_s1 = inlined_call_operand.vmem [shape: f32[8,2], index: 1, kind: output, shape index: {}]  }
   0x1   :  { %v4_v0 = vld [vmem:[%s117_s0] sm:$0x1]  ;;  %s65_s0 = smov 126   ;;  %s68_s12 = smov 120  }
   0x2   :  { %5 = vst [vmem:[#allocation0] sm:$0x1] %v4_v0  ;;  %s69_s13 = smov 118   ;;  %s70_s14 = smov 116  }
   0x3   :  { %s71_s15 = smov 114  }
   0x9   :  { %v9_v1 = vld [vmem:[#allocation0] sm:$0x1]  }
   0xa   :  { %v21_v2 = vld [vmem:[#allocation0] sm:$0x1]   ;;  %10 = vrot.lane.b32.xlu0 %v9_v1, %s65_s0 }
   0xb   :  { %22 = vrot.lane.b32.xlu1 %v21_v2, %s66_s8  ;;  %v15_v3 = vld [vmem:[#allocation0] sm:$0x1]  }
   0xc   :  { %v27_v4 = vld [vmem:[#allocation0] sm:$0x1]  }
   0xd   :  { %v6_v5 = vld [vmem:[#allocation0] sm:$0x1]  }
   0xe   :  { %8 = vst.msk [vmem:[%s118_s1] sm:$0x1] %vm7_vm0, %v6_v5   ;;  %16 = vrot.lane.b32.xlu0 %v15_v3, %s67_s11  ;;  %v33_v6 = vld [vmem:[#allocation0] sm:$0x1]  }
   0xf   :  { %28 = vrot.lane.b32.xlu1 %v27_v4, %s68_s12  ;;  %v39_v7 = vld [vmem:[#allocation0] sm:$0x1]  }
  0x10   :  { %v45_v8 = vld [vmem:[#allocation0] sm:$0x1]  }
  0x12   :  { %34 = vrot.lane.b32.xlu0 %v33_v6, %s69_s13 }
  0x13   :  { %40 = vrot.lane.b32.xlu1 %v39_v7, %s70_s14 }
  0x16   :  { %46 = vrot.lane.b32.xlu0 %v45_v8, %s71_s15 }
  0x7c   :  { %v11_v9 = vpop.permute.xlu0 %10  }
  0x7d   :  { %v23_v10 = vpop.permute.xlu1 %22   ;;  %51 = vst.msk [vmem:[%s118_s1 + $0x1] sm:$0x1] %vm7_vm0, %v11_v9  }
  0x7e   :  { %53 = vst.msk [vmem:[%s118_s1 + $0x3] sm:$0x1] %vm7_vm0, %v23_v10  }
  0x80   :  { %v17_v11 = vpop.permute.xlu0 %16  }
  0x81   :  { %v29_v12 = vpop.permute.xlu1 %28   ;;  %52 = vst.msk [vmem:[%s118_s1 + $0x2] sm:$0x1] %vm7_vm0, %v17_v11  }
  0x82   :  { %54 = vst.msk [vmem:[%s118_s1 + $0x4] sm:$0x1] %vm7_vm0, %v29_v12  }
  0x84   :  { %v35_v13 = vpop.permute.xlu0 %34  }
  0x85   :  { %v41_v14 = vpop.permute.xlu1 %40   ;;  %55 = vst.msk [vmem:[%s118_s1 + $0x5] sm:$0x1] %vm7_vm0, %v35_v13  }
  0x86   :  { %56 = vst.msk [vmem:[%s118_s1 + $0x6] sm:$0x1] %vm7_vm0, %v41_v14  }
  0x88   :  { %v47_v15 = vpop.permute.xlu0 %46  }
  0x89   :  { %57 = vst.msk [vmem:[%s118_s1 + $0x7] sm:$0x1] %vm7_vm0, %v47_v15  }

// kernel: speech_output_forward.2
= control target key start
LH: loop header
LB: loop body
LE: loop exit
PB: predicated region body
PF: predicated region fallthrough
CT: control target
= control target key end

     0   :  { %vm27_vm0 = vcmask 261120   ;;  %v109_v19 = vlaneseq  ;;  %vm126_vm2 = vcmask 138240   ;;  %s218_s1 = inlined_call_operand.vmem [shape: f32[32,17], index: 1, kind: input, shape index: {}]   ;;  %s219_s0 = inlined_call_operand.vmem [shape: f32[16,32], index: 0, kind: input, shape index: {}]   ;;  %s220_s2 = inlined_call_operand.vmem [shape: f32[1,17], index: 2, kind: input, shape index: {}]   ;;  %s221_s3 = inlined_call_operand.vmem [shape: f32[16,17], index: 3, kind: output, shape index: {}]  }
   0x1   :  { %v16_v0 = vld [vmem:[%s218_s1] sm:$0xff]  ;;  %v17_v1 = vld [vmem:[%s218_s1 + $0x8] sm:$0xff]  ;;  %v18_v2 = vld [vmem:[%s218_s1 + $0x10] sm:$0xff] }
   0x2   :  { %v155_v3 = vpack.c.bf16 %v17_v1, %v16_v0  ;;  %v19_v4 = vld [vmem:[%s218_s1 + $0x18] sm:$0xff]  ;;  %v14_v5 = vld [vmem:[%s219_s0] sm:$0xff]  ;;  %v15_v7 = vld [vmem:[%s219_s0 + $0x8] sm:$0xff]  ;;  %v110_v20 = vand.u32 127, %v109_v19 }
   0x3   :  { %v159_v6 = vpack.c.bf16 %v19_v4, %v18_v2  ;;  %152 = vmatprep.mubr.msk.f32.mxu0 %vm27_vm0, %v14_v5  ;;  %v133_v8 = vld [vmem:[%s220_s2] ss:$0 sm:$0xff] }
   0x4   :  { %156 = vmatprep.subr.bf16.mxu0 %v155_v3  ;;  %vm111_vm1 = vcmp.eq.s32.totalorder %v110_v20, 16 }
   0x5   :  { %158 = vmatpush3.bf16.msra.mxu0 %v155_v3 }
   0x6   :  { %160 = vmatprep.subr.bf16.mxu0 %v159_v6 }
   0x9   :  { %162 = vmatpush3.bf16.msra.mxu0 %v159_v6 }
   0xc   :  { %153 = vmatmul.mubr.msk.f32.vlgmr.msra.gmra.mrb[0].mxu0 %vm27_vm0, %v15_v7 }
  0xdf   :  { %v154_v9 = vpop.f32.mrb[0].mxu0 }
  0xe0   :  { %v106_v10 = vadd.f32 %v154_v9, %v133_v8  ;;  %v100_v11 = vpop.f32.mrb[1].mxu0 }
  0xe1   :  { %v101_v12 = vadd.f32 %v133_v8, %v100_v11 }
  0xe2   :  { %v137_v13 = vmul.f32 -1.442695, %v106_v10 }
  0xe3   :  { %v136_v14 = vmul.f32 -1.442695, %v101_v12 }
  0xe4   :  { %163 = vpow2.f32 %v137_v13 }
  0xe5   :  { %165 = vpow2.f32 %v136_v14 }
  0xee   :  { %v164_v15 = vpop.eup %163 }
  0xef   :  { %v166_v16 = vpop.eup %165  ;;  %v119_v17 = vadd.f32 1.0, %v164_v15 }
  0xf0   :  { %v118_v18 = vadd.f32 1.0, %v166_v16 }
  0xf1   :  { %167 = vrcp.f32 %v119_v17 }
  0xf2   :  { %169 = vrcp.f32 %v118_v18 }
  0xfb   :  { %v168_v21 = vpop.eup %167 }
  0xfc   :  { %v170_v22 = vpop.eup %169  ;;  %v125_v23 = vsel %vm111_vm1, %v168_v21, %v106_v10 }
  0xfd   :  { %128 = vst.msk [vmem:[%s221_s3 + $0x8] sm:$0xff] %vm126_vm2, %v125_v23  ;;  %v124_v24 = vsel %vm111_vm1, %v170_v22, %v101_v12 }
  0xfe   :  { %127 = vst.msk [vmem:[%s221_s3] sm:$0xff] %vm126_vm2, %v124_v24 }

// kernel: speech_output_forward.3
= control target key start
LH: loop header
LB: loop body
LE: loop exit
PB: predicated region body
PF: predicated region fallthrough
CT: control target
= control target key end

     0   :  { %s4355_s0 = inlined_call_operand.vmem [shape: f32[2,8,16], index: 0, kind: input, shape index: {}]   ;;  %s4356_s1 = inlined_call_operand.vmem [shape: f32[3,16,256], index: 1, kind: input, shape index: {}]   ;;  %s4357_s2 = inlined_call_operand.vmem [shape: f32[1,256], index: 2, kind: input, shape index: {}]   ;;  %s4358_s3 = inlined_call_operand.hbm [shape: f32[3,256,256], index: 3, kind: input, shape index: {}]   ;;  %s4359_s4 = inlined_call_operand.vmem [shape: f32[1,256], index: 4, kind: input, shape index: {}]   ;;  %s4360_s5 = inlined_call_operand.hbm [shape: f32[3,256,256], index: 5, kind: input, shape index: {}]   ;;  %s4361_s6 = inlined_call_operand.vmem [shape: f32[1,256], index: 6, kind: input, shape index: {}]   ;;  %s4362_s7 = inlined_call_operand.hbm [shape: f32[3,256,256], index: 7, kind: input, shape index: {}]   ;;  %s4363_s8 = inlined_call_operand.vmem [shape: f32[1,256], index: 8, kind: input, shape index: {}]   ;;  %s4364_s9 = inlined_call_operand.vmem [shape: f32[3,256,16], index: 9, kind: input, shape index: {}]   ;;  %s4365_s10 = inlined_call_operand.vmem [shape: f32[1,16], index: 10, kind: input, shape index: {}]   ;;  %s4366_s11 = inlined_call_operand.hbm [shape: f32[2,8,16], index: 11, kind: output, shape index: {}]  }
   0x1   :  { %4377 = sst [smem:[#allocation21_spill]] %s4366_s11 }
   0x2   :  { %16 = vsyncpa [#allocation6], 0 }
   0x3   :  { %17 = vsyncpa [#allocation9], 0 }
   0x4   :  { %18 = vsyncpa [#allocation7], 0 }
   0x5   :  { %20 = vsyncpa [#allocation7 + $0x1], 0  ;;  %s3763_s17 = smov 0   ;;  %s3765_s18 = smov 0  }
   0x6   :  { %s3767_s19 = smov 0   ;;  %s3769_s20 = smov 0  }
   0x7 LB: > { %4378 = sst [smem:[#allocation15_spill]] %s3682_s17  ;;  %s3784_s21 = sadd.s32 4294967295, %s3694_s20   ;;  %s3694_s20 = sphi %s3769_s20, %s4400_s20   ;;  %s3690_s19 = sphi %s3767_s19, %s4402_s19   ;;  %s3686_s18 = sphi %s3765_s18, %s4404_s18   ;;  %s3682_s17 = sphi %s3763_s17, %s4403_s17  }
   0x8   : > { %4379 = sst [smem:[#allocation16_spill]] %s3690_s19  ;;  %s2570_s22 = sadd.s32 4294967294, %s3694_s20  }
   0x9   : > { %4380 = sst [smem:[#allocation17_spill]] %s3694_s20  ;;  %s3788_s23 = sadd.s32 1, %s3694_s20  }
   0xa   : > { %4381 = sst [smem:[#allocation18_spill]] %s3788_s23  ;;  %s269_s24 = sadd.s32 1, %s3690_s19 }
   0xb   : > { %s266_s25 = ssub.s32 %s3694_s20, %s3788_s23  ;;  %p279_p0 = scmp.ne.s32.totalorder %s3690_s19, %s3686_s18 }
   0xc   : > { %p267_p1 = scmp.eq.s32.totalorder %s266_s25, 0  ;;  %p280_p2 = scmp.eq.s32.totalorder %s3784_s21, 1 }
   0xd   : > { %p285_p3 = scmp.ne.s32.totalorder %s3686_s18, %s3682_s17  ;;  %p286_p4 = scmp.eq.s32.totalorder %s2570_s22, 1 }
   0xe   : > { %s3799_s26 = scalar_select %p267_p1, %s3690_s19, %s269_s24  }
   0xf   : > { %p3801_p5 = por %p280_p2, %p279_p0  ;;  %p3805_p6 = por %p286_p4, %p285_p3 }
  0x10   : > { %4382 = sst [smem:[#allocation19_spill]] %s3799_s26  ;;  %p2571_p7 = scmp.ge.s32.totalorder %s3694_s20, 1 }
  0x11   : > { %s4383_s27 = scalar_select %p3801_p5, 1, 0 }
  0x12   : > { %s4384_s28 = scalar_select %p3805_p6, 1, 0 }
  0x13   : > { %p293_p8 = scmp.lt.s32.totalorder %s3694_s20, 3  ;;  %p4370_p9 = scmp.eq.s32.totalorder %s3784_s21, 0 }
  0x14   : > { %4385 = sst [smem:[#allocation20_spill]] %s4384_s28  ;;  %s3696_s30 = smov [#allocation8]  }
  0x15   : > { %p3812_p10 = pnand %p2571_p7, %p293_p8  ;;  %s327_s12 = sshll.u32 %s3696_s30, 4  ;;  %s3818_s12 = int_to_ptr.vmem [resolvable:$true] %s327_s12 }
  0x16   : > { %s3697_s14 = smov [#allocation5]   ;;  %s3698_s16 = smov [#allocation10]  }
  0x17   : > { %s4386_s29 = scalar_select %p3812_p10, 1, 0 }
  0x18   : > { %p3481_p11 = pneg %p3812_p10  ;;  %s311_s15 = sshll.u32 %s3697_s14, 4  ;;  %s3826_s15 = int_to_ptr.vmem [resolvable:$true] %s311_s15 }
  0x19   : > { %s3828_s22 = sshll.u32 %s3698_s16, 4  ;;  %s3540_s26 = scalar_lea.hbm %s4360_s5, 24576  ;;  %s344_s22 = int_to_ptr.vmem [resolvable:$true] %s3828_s22 }
  0x1a   : > { %p3822_p12 = pnand %p4370_p9, %p3481_p11  ;;  %p3541_p13 = scmp.ne.s32.totalorder %s4360_s5, %s3540_s26 }
  0x1b   : > { %p3547_p3 = scmp.lt.u32.totalorder %s3540_s26, %s4360_s5 }
  0x1c   : > { %p3838_p0 = pneg %p3822_p12 }
  0x1e   : > { %p3543_p1 = pnand %p3838_p0, %p3541_p13 }
  0x20   : > { %p3544_p2 = pneg %p3543_p1 }
  0x22   : > { %p3549_p4 = pnand %p3547_p3, %p3544_p2 }
  0x24   : > { %3552 = shalt.err (!%p3549_p4)
}
  0x25   : > { %s3553_s19 = scalar_lea.vmem %s3818_s12, 24576  ;;  %p3561_p9 = scmp.lt.s32.totalorder %s3818_s12, %s3818_s12 }
  0x26   : > { %p3554_p7 = scmp.ne.s32.totalorder %s3818_s12, %s3553_s19  ;;  %p3562_p6 = scmp.lt.s32.totalorder %s3553_s19, %s3553_s19 }
  0x28   : > { %p3556_p8 = pnand %p3554_p7, %p3838_p0  ;;  %p3563_p13 = por %p3562_p6, %p3561_p9 }
  0x2a   : > { %p3557_p11 = pneg %p3556_p8 }
  0x2c   : > { %p3564_p1 = pnand %p3563_p13, %p3557_p11 }
  0x2e   : > { %3567 = shalt.err (!%p3564_p1)
}
  0x2f   : > { %s3699_s24 = smov 256   ;;  %s3700_s26 = smov 16  }
  0x30   : > { %3487 = dma.hbm_to_vmem [thread:$0]  (!%p3822_p12), %s4360_s5, 24576, %s3818_s12, [#allocation9], %s3699_s24, %s3699_s24, %s3700_s26  }
  0x31   : > { %s3568_s19 = scalar_lea.hbm %s4358_s3, 24576 }
  0x32   : > { %p3569_p6 = scmp.ne.s32.totalorder %s4358_s3, %s3568_s19  ;;  %p3575_p3 = scmp.lt.u32.totalorder %s3568_s19, %s4358_s3 }
  0x34   : > { %p3571_p9 = pnand %p3569_p6, %p3838_p0 }
  0x36   : > { %p3572_p2 = pneg %p3571_p9 }
  0x38   : > { %p3577_p4 = pnand %p3575_p3, %p3572_p2 }
  0x3a   : > { %3580 = shalt.err (!%p3577_p4)
}
  0x3b   : > { %s3581_s12 = scalar_lea.vmem %s3826_s15, 24576  ;;  %p3589_p13 = scmp.lt.s32.totalorder %s3826_s15, %s3826_s15 }
  0x3c   : > { %p3582_p7 = scmp.ne.s32.totalorder %s3826_s15, %s3581_s12  ;;  %p3590_p1 = scmp.lt.s32.totalorder %s3581_s12, %s3581_s12 }
  0x3e   : > { %p3584_p8 = pnand %p3582_p7, %p3838_p0  ;;  %p3591_p6 = por %p3590_p1, %p3589_p13 }
  0x40   : > { %p3585_p11 = pneg %p3584_p8 }
  0x42   : > { %p3592_p9 = pnand %p3591_p6, %p3585_p11 }
  0x44   : > { %3595 = shalt.err (!%p3592_p9)
}
  0x45   : > { %3484 = dma.hbm_to_vmem [thread:$0]  (!%p3822_p12), %s4358_s3, 24576, %s3826_s15, [#allocation6], %s3699_s24, %s3699_s24, %s3700_s26  }
  0x46   : > { %s3596_s25 = scalar_lea.hbm %s4362_s7, 24576 }
  0x47   : > { %p3597_p2 = scmp.ne.s32.totalorder %s4362_s7, %s3596_s25  ;;  %p3603_p7 = scmp.lt.u32.totalorder %s3596_s25, %s4362_s7 }
  0x49   : > { %p3599_p3 = pnand %p3597_p2, %p3838_p0 }
  0x4b   : > { %p3600_p4 = pneg %p3599_p3 }
  0x4d   : > { %p3605_p8 = pnand %p3603_p7, %p3600_p4 }
  0x4f   : > { %3608 = shalt.err (!%p3605_p8)
}
  0x50   : > { %s3609_s12 = scalar_lea.vmem %s344_s22, 24576  ;;  %p3617_p6 = scmp.lt.s32.totalorder %s344_s22, %s344_s22 }
  0x51   : > { %p3610_p11 = scmp.ne.s32.totalorder %s344_s22, %s3609_s12  ;;  %p3618_p9 = scmp.lt.s32.totalorder %s3609_s12, %s3609_s12 }
  0x53   : > { %p3612_p13 = pnand %p3610_p11, %p3838_p0  ;;  %p3619_p5 = por %p3618_p9, %p3617_p6 }
  0x55   : > { %p3613_p1 = pneg %p3612_p13 }
  0x57   : > { %p3620_p10 = pnand %p3619_p5, %p3613_p1 }
  0x59   : > { %3623 = shalt.err (!%p3620_p10)
}
  0x5a   : > { %3490 = dma.hbm_to_vmem [thread:$0]  (!%p3822_p12), %s4362_s7, 24576, %s344_s22, [#allocation9], %s3699_s24, %s3699_s24, %s3700_s26  }
  0x5b   : > { %p4389_p2 = scmp.ne.s32.totalorder %s4386_s29, 0 }
  0x5c   : > { %p4390_p0 = scmp.eq.s32.totalorder (!%p4389_p2), %s3784_s21, 0 }
  0x5d   : > { %375 = sbr.rel (%p4389_p2) target bundleno = 1633 (0x661), region = 64 }
  0x64   : > { %3669 = dma.done.wait (%p4390_p0), [#allocation6], 24576   ;;  %p4391_p3 = pmov %p4390_p0 }
  0x65   : > { %p4392_p5 = pmov %p4390_p0 }
  0x66   : > { %3671 = vsyncadd (%p4391_p3), [#allocation6], 4294942720 }
  0x67   : > { %3673 = dma.done.wait (%p4392_p5), [#allocation9], 49152   ;;  %p4393_p10 = pmov %p4390_p0 }
  0x68   : > { %p422_p4 = scmp.lt.s32.totalorder %s3784_s21, 1  ;;  %vm426_vm0 = vcmask 122880   ;;  %v432_v0 = vlaneseq  ;;  %v3701_v1 = vmov 0.0   ;;  %v2583_v2 = vld [vmem:[%s4356_s1 + $0x28] sm:$0xff]  ;;  %v2585_v3 = vld [vmem:[%s4356_s1 + $0x38] sm:$0xff]  ;;  %v2582_v4 = vld [vmem:[%s4356_s1 + $0x20] sm:$0xff] }
  0x69   : > { %3675 = vsyncadd (%p4393_p10), [#allocation9], 4294918144  ;;  %519 = vmatprep.mubr.f32.mxu0 %v3701_v1  ;;  %427 = vst.msk [vmem:[#allocation2] sm:$0x1] %vm426_vm0, %v3701_v1  ;;  %vm430_vm2 = vcmask 130048   ;;  %v2767_v5 = vpack.c.bf16 %v2585_v3, %v2583_v2  ;;  %v2584_v6 = vld [vmem:[%s4356_s1 + $0x30] sm:$0xff] }
  0x6a   : > { %428 = vst.msk [vmem:[#allocation2 + $0x9] sm:$0x1] %vm426_vm0, %v3701_v1  ;;  %s423_s23 = scalar_select %p422_p4, %s3784_s21, 1  ;;  %vm434_vm1 = vcmp.lt.s32.totalorder %v432_v0, 256  ;;  %v443_v7 = vld [vmem:[%s4356_s1 + $0x8] sm:$0xff]  ;;  %v445_v8 = vld [vmem:[%s4356_s1 + $0x18] sm:$0xff]  ;;  %v2769_v9 = vpack.c.bf16 %v2584_v6, %v2582_v4 }
  0x6b   : > { %436 = vst.msk [vmem:[#allocation3] ss:$8 sm:$0x3] %vm434_vm1, %v3701_v1  ;;  %439 = vst.msk [vmem:[#allocation3 + $0x11] ss:$8 sm:$0x3] %vm434_vm1, %v3701_v1  ;;  %v2771_v10 = vpack.c.bf16 %v445_v8, %v443_v7  ;;  %2768 = vmatprep.subr.bf16.mxu0 %v2767_v5 }
  0x6c   : > { %706 = vst.msk [vmem:[#allocation4] ss:$8 sm:$0x3] %vm434_vm1, %v3701_v1  ;;  %709 = vst.msk [vmem:[#allocation4 + $0x11] ss:$8 sm:$0x3] %vm434_vm1, %v3701_v1  ;;  %2770 = vmatpush1.bf16.msra.mxu0 %v2769_v9 }
  0x6d   : > { %s2581_s29 = sshll.u32 %s423_s23, 3  ;;  %v442_v12 = vld [vmem:[%s4356_s1] sm:$0xff]  ;;  %v444_v13 = vld [vmem:[%s4356_s1 + $0x10] sm:$0xff]  ;;  %v714_v14 = vld [vmem:[#allocation5 + $0x8] sm:$0xff]  ;;  %2772 = vmatprep.subr.bf16.mxu0 %v2771_v10  ;;  %vm850_vm3 = vcmask 1046528   ;;  %vm1074_vm4 = vcmask 1045504  }
  0x6e   : > { %s425_s24 = scalar_lea.vmem %s4355_s0, %s2581_s29  ;;  %v716_v15 = vld [vmem:[#allocation5 + $0x18] sm:$0xff]  ;;  %v713_v18 = vld [vmem:[#allocation5] sm:$0xff]  ;;  %v715_v19 = vld [vmem:[#allocation5 + $0x10] sm:$0xff]  ;;  %v2773_v26 = vpack.c.bf16 %v444_v13, %v442_v12  ;;  %s419_s28 = sand.u32 1, %s3686_s18  }
  0x6f   : > { %v429_v11 = vld [vmem:[%s425_s24] sm:$0xff]  ;;  %v2589_v16 = vld [vmem:[%s4356_s1 + $0x48] sm:$0xff]  ;;  %v2843_v17 = vpack.c.bf16 %v716_v15, %v714_v14  ;;  %v2591_v20 = vld [vmem:[%s4356_s1 + $0x58] sm:$0xff]  ;;  %v2845_v21 = vpack.c.bf16 %v715_v19, %v713_v18  ;;  %s2580_s25 = sshll.u32 %s419_s28, 3  ;;  %s2659_s16 = sshll.u32 %s3784_s21, 7 }
  0x70   : > { %431 = vst.msk [vmem:[#allocation2 + $0x1] sm:$0xff] %vm430_vm2, %v429_v11  ;;  %v718_v22 = vld [vmem:[#allocation5 + $0x28] sm:$0xff]  ;;  %v720_v23 = vld [vmem:[#allocation5 + $0x38] sm:$0xff]  ;;  %v717_v25 = vld [vmem:[#allocation5 + $0x20] sm:$0xff]  ;;  %v2775_v28 = vpack.c.bf16 %v2591_v20, %v2589_v16  ;;  %s421_s19 = scalar_lea.vmem [#allocation11], %s2580_s25  ;;  %s4394_s23 = sld [smem:[#allocation21_spill]] }
  0x71   : > { %2844 = vmatprep.subr.bf16.mxu1 %v2843_v17  ;;  %v2847_v24 = vpack.c.bf16 %v720_v23, %v718_v22  ;;  %v719_v27 = vld [vmem:[#allocation5 + $0x30] sm:$0xff]  ;;  %v722_v30 = vld [vmem:[#allocation5 + $0x48] sm:$0xff]  ;;  %v724_v31 = vld [vmem:[#allocation5 + $0x58] sm:$0xff]  ;;  %s2480_s12 = sshll.u32 %s421_s19, 4  ;;  %s2467_s13 = scalar_lea.sflag [#allocation7], %s419_s28  ;;  %s4314_s12 = int_to_ptr.vmem [resolvable:$true] %s2480_s12 }
  0x72   : > { %2846 = vmatpush1.bf16.msra.mxu1 %v2845_v21  ;;  %v2849_v29 = vpack.c.bf16 %v719_v27, %v717_v25  ;;  %v2851_v33 = vpack.c.bf16 %v724_v31, %v722_v30  ;;  %v721_v34 = vld [vmem:[#allocation5 + $0x40] sm:$0xff]  ;;  %v723_v35 = vld [vmem:[#allocation5 + $0x50] sm:$0xff]  ;;  %v726_v37 = vld [vmem:[#allocation5 + $0x68] sm:$0xff]  ;;  %s3624_s22 = scalar_lea.vmem %s4314_s12, 128  ;;  %p4395_p7 = scmp.ne.s32.totalorder %s4383_s27, 0 }
  0x73   : > { %2848 = vmatprep.subr.bf16.mxu1 %v2847_v24  ;;  %v2588_v36 = vld [vmem:[%s4356_s1 + $0x40] sm:$0xff]  ;;  %v2590_v38 = vld [vmem:[%s4356_s1 + $0x50] sm:$0xff]  ;;  %v783_v39 = vld [vmem:[#allocation5 + $0x208] sm:$0xff]  ;;  %v2853_v40 = vpack.c.bf16 %v723_v35, %v721_v34  ;;  %p3625_p12 = scmp.ne.s32.totalorder %s4314_s12, %s3624_s22  ;;  %s3702_s21 = smov [#allocation11]  }
  0x74   : > { %v728_v41 = vld [vmem:[#allocation5 + $0x78] sm:$0xff]  ;;  %v725_v44 = vld [vmem:[#allocation5 + $0x60] sm:$0xff]  ;;  %v727_v45 = vld [vmem:[#allocation5 + $0x70] sm:$0xff]  ;;  %v2777_v49 = vpack.c.bf16 %v2590_v38, %v2588_v36  ;;  %s3628_s26 = sshll.u32 %s3702_s21, 4  ;;  %s3629_s26 = int_to_ptr.vmem [resolvable:$false] %s3628_s26 }
  0x75   : > { %v785_v42 = vld [vmem:[#allocation5 + $0x218] sm:$0xff]  ;;  %v2855_v43 = vpack.c.bf16 %v728_v41, %v726_v37  ;;  %v730_v46 = vld [vmem:[#allocation5 + $0x88] sm:$0xff]  ;;  %v2857_v51 = vpack.c.bf16 %v727_v45, %v725_v44  ;;  %v729_v53 = vld [vmem:[#allocation5 + $0x80] sm:$0xff]  ;;  %p3626_p8 = pnand %p3625_p12, %p4395_p7  ;;  %s3630_s17 = scalar_lea.vmem %s3629_s26, 256 }
  0x76   : > { %2850 = vmatpush1.bf16.msra.mxu1 %v2849_v29  ;;  %v732_v47 = vld [vmem:[#allocation5 + $0x98] sm:$0xff]  ;;  %v2779_v50 = vpack.c.bf16 %v785_v42, %v783_v39  ;;  %v731_v54 = vld [vmem:[#allocation5 + $0x90] sm:$0xff]  ;;  %v734_v55 = vld [vmem:[#allocation5 + $0xa8] sm:$0xff]  ;;  %s4312_s29 = scalar_lea.hbm %s4394_s23, %s2659_s16  ;;  %p3631_p13 = scmp.lt.s32.totalorder %s4314_s12, %s3629_s26 }
  0x77   : > { %v446_v32 = vld [vmem:[#allocation2 + $0x1] sm:$0xff]  ;;  %2852 = vmatprep.subr.bf16.mxu1 %v2851_v33  ;;  %v2859_v52 = vpack.c.bf16 %v732_v47, %v730_v46  ;;  %v782_v57 = vld [vmem:[#allocation5 + $0x200] sm:$0xff]  ;;  %v787_v59 = vld [vmem:[#allocation5 + $0x228] sm:$0xff]  ;;  %v2861_v60 = vpack.c.bf16 %v731_v54, %v729_v53  ;;  %p3627_p11 = pneg %p3626_p8  ;;  %p3632_p1 = scmp.lt.s32.totalorder %s3630_s17, %s3624_s22 }
  0x78   : > { %2586 = vmatmul.mubr.msk.f32.vlgmr.msra.gmra.mrb[0].mxu0 %vm430_vm2, %v446_v32  ;;  %v441_v48 = vld [vmem:[#allocation2] sm:$0xff]  ;;  %v736_v56 = vld [vmem:[#allocation5 + $0xb8] sm:$0xff]  ;;  %v733_v63 = vld [vmem:[#allocation5 + $0xa0] sm:$0xff] }
  0x79   : > { %2774 = vmatpush1.bf16.msra.mxu0 %v2773_v26  ;;  %593 = vmatprep.mubr.f32.mxu0 %v3701_v1  ;;  %v784_v58 = vld [vmem:[#allocation5 + $0x210] sm:$0xff]  ;;  %v789_v61 = vld [vmem:[#allocation5 + $0x238] sm:$0xff]  ;;  %v2863_v62 = vpack.c.bf16 %v736_v56, %v734_v55  ;;  %v738_v3 = vld [vmem:[#allocation5 + $0xc8] sm:$0xff]  ;;  %p3633_p6 = por %p3632_p1, %p3631_p13 }
  0x7a   : > { %2776 = vmatprep.subr.bf16.mxu0 %v2775_v28  ;;  %2854 = vmatpush1.bf16.msra.mxu1 %v2853_v40  ;;  %v735_v2 = vld [vmem:[#allocation5 + $0xb0] sm:$0xff]  ;;  %v740_v4 = vld [vmem:[#allocation5 + $0xd8] sm:$0xff]  ;;  %v2781_v6 = vpack.c.bf16 %v784_v58, %v782_v57  ;;  %v2783_v7 = vpack.c.bf16 %v789_v61, %v787_v59  ;;  %v786_v8 = vld [vmem:[#allocation5 + $0x220] sm:$0xff] }
  0x7b   : > { %2856 = vmatprep.subr.bf16.mxu1 %v2855_v43  ;;  %v600_v5 = vld [vmem:[#allocation2 + $0x2] sm:$0xff]  ;;  %v791_v10 = vld [vmem:[#allocation5 + $0x248] sm:$0xff]  ;;  %v2867_v12 = vpack.c.bf16 %v740_v4, %v738_v3  ;;  %v737_v13 = vld [vmem:[#allocation5 + $0xc0] sm:$0xff]  ;;  %p3634_p9 = pnand %p3633_p6, %p3627_p11 }
  0x7c   : > { %v788_v9 = vld [vmem:[#allocation5 + $0x230] sm:$0xff]  ;;  %v793_v11 = vld [vmem:[#allocation5 + $0x258] sm:$0xff]  ;;  %v742_v15 = vld [vmem:[#allocation5 + $0xe8] sm:$0xff] }
  0x7d   : > { %v739_v14 = vld [vmem:[#allocation5 + $0xd0] sm:$0xff]  ;;  %v744_v16 = vld [vmem:[#allocation5 + $0xf8] sm:$0xff]  ;;  %v2785_v17 = vpack.c.bf16 %v788_v9, %v786_v8  ;;  %v2787_v18 = vpack.c.bf16 %v793_v11, %v791_v10  ;;  %v790_v19 = vld [vmem:[#allocation5 + $0x240] sm:$0xff] }
  0x7e   : > { %2858 = vmatpush1.bf16.msra.mxu1 %v2857_v51  ;;  %v792_v20 = vld [vmem:[#allocation5 + $0x250] sm:$0xff]  ;;  %v795_v21 = vld [vmem:[#allocation5 + $0x268] sm:$0xff]  ;;  %v2869_v22 = vpack.c.bf16 %v739_v14, %v737_v13  ;;  %v797_v23 = vld [vmem:[#allocation5 + $0x278] sm:$0xff]  ;;  %v2871_v24 = vpack.c.bf16 %v744_v16, %v742_v15 }
  0x7f   : > { %2860 = vmatprep.subr.bf16.mxu1 %v2859_v52  ;;  %v741_v25 = vld [vmem:[#allocation5 + $0xe0] sm:$0xff]  ;;  %v743_v26 = vld [vmem:[#allocation5 + $0xf0] sm:$0xff]  ;;  %v746_v27 = vld [vmem:[#allocation5 + $0x108] sm:$0xff]  ;;  %v2789_v29 = vpack.c.bf16 %v792_v20, %v790_v19  ;;  %v2791_v30 = vpack.c.bf16 %v797_v23, %v795_v21 }
  0x80   : > { %2587 = vmatmul.mubr.msk.f32.vlgmr.msra.gmra.mrb[0].mxu0 %vm430_vm2, %v441_v48  ;;  %v748_v28 = vld [vmem:[#allocation5 + $0x118] sm:$0xff]  ;;  %v794_v31 = vld [vmem:[#allocation5 + $0x260] sm:$0xff]  ;;  %v796_v32 = vld [vmem:[#allocation5 + $0x270] sm:$0xff]  ;;  %v2873_v34 = vpack.c.bf16 %v743_v26, %v741_v25 }
  0x81   : > { %2778 = vmatpush1.bf16.msra.mxu0 %v2777_v49  ;;  %673 = vmatprep.mubr.f32.mxu0 %v3701_v1  ;;  %v2865_v1 = vpack.c.bf16 %v735_v2, %v733_v63  ;;  %v799_v33 = vld [vmem:[#allocation5 + $0x288] sm:$0xff]  ;;  %v801_v35 = vld [vmem:[#allocation5 + $0x298] sm:$0xff]  ;;  %v2875_v36 = vpack.c.bf16 %v748_v28, %v746_v27  ;;  %v745_v37 = vld [vmem:[#allocation5 + $0x100] sm:$0xff]  ;;  %v2793_v41 = vpack.c.bf16 %v796_v32, %v794_v31 }
  0x82   : > { %2780 = vmatprep.subr.bf16.mxu0 %v2779_v50  ;;  %2862 = vmatpush1.bf16.msra.mxu1 %v2861_v60  ;;  %v747_v38 = vld [vmem:[#allocation5 + $0x110] sm:$0xff]  ;;  %v750_v39 = vld [vmem:[#allocation5 + $0x128] sm:$0xff]  ;;  %v752_v40 = vld [vmem:[#allocation5 + $0x138] sm:$0xff]  ;;  %v2795_v42 = vpack.c.bf16 %v801_v35, %v799_v33 }
  0x83   : > { %2864 = vmatprep.subr.bf16.mxu1 %v2863_v62  ;;  %v798_v43 = vld [vmem:[#allocation5 + $0x280] sm:$0xff]  ;;  %v800_v44 = vld [vmem:[#allocation5 + $0x290] sm:$0xff]  ;;  %v803_v45 = vld [vmem:[#allocation5 + $0x2a8] sm:$0xff]  ;;  %v2877_v46 = vpack.c.bf16 %v747_v38, %v745_v37  ;;  %v2879_v48 = vpack.c.bf16 %v752_v40, %v750_v39 }
  0x84   : > { %v805_v47 = vld [vmem:[#allocation5 + $0x2b8] sm:$0xff]  ;;  %v749_v49 = vld [vmem:[#allocation5 + $0x120] sm:$0xff]  ;;  %v751_v50 = vld [vmem:[#allocation5 + $0x130] sm:$0xff]  ;;  %v2797_v53 = vpack.c.bf16 %v800_v44, %v798_v43 }
  0x85   : > { %v754_v51 = vld [vmem:[#allocation5 + $0x148] sm:$0xff]  ;;  %v756_v52 = vld [vmem:[#allocation5 + $0x158] sm:$0xff]  ;;  %v2799_v54 = vpack.c.bf16 %v805_v47, %v803_v45  ;;  %v802_v55 = vld [vmem:[#allocation5 + $0x2a0] sm:$0xff]  ;;  %v2881_v58 = vpack.c.bf16 %v751_v50, %v749_v49 }
  0x86   : > { %2866 = vmatpush1.bf16.msra.mxu1 %v2865_v1  ;;  %v804_v56 = vld [vmem:[#allocation5 + $0x2b0] sm:$0xff]  ;;  %v807_v57 = vld [vmem:[#allocation5 + $0x2c8] sm:$0xff]  ;;  %v809_v59 = vld [vmem:[#allocation5 + $0x2d8] sm:$0xff]  ;;  %v2883_v60 = vpack.c.bf16 %v756_v52, %v754_v51 }
  0x87   : > { %2868 = vmatprep.subr.bf16.mxu1 %v2867_v12  ;;  %v753_v61 = vld [vmem:[#allocation5 + $0x140] sm:$0xff]  ;;  %v755_v62 = vld [vmem:[#allocation5 + $0x150] sm:$0xff]  ;;  %v758_v63 = vld [vmem:[#allocation5 + $0x168] sm:$0xff]  ;;  %v2801_v3 = vpack.c.bf16 %v804_v56, %v802_v55  ;;  %v2803_v4 = vpack.c.bf16 %v809_v59, %v807_v57 }
  0x88   : > { %2592 = vmatmul.mubr.msk.f32.vlgmr.msra.gmra.mrb[0].mxu0 %vm430_vm2, %v600_v5  ;;  %v760_v2 = vld [vmem:[#allocation5 + $0x178] sm:$0xff]  ;;  %v806_v5 = vld [vmem:[#allocation5 + $0x2c0] sm:$0xff]  ;;  %v2885_v8 = vpack.c.bf16 %v755_v62, %v753_v61  ;;  %v759_v11 = vld [vmem:[#allocation5 + $0x170] sm:$0xff] }
  0x89   : > { %2782 = vmatpush1.bf16.msra.mxu0 %v2781_v6  ;;  %v808_v6 = vld [vmem:[#allocation5 + $0x2d0] sm:$0xff]  ;;  %v813_v9 = vld [vmem:[#allocation5 + $0x2f8] sm:$0xff]  ;;  %v2887_v10 = vpack.c.bf16 %v760_v2, %v758_v63  ;;  %v757_v1 = vld [vmem:[#allocation5 + $0x160] sm:$0xff] }
  0x8a   : > { %2784 = vmatprep.subr.bf16.mxu0 %v2783_v7  ;;  %2870 = vmatpush1.bf16.msra.mxu1 %v2869_v22  ;;  %v811_v7 = vld [vmem:[#allocation5 + $0x2e8] sm:$0xff]  ;;  %v764_v13 = vld [vmem:[#allocation5 + $0x198] sm:$0xff]  ;;  %v2805_v14 = vpack.c.bf16 %v808_v6, %v806_v5  ;;  %v810_v16 = vld [vmem:[#allocation5 + $0x2e0] sm:$0xff]  ;;  %v2889_v19 = vpack.c.bf16 %v759_v11, %v757_v1 }
  0x8b   : > { %2872 = vmatprep.subr.bf16.mxu1 %v2871_v24  ;;  %v762_v12 = vld [vmem:[#allocation5 + $0x188] sm:$0xff]  ;;  %v2807_v15 = vpack.c.bf16 %v813_v9, %v811_v7  ;;  %v817_v20 = vld [vmem:[#allocation5 + $0x318] sm:$0xff]  ;;  %v761_v22 = vld [vmem:[#allocation5 + $0x180] sm:$0xff] }
  0x8c   : > { %v2891_v21 = vpack.c.bf16 %v764_v13, %v762_v12  ;;  %v763_v23 = vld [vmem:[#allocation5 + $0x190] sm:$0xff]  ;;  %v814_v26 = vld [vmem:[#allocation5 + $0x300] sm:$0xff]  ;;  %v823_v35 = vld [vmem:[#allocation5 + $0x348] sm:$0xff] }
  0x8d   : > { %2786 = vmatpush1.bf16.msra.mxu0 %v2785_v17  ;;  %v812_v17 = vld [vmem:[#allocation5 + $0x2f0] sm:$0xff]  ;;  %v2893_v28 = vpack.c.bf16 %v763_v23, %v761_v22  ;;  %v818_v33 = vld [vmem:[#allocation5 + $0x320] sm:$0xff]  ;;  %v833_v49 = vld [vmem:[#allocation5 + $0x398] sm:$0xff] }
  0x8e   : > { %2788 = vmatprep.subr.bf16.mxu0 %v2787_v18  ;;  %2874 = vmatpush1.bf16.msra.mxu1 %v2873_v34  ;;  %v815_v18 = vld [vmem:[#allocation5 + $0x308] sm:$0xff]  ;;  %v2809_v24 = vpack.c.bf16 %v812_v17, %v810_v16  ;;  %v816_v27 = vld [vmem:[#allocation5 + $0x310] sm:$0xff]  ;;  %v822_v39 = vld [vmem:[#allocation5 + $0x340] sm:$0xff] }
  0x8f   : > { %2876 = vmatprep.subr.bf16.mxu1 %v2875_v36  ;;  %v2811_v25 = vpack.c.bf16 %v817_v20, %v815_v18  ;;  %v2813_v31 = vpack.c.bf16 %v816_v27, %v814_v26  ;;  %v820_v34 = vld [vmem:[#allocation5 + $0x330] sm:$0xff]  ;;  %v825_v36 = vld [vmem:[#allocation5 + $0x358] sm:$0xff]  ;;  %v826_v45 = vld [vmem:[#allocation5 + $0x360] sm:$0xff] }
  0x90   : > { %v2817_v37 = vpack.c.bf16 %v820_v34, %v818_v33  ;;  %v2819_v38 = vpack.c.bf16 %v825_v36, %v823_v35  ;;  %v824_v40 = vld [vmem:[#allocation5 + $0x350] sm:$0xff]  ;;  %v766_v50 = vld [vmem:[#allocation5 + $0x1a8] sm:$0xff]  ;;  %v768_v52 = vld [vmem:[#allocation5 + $0x1b8] sm:$0xff] }
  0x91   : > { %2790 = vmatpush1.bf16.msra.mxu0 %v2789_v29  ;;  %v819_v29 = vld [vmem:[#allocation5 + $0x328] sm:$0xff]  ;;  %v2821_v43 = vpack.c.bf16 %v824_v40, %v822_v39  ;;  %v2895_v55 = vpack.c.bf16 %v768_v52, %v766_v50  ;;  %v765_v57 = vld [vmem:[#allocation5 + $0x1a0] sm:$0xff]  ;;  %v837_v61 = vld [vmem:[#allocation5 + $0x3b8] sm:$0xff] }
  0x92   : > { %2792 = vmatprep.subr.bf16.mxu0 %v2791_v30  ;;  %2878 = vmatpush1.bf16.msra.mxu1 %v2877_v46  ;;  %v821_v30 = vld [vmem:[#allocation5 + $0x338] sm:$0xff]  ;;  %v828_v46 = vld [vmem:[#allocation5 + $0x370] sm:$0xff]  ;;  %v770_v62 = vld [vmem:[#allocation5 + $0x1c8] sm:$0xff] }
  0x93   : > { %2880 = vmatprep.subr.bf16.mxu1 %v2879_v48  ;;  %v2815_v32 = vpack.c.bf16 %v821_v30, %v819_v29  ;;  %v2825_v47 = vpack.c.bf16 %v828_v46, %v826_v45  ;;  %v831_v48 = vld [vmem:[#allocation5 + $0x388] sm:$0xff]  ;;  %v772_v2 = vld [vmem:[#allocation5 + $0x1d8] sm:$0xff]  ;;  %v769_v7 = vld [vmem:[#allocation5 + $0x1c0] sm:$0xff]  ;;  %v685_v30 = vshrl.u32 %v432_v0, 7 }
  0x94   : > { %v2827_v51 = vpack.c.bf16 %v833_v49, %v831_v48  ;;  %v2899_v5 = vpack.c.bf16 %v772_v2, %v770_v62  ;;  %v841_v1 = vld [vmem:[#allocation5 + $0x3d8] sm:$0xff]  ;;  %v774_v11 = vld [vmem:[#allocation5 + $0x1e8] sm:$0xff]  ;;  %v773_v18 = vld [vmem:[#allocation5 + $0x1e0] sm:$0xff] }
  0x95   : > { %2794 = vmatpush1.bf16.msra.mxu0 %v2793_v41  ;;  %v827_v41 = vld [vmem:[#allocation5 + $0x368] sm:$0xff]  ;;  %v776_v13 = vld [vmem:[#allocation5 + $0x1f8] sm:$0xff]  ;;  %v842_v27 = vld [vmem:[#allocation5 + $0x3e0] sm:$0xff]  ;;  %v3981_v33 = vsub.s32 1, %v685_v30 }
  0x96   : > { %2796 = vmatprep.subr.bf16.mxu0 %v2795_v42  ;;  %2882 = vmatpush1.bf16.msra.mxu1 %v2881_v58  ;;  %v829_v42 = vld [vmem:[#allocation5 + $0x378] sm:$0xff]  ;;  %v767_v58 = vld [vmem:[#allocation5 + $0x1b0] sm:$0xff]  ;;  %v2903_v16 = vpack.c.bf16 %v776_v13, %v774_v11  ;;  %v843_v20 = vld [vmem:[#allocation5 + $0x3e8] sm:$0xff] }
  0x97   : > { %2884 = vmatprep.subr.bf16.mxu1 %v2883_v60  ;;  %v2823_v44 = vpack.c.bf16 %v829_v42, %v827_v41  ;;  %v2897_v59 = vpack.c.bf16 %v767_v58, %v765_v57  ;;  %v835_v60 = vld [vmem:[#allocation5 + $0x3a8] sm:$0xff]  ;;  %v845_v22 = vld [vmem:[#allocation5 + $0x3f8] sm:$0xff]  ;;  %v1006_v0 = vld [vmem:[#allocation5 + $0x400] sm:$0xff] }
  0x98   : > { %v2831_v63 = vpack.c.bf16 %v837_v61, %v835_v60  ;;  %v2839_v23 = vpack.c.bf16 %v845_v22, %v843_v20  ;;  %v1008_v42 = vld [vmem:[#allocation5 + $0x410] sm:$0xff]  ;;  %v1010_v45 = vld [vmem:[#allocation5 + $0x420] sm:$0xff]  ;;  %v1017_v52 = vld [vmem:[#allocation5 + $0x458] sm:$0xff] }
  0x99   : > { %2798 = vmatpush1.bf16.msra.mxu0 %v2797_v53  ;;  %v830_v53 = vld [vmem:[#allocation5 + $0x380] sm:$0xff]  ;;  %v1012_v46 = vld [vmem:[#allocation5 + $0x430] sm:$0xff]  ;;  %v2909_v48 = vpack.c.bf16 %v1008_v42, %v1006_v0  ;;  %v1029_v22 = vld [vmem:[#allocation5 + $0x4b8] sm:$0xff] }
  0x9a   : > { %2800 = vmatprep.subr.bf16.mxu0 %v2799_v54  ;;  %2886 = vmatpush1.bf16.msra.mxu1 %v2885_v8  ;;  %v832_v54 = vld [vmem:[#allocation5 + $0x390] sm:$0xff]  ;;  %v1018_v13 = vld [vmem:[#allocation5 + $0x460] sm:$0xff]  ;;  %v1041_v0 = vld [vmem:[#allocation5 + $0x518] sm:$0xff] }
  0x9b   : > { %2888 = vmatprep.subr.bf16.mxu1 %v2887_v10  ;;  %v2829_v56 = vpack.c.bf16 %v832_v54, %v830_v53  ;;  %v771_v8 = vld [vmem:[#allocation5 + $0x1d0] sm:$0xff]  ;;  %v839_v10 = vld [vmem:[#allocation5 + $0x3c8] sm:$0xff] }
  0x9c   : > { %v2901_v9 = vpack.c.bf16 %v771_v8, %v769_v7  ;;  %v2835_v12 = vpack.c.bf16 %v841_v1, %v839_v10  ;;  %v1014_v8 = vld [vmem:[#allocation5 + $0x440] sm:$0xff]  ;;  %v1019_v10 = vld [vmem:[#allocation5 + $0x468] sm:$0xff]  ;;  %v1021_v1 = vld [vmem:[#allocation5 + $0x478] sm:$0xff] }
  0x9d   : > { %2802 = vmatpush1.bf16.msra.mxu0 %v2801_v3  ;;  %v834_v3 = vld [vmem:[#allocation5 + $0x3a0] sm:$0xff]  ;;  %v1024_v20 = vld [vmem:[#allocation5 + $0x490] sm:$0xff] }
  0x9e   : > { %2804 = vmatprep.subr.bf16.mxu0 %v2803_v4  ;;  %2890 = vmatpush1.bf16.msra.mxu1 %v2889_v19  ;;  %v836_v4 = vld [vmem:[#allocation5 + $0x3b0] sm:$0xff] }
  0x9f   : > { %2892 = vmatprep.subr.bf16.mxu1 %v2891_v21  ;;  %v2833_v6 = vpack.c.bf16 %v836_v4, %v834_v3  ;;  %v775_v19 = vld [vmem:[#allocation5 + $0x1f0] sm:$0xff]  ;;  %v2913_v4 = vpack.c.bf16 %v1012_v46, %v1010_v45  ;;  %v1043_v46 = vld [vmem:[#allocation5 + $0x528] sm:$0xff] }
  0xa0   : > { %v2905_v21 = vpack.c.bf16 %v775_v19, %v773_v18  ;;  %v1022_v19 = vld [vmem:[#allocation5 + $0x480] sm:$0xff]  ;;  %v1040_v45 = vld [vmem:[#allocation5 + $0x510] sm:$0xff] }
  0xa1   : > { %2806 = vmatpush1.bf16.msra.mxu0 %v2805_v14  ;;  %v838_v14 = vld [vmem:[#allocation5 + $0x3c0] sm:$0xff] }
  0xa2   : > { %2808 = vmatprep.subr.bf16.mxu0 %v2807_v15  ;;  %2894 = vmatpush1.bf16.msra.mxu1 %v2893_v28  ;;  %v840_v15 = vld [vmem:[#allocation5 + $0x3d0] sm:$0xff] }
  0xa3   : > { %2896 = vmatprep.subr.bf16.mxu1 %v2895_v55  ;;  %v2837_v17 = vpack.c.bf16 %v840_v15, %v838_v14  ;;  %v844_v28 = vld [vmem:[#allocation5 + $0x3f0] sm:$0xff]  ;;  %v1023_v15 = vld [vmem:[#allocation5 + $0x488] sm:$0xff] }
  0xa4   : > { %v2841_v29 = vpack.c.bf16 %v844_v28, %v842_v27  ;;  %v1020_v14 = vld [vmem:[#allocation5 + $0x470] sm:$0xff]  ;;  %v1031_v27 = vld [vmem:[#allocation5 + $0x4c8] sm:$0xff]  ;;  %v1033_v28 = vld [vmem:[#allocation5 + $0x4d8] sm:$0xff] }
  0xa5   : > { %2810 = vmatpush1.bf16.msra.mxu0 %v2809_v24  ;;  %v1007_v24 = vld [vmem:[#allocation5 + $0x408] sm:$0xff] }
  0xa6   : > { %2812 = vmatprep.subr.bf16.mxu0 %v2811_v25  ;;  %2898 = vmatpush1.bf16.msra.mxu1 %v2897_v59  ;;  %v1009_v25 = vld [vmem:[#allocation5 + $0x418] sm:$0xff] }
  0xa7   : > { %2900 = vmatprep.subr.bf16.mxu1 %v2899_v5  ;;  %v2907_v26 = vpack.c.bf16 %v1009_v25, %v1007_v24  ;;  %v1026_v25 = vld [vmem:[#allocation5 + $0x4a0] sm:$0xff] }
  0xa9   : > { %2814 = vmatpush1.bf16.msra.mxu0 %v2813_v31  ;;  %v3976_v31 = vsub.s32 0, %v685_v30  ;;  %v2931_v30 = vpack.c.bf16 %v1033_v28, %v1031_v27 }
  0xaa   : > { %2816 = vmatprep.subr.bf16.mxu0 %v2815_v32  ;;  %2902 = vmatpush1.bf16.msra.mxu1 %v2901_v9  ;;  %v682_v32 = vld [vmem:[%s4357_s2] sm:$0x3] }
  0xab   : > { %2904 = vmatprep.subr.bf16.mxu1 %v2903_v16  ;;  %v687_v34 = vrot.slane %v682_v32, %v3976_v31  ;;  %v691_v35 = vrot.slane %v682_v32, %v3981_v33  ;;  %v1016_v9 = vld [vmem:[#allocation5 + $0x450] sm:$0xff]  ;;  %v1025_v16 = vld [vmem:[#allocation5 + $0x498] sm:$0xff]  ;;  %v1030_v32 = vld [vmem:[#allocation5 + $0x4c0] sm:$0xff] }
  0xac   : > { %v2917_v11 = vpack.c.bf16 %v1016_v9, %v1014_v8  ;;  %v2923_v18 = vpack.c.bf16 %v1025_v16, %v1023_v15  ;;  %v1059_v8 = vld [vmem:[#allocation5 + $0x5a8] sm:$0xff]  ;;  %v1061_v9 = vld [vmem:[#allocation5 + $0x5b8] sm:$0xff] }
  0xad   : > { %2818 = vmatpush1.bf16.msra.mxu0 %v2817_v37 }
  0xae   : > { %2820 = vmatprep.subr.bf16.mxu0 %v2819_v38  ;;  %2906 = vmatpush1.bf16.msra.mxu1 %v2905_v21  ;;  %v1027_v21 = vld [vmem:[#allocation5 + $0x4a8] sm:$0xff] }
  0xaf   : > { %2908 = vmatprep.subr.bf16.mxu1 %v2907_v26  ;;  %v2927_v24 = vpack.c.bf16 %v1029_v22, %v1027_v21  ;;  %v1028_v26 = vld [vmem:[#allocation5 + $0x4b0] sm:$0xff] }
  0xb1   : > { %2822 = vmatpush1.bf16.msra.mxu0 %v2821_v43  ;;  %v1011_v43 = vld [vmem:[#allocation5 + $0x428] sm:$0xff] }
  0xb2   : > { %2824 = vmatprep.subr.bf16.mxu0 %v2823_v44  ;;  %v1013_v44 = vld [vmem:[#allocation5 + $0x438] sm:$0xff] }
  0xb3   : > { %v2911_v57 = vpack.c.bf16 %v1013_v44, %v1011_v43  ;;  %v1038_v44 = vld [vmem:[#allocation5 + $0x500] sm:$0xff] }
  0xb5   : > { %2826 = vmatpush1.bf16.msra.mxu0 %v2825_v47 }
  0xb6   : > { %2828 = vmatprep.subr.bf16.mxu0 %v2827_v51  ;;  %v1015_v51 = vld [vmem:[#allocation5 + $0x448] sm:$0xff] }
  0xb7   : > { %v2915_v7 = vpack.c.bf16 %v1017_v52, %v1015_v51  ;;  %v1044_v51 = vld [vmem:[#allocation5 + $0x530] sm:$0xff]  ;;  %v1047_v52 = vld [vmem:[#allocation5 + $0x548] sm:$0xff] }
  0xb9   : > { %2830 = vmatpush1.bf16.msra.mxu0 %v2829_v56 }
  0xba   : > { %2832 = vmatprep.subr.bf16.mxu0 %v2831_v63 }
  0xbd   : > { %2834 = vmatpush1.bf16.msra.mxu0 %v2833_v6 }
  0xbe   : > { %2836 = vmatprep.subr.bf16.mxu0 %v2835_v12  ;;  %v2919_v12 = vpack.c.bf16 %v1021_v1, %v1019_v10  ;;  %v2959_v1 = vpack.c.bf16 %v1061_v9, %v1059_v8  ;;  %v1275_v9 = vld [vmem:[#allocation8 + $0x2c0] sm:$0xff] }
  0xc1   : > { %2838 = vmatpush1.bf16.msra.mxu0 %v2837_v17  ;;  %v2921_v17 = vpack.c.bf16 %v1020_v14, %v1018_v13  ;;  %v1063_v13 = vld [vmem:[#allocation5 + $0x5c8] sm:$0xff]  ;;  %v1065_v14 = vld [vmem:[#allocation5 + $0x5d8] sm:$0xff] }
  0xc2   : > { %2840 = vmatprep.subr.bf16.mxu0 %v2839_v23  ;;  %v2925_v23 = vpack.c.bf16 %v1024_v20, %v1022_v19  ;;  %v2963_v16 = vpack.c.bf16 %v1065_v14, %v1063_v13  ;;  %v1067_v19 = vld [vmem:[#allocation5 + $0x5e8] sm:$0xff]  ;;  %v1069_v20 = vld [vmem:[#allocation5 + $0x5f8] sm:$0xff]  ;;  %v1279_v14 = vld [vmem:[#allocation8 + $0x2e0] sm:$0xff] }
  0xc3   : > { %v2967_v22 = vpack.c.bf16 %v1069_v20, %v1067_v19  ;;  %v1283_v20 = vld [vmem:[#allocation8 + $0x300] sm:$0xff] }
  0xc5   : > { %2842 = vmatpush1.bf16.msra.mxu0 %v2841_v29  ;;  %v2929_v29 = vpack.c.bf16 %v1028_v26, %v1026_v25 }
 0x15b   : > { %v675_v36 = vpop.f32.mrb[0].mxu0 }
 0x15c   : > { %v694_v37 = vadd.f32 %v687_v34, %v675_v36  ;;  %v677_v38 = vpop.f32.mrb[1].mxu0  ;;  %v1032_v34 = vld [vmem:[#allocation5 + $0x4d0] sm:$0xff]  ;;  %v1037_v36 = vld [vmem:[#allocation5 + $0x4f8] sm:$0xff] }
 0x15d   : > { %v695_v39 = vadd.f32 %v691_v35, %v677_v38  ;;  %v1035_v35 = vld [vmem:[#allocation5 + $0x4e8] sm:$0xff] }
 0x15e   : > { %v698_v40 = vrot.slane %v694_v37, 7  ;;  %v2933_v37 = vpack.c.bf16 %v1032_v34, %v1030_v32  ;;  %v2935_v38 = vpack.c.bf16 %v1037_v36, %v1035_v35  ;;  %v1252_v32 = vld [vmem:[#allocation8 + $0x208] sm:$0xff]  ;;  %v1254_v34 = vld [vmem:[#allocation8 + $0x218] sm:$0xff]  ;;  %v1251_v35 = vld [vmem:[#allocation8 + $0x200] sm:$0xff] }
 0x15f   : > { %v699_v41 = vrot.slane %v695_v39, 7  ;;  %v1034_v39 = vld [vmem:[#allocation5 + $0x4e0] sm:$0xff]  ;;  %v2971_v36 = vpack.c.bf16 %v1254_v34, %v1252_v32 }
 0x160   : > { %702 = vst [vmem:[#allocation3] sm:$0xfe] %v698_v40  ;;  %704 = vst [vmem:[#allocation3 + $0x10] sm:$0x1] %v698_v40  ;;  %v1036_v40 = vld [vmem:[#allocation5 + $0x4f0] sm:$0xff]  ;;  %v1291_v34 = vld [vmem:[#allocation8 + $0x340] sm:$0xff] }
 0x161   : > { %703 = vst [vmem:[#allocation3 + $0x8] sm:$0xfe] %v699_v41  ;;  %705 = vst [vmem:[#allocation3 + $0x18] sm:$0x1] %v699_v41  ;;  %v1039_v41 = vld [vmem:[#allocation5 + $0x508] sm:$0xff]  ;;  %v2937_v42 = vpack.c.bf16 %v1036_v40, %v1034_v39  ;;  %v1258_v39 = vld [vmem:[#allocation8 + $0x238] sm:$0xff]  ;;  %2972 = vmatprep.subr.bf16.mxu0 %v2971_v36 }
 0x162   : > { %v2939_v43 = vpack.c.bf16 %v1041_v0, %v1039_v41  ;;  %v1255_v0 = vld [vmem:[#allocation8 + $0x220] sm:$0xff]  ;;  %v1296_v36 = vld [vmem:[#allocation8 + $0x368] sm:$0xff] }
 0x167   : > { %v711_v47 = vld [vmem:[#allocation3] sm:$0xff]  ;;  %v779_v50 = vld [vmem:[#allocation3 + $0x10] sm:$0x1] }
 0x168   : > { %v777_v49 = vld [vmem:[#allocation3] sm:$0xfe]  ;;  %v712_v53 = vld [vmem:[#allocation3 + $0x8] sm:$0xff]  ;;  %v780_v55 = vld [vmem:[#allocation3 + $0x18] sm:$0x1]  ;;  %v852_v2 = vrot.slane %v779_v50, 1 }
 0x169   : > { %v778_v54 = vld [vmem:[#allocation3 + $0x8] sm:$0xfe]  ;;  %v851_v56 = vrot.slane %v777_v49, 1  ;;  %994 = vmatprep.mubr.f32.mxu1 %v712_v53  ;;  %v855_v59 = vrot.slane %v780_v55, 1  ;;  %v1004_v61 = vld [vmem:[#allocation3 + $0x18] sm:$0x3] }
 0x16a   : > { %v854_v58 = vrot.slane %v778_v54, 1  ;;  %v1002_v60 = vld [vmem:[#allocation3 + $0x8] sm:$0xfc]  ;;  %995 = vmatmul.mubr.f32.vlgmr.msra.gmra.mrb[0].mxu1 %v711_v47  ;;  %v1079_v63 = vrot.slane %v1004_v61, 2  ;;  %v1045_v47 = vld [vmem:[#allocation5 + $0x538] sm:$0xff]  ;;  %v1042_v50 = vld [vmem:[#allocation5 + $0x520] sm:$0xff] }
 0x16b   : > { %v1078_v62 = vrot.slane %v1002_v60, 2  ;;  %2910 = vmatpush1.bf16.msra.mxu1 %v2909_v48  ;;  %v853_v6 = vsel %vm850_vm3, %v851_v56, %v852_v2  ;;  %v2941_v48 = vpack.c.bf16 %v1040_v45, %v1038_v44  ;;  %v2943_v49 = vpack.c.bf16 %v1045_v47, %v1043_v46  ;;  %v1049_v53 = vld [vmem:[#allocation5 + $0x558] sm:$0xff]  ;;  %v1046_v56 = vld [vmem:[#allocation5 + $0x540] sm:$0xff]  ;;  %v1055_v2 = vld [vmem:[#allocation5 + $0x588] sm:$0xff] }
 0x16c   : > { %v856_v3 = vsel %vm850_vm3, %v854_v58, %v855_v59  ;;  %2912 = vmatprep.subr.bf16.mxu1 %v2911_v57  ;;  %v2945_v54 = vpack.c.bf16 %v1044_v51, %v1042_v50  ;;  %v2947_v55 = vpack.c.bf16 %v1049_v53, %v1047_v52  ;;  %v1048_v57 = vld [vmem:[#allocation5 + $0x550] sm:$0xff]  ;;  %v1051_v58 = vld [vmem:[#allocation5 + $0x568] sm:$0xff]  ;;  %v1053_v59 = vld [vmem:[#allocation5 + $0x578] sm:$0xff] }
 0x16d   : > { %923 = vmatprep.mubr.f32.mxu0 %v856_v3  ;;  %v1080_v5 = vsel %vm1074_vm4, %v1078_v62, %v1079_v63  ;;  %v2949_v60 = vpack.c.bf16 %v1048_v57, %v1046_v56  ;;  %v2951_v61 = vpack.c.bf16 %v1053_v59, %v1051_v58  ;;  %v1050_v62 = vld [vmem:[#allocation5 + $0x560] sm:$0xff]  ;;  %v1052_v63 = vld [vmem:[#allocation5 + $0x570] sm:$0xff]  ;;  %v1057_v3 = vld [vmem:[#allocation5 + $0x598] sm:$0xff] }
 0x16e   : > { %1147 = vmatprep.mubr.f32.mxu1 %v1080_v5  ;;  %924 = vmatmul.mubr.f32.vlgmr.msra.gmra.mrb[2].mxu0 %v853_v6  ;;  %v2955_v5 = vpack.c.bf16 %v1057_v3, %v1055_v2  ;;  %v1054_v6 = vld [vmem:[#allocation5 + $0x580] sm:$0xff]  ;;  %v1003_v26 = vld [vmem:[#allocation3 + $0x10] sm:$0x3]  ;;  %v1262_v44 = vld [vmem:[#allocation8 + $0x258] sm:$0xff] }
 0x16f   : > { %2914 = vmatpush1.bf16.msra.mxu1 %v2913_v4  ;;  %v2953_v4 = vpack.c.bf16 %v1052_v63, %v1050_v62  ;;  %v1001_v25 = vld [vmem:[#allocation3] sm:$0xfc]  ;;  %v1266_v50 = vld [vmem:[#allocation8 + $0x278] sm:$0xff] }
 0x170   : > { %2916 = vmatprep.subr.bf16.mxu1 %v2915_v7  ;;  %v1056_v7 = vld [vmem:[#allocation5 + $0x590] sm:$0xff]  ;;  %v1075_v28 = vrot.slane %v1001_v25, 2  ;;  %v1259_v47 = vld [vmem:[#allocation8 + $0x240] sm:$0xff]  ;;  %v1270_v56 = vld [vmem:[#allocation8 + $0x298] sm:$0xff] }
 0x171   : > { %v2957_v10 = vpack.c.bf16 %v1056_v7, %v1054_v6  ;;  %v1263_v53 = vld [vmem:[#allocation8 + $0x260] sm:$0xff]  ;;  %v1274_v62 = vld [vmem:[#allocation8 + $0x2b8] sm:$0xff] }
 0x172   : > { %v1267_v59 = vld [vmem:[#allocation8 + $0x280] sm:$0xff]  ;;  %v1278_v6 = vld [vmem:[#allocation8 + $0x2d8] sm:$0xff] }
 0x173   : > { %2918 = vmatpush1.bf16.msra.mxu1 %v2917_v11  ;;  %v1058_v11 = vld [vmem:[#allocation5 + $0x5a0] sm:$0xff] }
 0x174   : > { %2920 = vmatprep.subr.bf16.mxu1 %v2919_v12  ;;  %v1060_v12 = vld [vmem:[#allocation5 + $0x5b0] sm:$0xff]  ;;  %v1271_v3 = vld [vmem:[#allocation8 + $0x2a0] sm:$0xff] }
 0x175   : > { %v2961_v15 = vpack.c.bf16 %v1060_v12, %v1058_v11  ;;  %v1282_v11 = vld [vmem:[#allocation8 + $0x2f8] sm:$0xff] }
 0x177   : > { %2922 = vmatpush1.bf16.msra.mxu1 %v2921_v17  ;;  %v1062_v17 = vld [vmem:[#allocation5 + $0x5c0] sm:$0xff] }
 0x178   : > { %2924 = vmatprep.subr.bf16.mxu1 %v2923_v18  ;;  %v1064_v18 = vld [vmem:[#allocation5 + $0x5d0] sm:$0xff] }
 0x179   : > { %v2965_v21 = vpack.c.bf16 %v1064_v18, %v1062_v17  ;;  %v1286_v17 = vld [vmem:[#allocation8 + $0x318] sm:$0xff] }
 0x17b   : > { %2926 = vmatpush1.bf16.msra.mxu1 %v2925_v23  ;;  %v1066_v23 = vld [vmem:[#allocation5 + $0x5e0] sm:$0xff] }
 0x17c   : > { %2928 = vmatprep.subr.bf16.mxu1 %v2927_v24  ;;  %v1068_v24 = vld [vmem:[#allocation5 + $0x5f0] sm:$0xff] }
 0x17d   : > { %v2969_v27 = vpack.c.bf16 %v1068_v24, %v1066_v23  ;;  %v1290_v23 = vld [vmem:[#allocation8 + $0x338] sm:$0xff] }
 0x17f   : > { %2930 = vmatpush1.bf16.msra.mxu1 %v2929_v29  ;;  %v1076_v29 = vrot.slane %v1003_v26, 2  ;;  %v1287_v26 = vld [vmem:[#allocation8 + $0x320] sm:$0xff] }
 0x180   : > { %2932 = vmatprep.subr.bf16.mxu1 %v2931_v30 }
 0x181   : > { %v1077_v30 = vsel %vm1074_vm4, %v1075_v28, %v1076_v29  ;;  %v1292_v28 = vld [vmem:[#allocation8 + $0x348] sm:$0xff]  ;;  %v1294_v29 = vld [vmem:[#allocation8 + $0x358] sm:$0xff] }
 0x182   : > { %v3011_v32 = vpack.c.bf16 %v1294_v29, %v1292_v28 }
 0x183   : > { %2934 = vmatpush1.bf16.msra.mxu1 %v2933_v37  ;;  %v1253_v37 = vld [vmem:[#allocation8 + $0x210] sm:$0xff] }
 0x184   : > { %2936 = vmatprep.subr.bf16.mxu1 %v2935_v38  ;;  %v1256_v38 = vld [vmem:[#allocation8 + $0x228] sm:$0xff]  ;;  %v2973_v40 = vpack.c.bf16 %v1253_v37, %v1251_v35  ;;  %v1293_v35 = vld [vmem:[#allocation8 + $0x350] sm:$0xff]  ;;  %v1298_v37 = vld [vmem:[#allocation8 + $0x378] sm:$0xff] }
 0x185   : > { %v2975_v41 = vpack.c.bf16 %v1258_v39, %v1256_v38  ;;  %v3013_v38 = vpack.c.bf16 %v1293_v35, %v1291_v34  ;;  %v3015_v39 = vpack.c.bf16 %v1298_v37, %v1296_v36  ;;  %v1186_v36 = vld [vmem:[#allocation8 + $0x20] sm:$0xff]  ;;  %v1188_v37 = vld [vmem:[#allocation8 + $0x30] sm:$0xff] }
 0x186   : > { %2974 = vmatpush1.bf16.msra.mxu0 %v2973_v40  ;;  %v1295_v40 = vld [vmem:[#allocation8 + $0x360] sm:$0xff] }
 0x187   : > { %2938 = vmatpush1.bf16.msra.mxu1 %v2937_v42  ;;  %v1257_v42 = vld [vmem:[#allocation8 + $0x230] sm:$0xff]  ;;  %2976 = vmatprep.subr.bf16.mxu0 %v2975_v41 }
 0x188   : > { %2940 = vmatprep.subr.bf16.mxu1 %v2939_v43  ;;  %v1260_v43 = vld [vmem:[#allocation8 + $0x248] sm:$0xff]  ;;  %v2977_v45 = vpack.c.bf16 %v1257_v42, %v1255_v0  ;;  %v1297_v41 = vld [vmem:[#allocation8 + $0x370] sm:$0xff] }
 0x189   : > { %v2979_v46 = vpack.c.bf16 %v1262_v44, %v1260_v43  ;;  %v3017_v0 = vpack.c.bf16 %v1297_v41, %v1295_v40  ;;  %v1300_v42 = vld [vmem:[#allocation8 + $0x388] sm:$0xff]  ;;  %v1302_v43 = vld [vmem:[#allocation8 + $0x398] sm:$0xff] }
 0x18a   : > { %2978 = vmatpush1.bf16.msra.mxu0 %v2977_v45  ;;  %v3019_v44 = vpack.c.bf16 %v1302_v43, %v1300_v42  ;;  %v1299_v45 = vld [vmem:[#allocation8 + $0x380] sm:$0xff]  ;;  %v1191_v40 = vld [vmem:[#allocation8 + $0x48] sm:$0xff]  ;;  %v1193_v41 = vld [vmem:[#allocation8 + $0x58] sm:$0xff] }
 0x18b   : > { %2942 = vmatpush1.bf16.msra.mxu1 %v2941_v48  ;;  %v1261_v48 = vld [vmem:[#allocation8 + $0x250] sm:$0xff]  ;;  %2980 = vmatprep.subr.bf16.mxu0 %v2979_v46  ;;  %v1719_v43 = vld [vmem:[#allocation10 + $0x208] sm:$0xff] }
 0x18c   : > { %2944 = vmatprep.subr.bf16.mxu1 %v2943_v49  ;;  %v1264_v49 = vld [vmem:[#allocation8 + $0x268] sm:$0xff]  ;;  %v2981_v51 = vpack.c.bf16 %v1261_v48, %v1259_v47  ;;  %v1301_v46 = vld [vmem:[#allocation8 + $0x390] sm:$0xff] }
 0x18d   : > { %v2983_v52 = vpack.c.bf16 %v1266_v50, %v1264_v49  ;;  %v3021_v47 = vpack.c.bf16 %v1301_v46, %v1299_v45  ;;  %v1304_v48 = vld [vmem:[#allocation8 + $0x3a8] sm:$0xff]  ;;  %v1306_v49 = vld [vmem:[#allocation8 + $0x3b8] sm:$0xff]  ;;  %v1192_v42 = vld [vmem:[#allocation8 + $0x50] sm:$0xff]  ;;  %v3041_v46 = vpack.c.bf16 %v1188_v37, %v1186_v36 }
 0x18e   : > { %2982 = vmatpush1.bf16.msra.mxu0 %v2981_v51  ;;  %v3023_v50 = vpack.c.bf16 %v1306_v49, %v1304_v48  ;;  %v1303_v51 = vld [vmem:[#allocation8 + $0x3a0] sm:$0xff]  ;;  %v1720_v48 = vld [vmem:[#allocation10 + $0x210] sm:$0xff]  ;;  %v1723_v49 = vld [vmem:[#allocation10 + $0x228] sm:$0xff] }
 0x18f   : > { %2946 = vmatpush1.bf16.msra.mxu1 %v2945_v54  ;;  %v1265_v54 = vld [vmem:[#allocation8 + $0x270] sm:$0xff]  ;;  %2984 = vmatprep.subr.bf16.mxu0 %v2983_v52  ;;  %v1718_v45 = vld [vmem:[#allocation10 + $0x200] sm:$0xff] }
 0x190   : > { %2948 = vmatprep.subr.bf16.mxu1 %v2947_v55  ;;  %v1268_v55 = vld [vmem:[#allocation8 + $0x288] sm:$0xff]  ;;  %v2985_v57 = vpack.c.bf16 %v1265_v54, %v1263_v53  ;;  %v1305_v52 = vld [vmem:[#allocation8 + $0x3b0] sm:$0xff]  ;;  %v1206_v37 = vld [vmem:[#allocation8 + $0xc0] sm:$0xff] }
 0x191   : > { %v2987_v58 = vpack.c.bf16 %v1270_v56, %v1268_v55  ;;  %v1308_v53 = vld [vmem:[#allocation8 + $0x3c8] sm:$0xff]  ;;  %v3025_v54 = vpack.c.bf16 %v1305_v52, %v1303_v51  ;;  %v1310_v55 = vld [vmem:[#allocation8 + $0x3d8] sm:$0xff]  ;;  %v1307_v56 = vld [vmem:[#allocation8 + $0x3c0] sm:$0xff]  ;;  %v3043_v51 = vpack.c.bf16 %v1193_v41, %v1191_v40  ;;  %v3165_v52 = vpack.c.bf16 %v1720_v48, %v1718_v45 }
 0x192   : > { %2986 = vmatpush1.bf16.msra.mxu0 %v2985_v57  ;;  %v1309_v57 = vld [vmem:[#allocation8 + $0x3d0] sm:$0xff]  ;;  %v1213_v45 = vld [vmem:[#allocation8 + $0xf8] sm:$0xff]  ;;  %v1210_v48 = vld [vmem:[#allocation8 + $0xe0] sm:$0xff] }
 0x193   : > { %2950 = vmatpush1.bf16.msra.mxu1 %v2949_v60  ;;  %v1269_v60 = vld [vmem:[#allocation8 + $0x290] sm:$0xff]  ;;  %2988 = vmatprep.subr.bf16.mxu0 %v2987_v58  ;;  %v3027_v58 = vpack.c.bf16 %v1310_v55, %v1308_v53 }
 0x194   : > { %2952 = vmatprep.subr.bf16.mxu1 %v2951_v61  ;;  %v1272_v61 = vld [vmem:[#allocation8 + $0x2a8] sm:$0xff]  ;;  %v2989_v63 = vpack.c.bf16 %v1269_v60, %v1267_v59  ;;  %v1314_v60 = vld [vmem:[#allocation8 + $0x3f8] sm:$0xff]  ;;  %v1724_v55 = vld [vmem:[#allocation10 + $0x230] sm:$0xff] }
 0x195   : > { %v2991_v2 = vpack.c.bf16 %v1274_v62, %v1272_v61  ;;  %v1312_v59 = vld [vmem:[#allocation8 + $0x3e8] sm:$0xff]  ;;  %v3029_v61 = vpack.c.bf16 %v1309_v57, %v1307_v56  ;;  %v1740_v40 = vld [vmem:[#allocation10 + $0x2b0] sm:$0xff] }
 0x196   : > { %2990 = vmatpush1.bf16.msra.mxu0 %v2989_v63  ;;  %v3031_v62 = vpack.c.bf16 %v1314_v60, %v1312_v59  ;;  %v1311_v63 = vld [vmem:[#allocation8 + $0x3e0] sm:$0xff]  ;;  %v1727_v56 = vld [vmem:[#allocation10 + $0x248] sm:$0xff]  ;;  %v1729_v59 = vld [vmem:[#allocation10 + $0x258] sm:$0xff] }
 0x197   : > { %2954 = vmatpush1.bf16.msra.mxu1 %v2953_v4  ;;  %v1273_v4 = vld [vmem:[#allocation8 + $0x2b0] sm:$0xff]  ;;  %2992 = vmatprep.subr.bf16.mxu0 %v2991_v2  ;;  %v1195_v57 = vld [vmem:[#allocation8 + $0x68] sm:$0xff] }
 0x198   : > { %2956 = vmatprep.subr.bf16.mxu1 %v2955_v5  ;;  %v1276_v5 = vld [vmem:[#allocation8 + $0x2c8] sm:$0xff]  ;;  %v2993_v7 = vpack.c.bf16 %v1273_v4, %v1271_v3  ;;  %v1313_v2 = vld [vmem:[#allocation8 + $0x3f0] sm:$0xff] }
 0x199   : > { %v2995_v8 = vpack.c.bf16 %v1278_v6, %v1276_v5  ;;  %v3033_v3 = vpack.c.bf16 %v1313_v2, %v1311_v63  ;;  %v1183_v4 = vld [vmem:[#allocation8 + $0x8] sm:$0xff]  ;;  %v1185_v5 = vld [vmem:[#allocation8 + $0x18] sm:$0xff]  ;;  %v3171_v63 = vpack.c.bf16 %v1729_v59, %v1727_v56  ;;  %v1726_v2 = vld [vmem:[#allocation10 + $0x240] sm:$0xff] }
 0x19a   : > { %2994 = vmatpush1.bf16.msra.mxu0 %v2993_v7  ;;  %v3035_v6 = vpack.c.bf16 %v1185_v5, %v1183_v4  ;;  %v1196_v5 = vld [vmem:[#allocation8 + $0x70] sm:$0xff]  ;;  %v1215_v56 = vld [vmem:[#allocation8 + $0x108] sm:$0xff] }
 0x19b   : > { %2958 = vmatpush1.bf16.msra.mxu1 %v2957_v10  ;;  %v1277_v10 = vld [vmem:[#allocation8 + $0x2d0] sm:$0xff]  ;;  %2996 = vmatprep.subr.bf16.mxu0 %v2995_v8 }
 0x19c   : > { %2960 = vmatprep.subr.bf16.mxu1 %v2959_v1  ;;  %v1280_v1 = vld [vmem:[#allocation8 + $0x2e8] sm:$0xff]  ;;  %v2997_v12 = vpack.c.bf16 %v1277_v10, %v1275_v9  ;;  %v1156_v9 = vld [vmem:[%s4359_s4] sm:$0x3] }
 0x19d   : > { %v2999_v13 = vpack.c.bf16 %v1282_v11, %v1280_v1  ;;  %v1161_v10 = vrot.slane %v1156_v9, %v3976_v31  ;;  %v1165_v11 = vrot.slane %v1156_v9, %v3981_v33  ;;  %v1201_v9 = vld [vmem:[#allocation8 + $0x98] sm:$0xff] }
 0x19e   : > { %2998 = vmatpush1.bf16.msra.mxu0 %v2997_v12 }
 0x19f   : > { %2962 = vmatpush1.bf16.msra.mxu1 %v2961_v15  ;;  %v1281_v15 = vld [vmem:[#allocation8 + $0x2f0] sm:$0xff]  ;;  %3000 = vmatprep.subr.bf16.mxu0 %v2999_v13 }
 0x1a0   : > { %2964 = vmatprep.subr.bf16.mxu1 %v2963_v16  ;;  %v1284_v16 = vld [vmem:[#allocation8 + $0x308] sm:$0xff]  ;;  %v3001_v18 = vpack.c.bf16 %v1281_v15, %v1279_v14 }
 0x1a1   : > { %v3003_v19 = vpack.c.bf16 %v1286_v17, %v1284_v16 }
 0x1a2   : > { %3002 = vmatpush1.bf16.msra.mxu0 %v3001_v18 }
 0x1a3   : > { %2966 = vmatpush1.bf16.msra.mxu1 %v2965_v21  ;;  %v1285_v21 = vld [vmem:[#allocation8 + $0x310] sm:$0xff]  ;;  %3004 = vmatprep.subr.bf16.mxu0 %v3003_v19  ;;  %v1182_v19 = vld [vmem:[#allocation8] sm:$0xff] }
 0x1a4   : > { %2968 = vmatprep.subr.bf16.mxu1 %v2967_v22  ;;  %v1288_v22 = vld [vmem:[#allocation8 + $0x328] sm:$0xff]  ;;  %v3005_v24 = vpack.c.bf16 %v1285_v21, %v1283_v20  ;;  %v1184_v20 = vld [vmem:[#allocation8 + $0x10] sm:$0xff] }
 0x1a5   : > { %v3007_v25 = vpack.c.bf16 %v1290_v23, %v1288_v22  ;;  %v1187_v21 = vld [vmem:[#allocation8 + $0x28] sm:$0xff] }
 0x1a6   : > { %3006 = vmatpush1.bf16.msra.mxu0 %v3005_v24  ;;  %v1189_v24 = vld [vmem:[#allocation8 + $0x38] sm:$0xff] }
 0x1a7   : > { %2970 = vmatpush1.bf16.msra.mxu1 %v2969_v27  ;;  %v1289_v27 = vld [vmem:[#allocation8 + $0x330] sm:$0xff]  ;;  %3008 = vmatprep.subr.bf16.mxu0 %v3007_v25  ;;  %v3039_v35 = vpack.c.bf16 %v1189_v24, %v1187_v21 }
 0x1aa   : > { %1148 = vmatmul.mubr.f32.vlgmr.msra.gmra.mrb[0].mxu1 %v1077_v30  ;;  %v3009_v30 = vpack.c.bf16 %v1289_v27, %v1287_v26 }
 0x1ac   : > { %3010 = vmatpush1.bf16.msra.mxu0 %v3009_v30 }
 0x1ad   : > { %3012 = vmatprep.subr.bf16.mxu0 %v3011_v32  ;;  %v3037_v32 = vpack.c.bf16 %v1184_v20, %v1182_v19  ;;  %v1203_v19 = vld [vmem:[#allocation8 + $0xa8] sm:$0xff]  ;;  %v1205_v20 = vld [vmem:[#allocation8 + $0xb8] sm:$0xff] }
 0x1b0   : > { %3014 = vmatpush1.bf16.msra.mxu0 %v3013_v38 }
 0x1b1   : > { %3016 = vmatprep.subr.bf16.mxu0 %v3015_v39 }
 0x1b4   : > { %3018 = vmatpush1.bf16.msra.mxu0 %v3017_v0  ;;  %v1190_v0 = vld [vmem:[#allocation8 + $0x40] sm:$0xff] }
 0x1b5   : > { %3020 = vmatprep.subr.bf16.mxu0 %v3019_v44  ;;  %v1721_v44 = vld [vmem:[#allocation10 + $0x218] sm:$0xff] }
 0x1b8   : > { %3022 = vmatpush1.bf16.msra.mxu0 %v3021_v47  ;;  %v3163_v47 = vpack.c.bf16 %v1721_v44, %v1719_v43  ;;  %v1745_v43 = vld [vmem:[#allocation10 + $0x2d8] sm:$0xff]  ;;  %v1211_v44 = vld [vmem:[#allocation8 + $0xe8] sm:$0xff] }
 0x1b9   : > { %3024 = vmatprep.subr.bf16.mxu0 %v3023_v50  ;;  %v1725_v50 = vld [vmem:[#allocation10 + $0x238] sm:$0xff] }
 0x1ba   : > { %v3167_v53 = vpack.c.bf16 %v1725_v50, %v1723_v49  ;;  %3164 = vmatprep.subr.bf16.mxu1 %v3163_v47  ;;  %v1742_v50 = vld [vmem:[#allocation10 + $0x2c0] sm:$0xff] }
 0x1bb   : > { %3166 = vmatpush1.bf16.msra.mxu1 %v3165_v52  ;;  %v3063_v52 = vpack.c.bf16 %v1213_v45, %v1211_v44 }
 0x1bc   : > { %3026 = vmatpush1.bf16.msra.mxu0 %v3025_v54  ;;  %v1722_v54 = vld [vmem:[#allocation10 + $0x220] sm:$0xff]  ;;  %3168 = vmatprep.subr.bf16.mxu1 %v3167_v53  ;;  %v1212_v53 = vld [vmem:[#allocation8 + $0xf0] sm:$0xff] }
 0x1bd   : > { %3028 = vmatprep.subr.bf16.mxu0 %v3027_v58  ;;  %v1197_v58 = vld [vmem:[#allocation8 + $0x78] sm:$0xff]  ;;  %v3169_v60 = vpack.c.bf16 %v1724_v55, %v1722_v54  ;;  %v1747_v54 = vld [vmem:[#allocation10 + $0x2e8] sm:$0xff]  ;;  %v3065_v59 = vpack.c.bf16 %v1212_v53, %v1210_v48  ;;  %v1764_v48 = vld [vmem:[#allocation10 + $0x370] sm:$0xff] }
 0x1be   : > { %v3047_v4 = vpack.c.bf16 %v1197_v58, %v1195_v57  ;;  %v1749_v55 = vld [vmem:[#allocation10 + $0x2f8] sm:$0xff] }
 0x1bf   : > { %3170 = vmatpush1.bf16.msra.mxu1 %v3169_v60  ;;  %v1217_v57 = vld [vmem:[#allocation8 + $0x118] sm:$0xff]  ;;  %v1214_v60 = vld [vmem:[#allocation8 + $0x100] sm:$0xff] }
 0x1c0   : > { %3030 = vmatpush1.bf16.msra.mxu0 %v3029_v61  ;;  %v3045_v61 = vpack.c.bf16 %v1192_v42, %v1190_v0  ;;  %3172 = vmatprep.subr.bf16.mxu1 %v3171_v63  ;;  %v1208_v0 = vld [vmem:[#allocation8 + $0xd0] sm:$0xff]  ;;  %v1743_v42 = vld [vmem:[#allocation10 + $0x2c8] sm:$0xff]  ;;  %v1237_v53 = vld [vmem:[#allocation8 + $0x1b8] sm:$0xff] }
 0x1c1   : > { %3032 = vmatprep.subr.bf16.mxu0 %v3031_v62  ;;  %v1194_v62 = vld [vmem:[#allocation8 + $0x60] sm:$0xff]  ;;  %v3061_v47 = vpack.c.bf16 %v1208_v0, %v1206_v37  ;;  %v3187_v49 = vpack.c.bf16 %v1745_v43, %v1743_v42  ;;  %v1748_v63 = vld [vmem:[#allocation10 + $0x2f0] sm:$0xff]  ;;  %v1765_v0 = vld [vmem:[#allocation10 + $0x378] sm:$0xff] }
 0x1c2   : > { %v1758_v37 = vld [vmem:[#allocation10 + $0x340] sm:$0xff]  ;;  %v1231_v42 = vld [vmem:[#allocation8 + $0x188] sm:$0xff]  ;;  %v1233_v43 = vld [vmem:[#allocation8 + $0x198] sm:$0xff] }
 0x1c4   : > { %3034 = vmatpush1.bf16.msra.mxu0 %v3033_v3  ;;  %v1728_v3 = vld [vmem:[#allocation10 + $0x250] sm:$0xff] }
 0x1c5   : > { %3036 = vmatprep.subr.bf16.mxu0 %v3035_v6  ;;  %v1731_v6 = vld [vmem:[#allocation10 + $0x268] sm:$0xff] }
 0x241   : > { %v925_v7 = vpop.f32.mrb[2].mxu0 }
 0x242   : > { %v927_v8 = vpop.f32.mrb[3].mxu0 }
 0x27d   : > { %v1149_v1 = vpop.f32.mrb[0].mxu1 }
 0x27e   : > { %v3451_v12 = vadd.f32 %v1149_v1, %v925_v7  ;;  %v1151_v13 = vpop.f32.mrb[1].mxu1  ;;  %v1733_v7 = vld [vmem:[#allocation10 + $0x278] sm:$0xff]  ;;  %v3049_v1 = vpack.c.bf16 %v1196_v5, %v1194_v62  ;;  %v1746_v62 = vld [vmem:[#allocation10 + $0x2e0] sm:$0xff] }
 0x27f   : > { %v3452_v14 = vadd.f32 %v1151_v13, %v927_v8  ;;  %v1199_v8 = vld [vmem:[#allocation8 + $0x88] sm:$0xff]  ;;  %v1730_v13 = vld [vmem:[#allocation10 + $0x260] sm:$0xff]  ;;  %v1753_v5 = vld [vmem:[#allocation10 + $0x318] sm:$0xff] }
 0x280   : > { %v1168_v15 = vadd.f32 %v3451_v12, %v1161_v10  ;;  %v3173_v10 = vpack.c.bf16 %v1728_v3, %v1726_v2  ;;  %v3175_v12 = vpack.c.bf16 %v1733_v7, %v1731_v6  ;;  %v3067_v2 = vpack.c.bf16 %v1217_v57, %v1215_v56  ;;  %v1216_v3 = vld [vmem:[#allocation8 + $0x110] sm:$0xff]  ;;  %v1219_v6 = vld [vmem:[#allocation8 + $0x128] sm:$0xff]  ;;  %v1221_v7 = vld [vmem:[#allocation8 + $0x138] sm:$0xff] }
 0x281   : > { %v1169_v16 = vadd.f32 %v3452_v14, %v1165_v11  ;;  %v1198_v11 = vld [vmem:[#allocation8 + $0x80] sm:$0xff]  ;;  %v1732_v14 = vld [vmem:[#allocation10 + $0x270] sm:$0xff] }
 0x282   : > { %v1172_v17 = vrot.slane %v1168_v15, 7  ;;  %v3051_v15 = vpack.c.bf16 %v1201_v9, %v1199_v8  ;;  %3174 = vmatpush1.bf16.msra.mxu1 %v3173_v10  ;;  %v3177_v21 = vpack.c.bf16 %v1732_v14, %v1730_v13  ;;  %v3193_v8 = vpack.c.bf16 %v1748_v63, %v1746_v62  ;;  %v1218_v10 = vld [vmem:[#allocation8 + $0x120] sm:$0xff]  ;;  %v1220_v14 = vld [vmem:[#allocation8 + $0x130] sm:$0xff] }
 0x283   : > { %v1173_v18 = vrot.slane %v1169_v16, 7  ;;  %v1200_v16 = vld [vmem:[#allocation8 + $0x90] sm:$0xff]  ;;  %3176 = vmatprep.subr.bf16.mxu1 %v3175_v12  ;;  %v3069_v9 = vpack.c.bf16 %v1216_v3, %v1214_v60  ;;  %v3071_v13 = vpack.c.bf16 %v1221_v7, %v1219_v6  ;;  %v1234_v57 = vld [vmem:[#allocation8 + $0x1a0] sm:$0xff]  ;;  %v1241_v60 = vld [vmem:[#allocation8 + $0x1d8] sm:$0xff] }
 0x284   : > { %1176 = vst [vmem:[#allocation4] sm:$0xfe] %v1172_v17  ;;  %1178 = vst [vmem:[#allocation4 + $0x10] sm:$0x1] %v1172_v17  ;;  %v1735_v17 = vld [vmem:[#allocation10 + $0x288] sm:$0xff]  ;;  %v1752_v12 = vld [vmem:[#allocation10 + $0x310] sm:$0xff] }
 0x285   : > { %1177 = vst [vmem:[#allocation4 + $0x8] sm:$0xfe] %v1173_v18  ;;  %1179 = vst [vmem:[#allocation4 + $0x18] sm:$0x1] %v1173_v18  ;;  %v1737_v18 = vld [vmem:[#allocation10 + $0x298] sm:$0xff]  ;;  %v1238_v63 = vld [vmem:[#allocation8 + $0x1c0] sm:$0xff] }
 0x286   : > { %v3179_v24 = vpack.c.bf16 %v1737_v18, %v1735_v17  ;;  %3178 = vmatpush1.bf16.msra.mxu1 %v3177_v21  ;;  %v1223_v17 = vld [vmem:[#allocation8 + $0x148] sm:$0xff]  ;;  %v1225_v18 = vld [vmem:[#allocation8 + $0x158] sm:$0xff]  ;;  %v1222_v21 = vld [vmem:[#allocation8 + $0x140] sm:$0xff] }
 0x287   : > { %v1243_v3 = vld [vmem:[#allocation8 + $0x1e8] sm:$0xff]  ;;  %v1242_v7 = vld [vmem:[#allocation8 + $0x1e0] sm:$0xff] }
 0x288   : > { %3180 = vmatprep.subr.bf16.mxu1 %v3179_v24  ;;  %v1756_v24 = vld [vmem:[#allocation10 + $0x330] sm:$0xff] }
 0x28b   : > { %v1246_v22 = vld [vmem:[#allocation4] sm:$0xfe]  ;;  %v1248_v23 = vld [vmem:[#allocation4 + $0x10] sm:$0x1] }
 0x28c   : > { %v1247_v25 = vld [vmem:[#allocation4 + $0x8] sm:$0xfe]  ;;  %v1249_v26 = vld [vmem:[#allocation4 + $0x18] sm:$0x1]  ;;  %v1319_v27 = vrot.slane %v1246_v22, 1  ;;  %v1320_v28 = vrot.slane %v1248_v23, 1  ;;  %v3053_v22 = vpack.c.bf16 %v1200_v16, %v1198_v11 }
 0x28d   : > { %v1322_v29 = vrot.slane %v1247_v25, 1  ;;  %v1323_v30 = vrot.slane %v1249_v26, 1  ;;  %v1181_v39 = vld [vmem:[#allocation4 + $0x8] sm:$0xff]  ;;  %v1202_v23 = vld [vmem:[#allocation8 + $0xa0] sm:$0xff]  ;;  %v1736_v26 = vld [vmem:[#allocation10 + $0x290] sm:$0xff] }
 0x28e   : > { %v1321_v38 = vsel %vm850_vm3, %v1319_v27, %v1320_v28  ;;  %v1734_v25 = vld [vmem:[#allocation10 + $0x280] sm:$0xff]  ;;  %v3055_v27 = vpack.c.bf16 %v1205_v20, %v1203_v19  ;;  %v1204_v28 = vld [vmem:[#allocation8 + $0xb0] sm:$0xff]  ;;  %v1757_v16 = vld [vmem:[#allocation10 + $0x338] sm:$0xff]  ;;  %v3073_v20 = vpack.c.bf16 %v1220_v14, %v1218_v10 }
 0x28f   : > { %v1324_v34 = vsel %vm850_vm3, %v1322_v29, %v1323_v30  ;;  %v1739_v29 = vld [vmem:[#allocation10 + $0x2a8] sm:$0xff]  ;;  %v1741_v30 = vld [vmem:[#allocation10 + $0x2b8] sm:$0xff]  ;;  %v3057_v36 = vpack.c.bf16 %v1204_v28, %v1202_v23  ;;  %v1750_v11 = vld [vmem:[#allocation10 + $0x300] sm:$0xff] }
 0x290   : > { %1391 = vmatprep.mubr.f32.mxu0 %v1324_v34  ;;  %v1209_v34 = vld [vmem:[#allocation8 + $0xd8] sm:$0xff]  ;;  %v3197_v19 = vpack.c.bf16 %v1752_v12, %v1750_v11  ;;  %v1754_v23 = vld [vmem:[#allocation10 + $0x320] sm:$0xff]  ;;  %v1470_v11 = vld [vmem:[#allocation4 + $0x8] sm:$0xfc] }
 0x291   : > { %1392 = vmatmul.mubr.f32.vlgmr.msra.gmra.mrb[4].mxu0 %v1321_v38  ;;  %v3183_v38 = vpack.c.bf16 %v1741_v30, %v1739_v29  ;;  %v1761_v28 = vld [vmem:[#allocation10 + $0x358] sm:$0xff]  ;;  %v1227_v29 = vld [vmem:[#allocation8 + $0x168] sm:$0xff]  ;;  %v1474_v14 = vld [vmem:[#allocation8 + $0x400] sm:$0xff] }
 0x292   : > { %3038 = vmatpush1.bf16.msra.mxu0 %v3037_v32  ;;  %1462 = vmatprep.mubr.f32.mxu0 %v1181_v39  ;;  %v1207_v32 = vld [vmem:[#allocation8 + $0xc8] sm:$0xff]  ;;  %v1738_v39 = vld [vmem:[#allocation10 + $0x2a0] sm:$0xff]  ;;  %v1229_v30 = vld [vmem:[#allocation8 + $0x178] sm:$0xff] }
 0x293   : > { %3040 = vmatprep.subr.bf16.mxu0 %v3039_v35  ;;  %v3181_v35 = vpack.c.bf16 %v1736_v26, %v1734_v25  ;;  %v3059_v41 = vpack.c.bf16 %v1209_v34, %v1207_v32  ;;  %v3075_v25 = vpack.c.bf16 %v1225_v18, %v1223_v17  ;;  %v1224_v26 = vld [vmem:[#allocation8 + $0x150] sm:$0xff]  ;;  %v3201_v32 = vpack.c.bf16 %v1756_v24, %v1754_v23  ;;  %v1477_v10 = vld [vmem:[#allocation8 + $0x418] sm:$0xff]  ;;  %v1180_v24 = vld [vmem:[#allocation4] sm:$0xff] }
 0x294   : > { %v3077_v34 = vpack.c.bf16 %v1224_v26, %v1222_v21  ;;  %v1472_v12 = vld [vmem:[#allocation4 + $0x18] sm:$0x3]  ;;  %v1545_v18 = vrot.slane %v1470_v11, 2  ;;  %v1480_v23 = vld [vmem:[#allocation8 + $0x430] sm:$0xff] }
 0x295   : > { %3182 = vmatpush1.bf16.msra.mxu1 %v3181_v35  ;;  %v1226_v35 = vld [vmem:[#allocation8 + $0x160] sm:$0xff]  ;;  %v1481_v17 = vld [vmem:[#allocation8 + $0x438] sm:$0xff]  ;;  %v1512_v11 = vld [vmem:[#allocation8 + $0x530] sm:$0xff] }
 0x296   : > { %3042 = vmatpush1.bf16.msra.mxu0 %v3041_v46  ;;  %v3185_v46 = vpack.c.bf16 %v1740_v40, %v1738_v39  ;;  %3184 = vmatprep.subr.bf16.mxu1 %v3183_v38  ;;  %v1760_v38 = vld [vmem:[#allocation10 + $0x350] sm:$0xff]  ;;  %v3079_v39 = vpack.c.bf16 %v1229_v30, %v1227_v29  ;;  %v1485_v26 = vld [vmem:[#allocation8 + $0x458] sm:$0xff]  ;;  %v1482_v30 = vld [vmem:[#allocation8 + $0x440] sm:$0xff] }
 0x297   : > { %3044 = vmatprep.subr.bf16.mxu0 %v3043_v51  ;;  %v1744_v51 = vld [vmem:[#allocation10 + $0x2d0] sm:$0xff]  ;;  %v3205_v44 = vpack.c.bf16 %v1760_v38, %v1758_v37  ;;  %v1486_v38 = vld [vmem:[#allocation8 + $0x460] sm:$0xff] }
 0x298   : > { %v3189_v58 = vpack.c.bf16 %v1744_v51, %v1742_v50  ;;  %v1228_v40 = vld [vmem:[#allocation8 + $0x170] sm:$0xff]  ;;  %v1230_v50 = vld [vmem:[#allocation8 + $0x180] sm:$0xff] }
 0x299   : > { %3186 = vmatpush1.bf16.msra.mxu1 %v3185_v46  ;;  %v3081_v45 = vpack.c.bf16 %v1228_v40, %v1226_v35  ;;  %v1232_v51 = vld [vmem:[#allocation8 + $0x190] sm:$0xff]  ;;  %v1489_v35 = vld [vmem:[#allocation8 + $0x478] sm:$0xff]  ;;  %v1491_v40 = vld [vmem:[#allocation8 + $0x488] sm:$0xff] }
 0x29a   : > { %3046 = vmatpush1.bf16.msra.mxu0 %v3045_v61  ;;  %3188 = vmatprep.subr.bf16.mxu1 %v3187_v49  ;;  %v3191_v61 = vpack.c.bf16 %v1749_v55, %v1747_v54  ;;  %v3083_v49 = vpack.c.bf16 %v1233_v43, %v1231_v42  ;;  %v3085_v55 = vpack.c.bf16 %v1232_v51, %v1230_v50  ;;  %v1490_v43 = vld [vmem:[#allocation8 + $0x480] sm:$0xff]  ;;  %v1496_v50 = vld [vmem:[#allocation8 + $0x4b0] sm:$0xff]  ;;  %v1499_v51 = vld [vmem:[#allocation8 + $0x4c8] sm:$0xff] }
 0x29b   : > { %3048 = vmatprep.subr.bf16.mxu0 %v3047_v4  ;;  %v1751_v4 = vld [vmem:[#allocation10 + $0x308] sm:$0xff] }
 0x29d   : > { %3190 = vmatpush1.bf16.msra.mxu1 %v3189_v58  ;;  %v1236_v58 = vld [vmem:[#allocation8 + $0x1b0] sm:$0xff] }
 0x29e   : > { %3050 = vmatpush1.bf16.msra.mxu0 %v3049_v1  ;;  %3192 = vmatprep.subr.bf16.mxu1 %v3191_v61  ;;  %v3195_v1 = vpack.c.bf16 %v1753_v5, %v1751_v4  ;;  %v3089_v61 = vpack.c.bf16 %v1236_v58, %v1234_v57  ;;  %v1245_v4 = vld [vmem:[#allocation8 + $0x1f8] sm:$0xff]  ;;  %v1503_v57 = vld [vmem:[#allocation8 + $0x4e8] sm:$0xff] }
 0x29f   : > { %3052 = vmatprep.subr.bf16.mxu0 %v3051_v15  ;;  %v1755_v15 = vld [vmem:[#allocation10 + $0x328] sm:$0xff]  ;;  %v3095_v6 = vpack.c.bf16 %v1245_v4, %v1243_v3  ;;  %v1505_v58 = vld [vmem:[#allocation8 + $0x4f8] sm:$0xff] }
 0x2a1   : > { %3194 = vmatpush1.bf16.msra.mxu1 %v3193_v8  ;;  %v1244_v8 = vld [vmem:[#allocation8 + $0x1f0] sm:$0xff] }
 0x2a2   : > { %3054 = vmatpush1.bf16.msra.mxu0 %v3053_v22  ;;  %3196 = vmatprep.subr.bf16.mxu1 %v3195_v1  ;;  %v3199_v22 = vpack.c.bf16 %v1757_v16, %v1755_v15  ;;  %v3097_v1 = vpack.c.bf16 %v1244_v8, %v1242_v7  ;;  %v1476_v15 = vld [vmem:[#allocation8 + $0x410] sm:$0xff]  ;;  %v1479_v16 = vld [vmem:[#allocation8 + $0x428] sm:$0xff]  ;;  %v1513_v8 = vld [vmem:[#allocation8 + $0x538] sm:$0xff] }
 0x2a3   : > { %3056 = vmatprep.subr.bf16.mxu0 %v3055_v27  ;;  %v1759_v27 = vld [vmem:[#allocation10 + $0x348] sm:$0xff]  ;;  %v3103_v21 = vpack.c.bf16 %v1481_v17, %v1479_v16  ;;  %v1514_v16 = vld [vmem:[#allocation8 + $0x540] sm:$0xff]  ;;  %v1516_v17 = vld [vmem:[#allocation8 + $0x550] sm:$0xff] }
 0x2a4   : > { %v1511_v7 = vld [vmem:[#allocation8 + $0x528] sm:$0xff] }
 0x2a5   : > { %3198 = vmatpush1.bf16.msra.mxu1 %v3197_v19  ;;  %v1546_v19 = vrot.slane %v1472_v12, 2  ;;  %v1515_v12 = vld [vmem:[#allocation8 + $0x548] sm:$0xff] }
 0x2a6   : > { %3058 = vmatpush1.bf16.msra.mxu0 %v3057_v36  ;;  %3200 = vmatprep.subr.bf16.mxu1 %v3199_v22  ;;  %v3203_v36 = vpack.c.bf16 %v1761_v28, %v1759_v27  ;;  %v1478_v22 = vld [vmem:[#allocation8 + $0x420] sm:$0xff] }
 0x2a7   : > { %3060 = vmatprep.subr.bf16.mxu0 %v3059_v41  ;;  %v1763_v41 = vld [vmem:[#allocation10 + $0x368] sm:$0xff]  ;;  %v1547_v27 = vsel %vm1074_vm4, %v1545_v18, %v1546_v19  ;;  %v3105_v28 = vpack.c.bf16 %v1480_v23, %v1478_v22  ;;  %v1521_v19 = vld [vmem:[#allocation8 + $0x578] sm:$0xff]  ;;  %v1518_v22 = vld [vmem:[#allocation8 + $0x560] sm:$0xff] }
 0x2a8   : > { %v3207_v46 = vpack.c.bf16 %v1765_v0, %v1763_v41  ;;  %v1493_v41 = vld [vmem:[#allocation8 + $0x498] sm:$0xff]  ;;  %v1519_v18 = vld [vmem:[#allocation8 + $0x568] sm:$0xff]  ;;  %v1520_v23 = vld [vmem:[#allocation8 + $0x570] sm:$0xff] }
 0x2a9   : > { %3202 = vmatpush1.bf16.msra.mxu1 %v3201_v32  ;;  %v1484_v32 = vld [vmem:[#allocation8 + $0x450] sm:$0xff]  ;;  %v3115_v42 = vpack.c.bf16 %v1493_v41, %v1491_v40 }
 0x2aa   : > { %3062 = vmatpush1.bf16.msra.mxu0 %v3061_v47  ;;  %3204 = vmatprep.subr.bf16.mxu1 %v3203_v36  ;;  %v1762_v47 = vld [vmem:[#allocation10 + $0x360] sm:$0xff]  ;;  %v3109_v36 = vpack.c.bf16 %v1484_v32, %v1482_v30  ;;  %v1527_v30 = vld [vmem:[#allocation8 + $0x5a8] sm:$0xff]  ;;  %v1529_v32 = vld [vmem:[#allocation8 + $0x5b8] sm:$0xff] }
 0x2ab   : > { %3064 = vmatprep.subr.bf16.mxu0 %v3063_v52  ;;  %v1235_v52 = vld [vmem:[#allocation8 + $0x1a8] sm:$0xff]  ;;  %v3209_v54 = vpack.c.bf16 %v1764_v48, %v1762_v47 }
 0x2ac   : > { %v3087_v56 = vpack.c.bf16 %v1237_v53, %v1235_v52  ;;  %v1501_v52 = vld [vmem:[#allocation8 + $0x4d8] sm:$0xff] }
 0x2ad   : > { %3206 = vmatpush1.bf16.msra.mxu1 %v3205_v44  ;;  %v1492_v44 = vld [vmem:[#allocation8 + $0x490] sm:$0xff] }
 0x2ae   : > { %3066 = vmatpush1.bf16.msra.mxu0 %v3065_v59  ;;  %3208 = vmatprep.subr.bf16.mxu1 %v3207_v46  ;;  %v1239_v59 = vld [vmem:[#allocation8 + $0x1c8] sm:$0xff]  ;;  %v1497_v46 = vld [vmem:[#allocation8 + $0x4b8] sm:$0xff]  ;;  %v3117_v47 = vpack.c.bf16 %v1492_v44, %v1490_v43 }
 0x2af   : > { %3068 = vmatprep.subr.bf16.mxu0 %v3067_v2  ;;  %v3091_v62 = vpack.c.bf16 %v1241_v60, %v1239_v59  ;;  %v1240_v2 = vld [vmem:[#allocation8 + $0x1d0] sm:$0xff]  ;;  %v3127_v60 = vpack.c.bf16 %v1505_v58, %v1503_v57  ;;  %v1535_v43 = vld [vmem:[#allocation8 + $0x5e8] sm:$0xff]  ;;  %v1537_v44 = vld [vmem:[#allocation8 + $0x5f8] sm:$0xff] }
 0x2b0   : > { %v3093_v5 = vpack.c.bf16 %v1240_v2, %v1238_v63  ;;  %v1507_v63 = vld [vmem:[#allocation8 + $0x508] sm:$0xff]  ;;  %v1509_v2 = vld [vmem:[#allocation8 + $0x518] sm:$0xff]  ;;  %v1766_v58 = vld [vmem:[#allocation10 + $0x380] sm:$0xff] }
 0x2b1   : > { %3210 = vmatpush1.bf16.msra.mxu1 %v3209_v54  ;;  %v3123_v54 = vpack.c.bf16 %v1501_v52, %v1499_v51  ;;  %v3131_v4 = vpack.c.bf16 %v1509_v2, %v1507_v63  ;;  %v1770_v2 = vld [vmem:[#allocation10 + $0x3a0] sm:$0xff] }
 0x2b2   : > { %3070 = vmatpush1.bf16.msra.mxu0 %v3069_v9  ;;  %v1475_v9 = vld [vmem:[#allocation8 + $0x408] sm:$0xff] }
 0x2b3   : > { %3072 = vmatprep.subr.bf16.mxu0 %v3071_v13  ;;  %v3099_v13 = vpack.c.bf16 %v1477_v10, %v1475_v9  ;;  %v3135_v10 = vpack.c.bf16 %v1513_v8, %v1511_v7  ;;  %v1774_v7 = vld [vmem:[#allocation10 + $0x3c0] sm:$0xff]  ;;  %v1776_v8 = vld [vmem:[#allocation10 + $0x3d0] sm:$0xff] }
 0x2b6   : > { %3074 = vmatpush1.bf16.msra.mxu0 %v3073_v20  ;;  %v3101_v20 = vpack.c.bf16 %v1476_v15, %v1474_v14 }
 0x2b7   : > { %3076 = vmatprep.subr.bf16.mxu0 %v3075_v25  ;;  %v1483_v25 = vld [vmem:[#allocation8 + $0x448] sm:$0xff] }
 0x2b8   : > { %v3107_v29 = vpack.c.bf16 %v1485_v26, %v1483_v25  ;;  %v1525_v25 = vld [vmem:[#allocation8 + $0x598] sm:$0xff]  ;;  %v3145_v26 = vpack.c.bf16 %v1520_v23, %v1518_v22 }
 0x2ba   : > { %3078 = vmatpush1.bf16.msra.mxu0 %v3077_v34  ;;  %v1487_v34 = vld [vmem:[#allocation8 + $0x468] sm:$0xff] }
 0x2bb   : > { %3080 = vmatprep.subr.bf16.mxu0 %v3079_v39  ;;  %v3111_v37 = vpack.c.bf16 %v1489_v35, %v1487_v34  ;;  %v1488_v39 = vld [vmem:[#allocation8 + $0x470] sm:$0xff]  ;;  %v3151_v35 = vpack.c.bf16 %v1529_v32, %v1527_v30  ;;  %v1654_v30 = vld [vmem:[#allocation10 + $0x28] sm:$0xff] }
 0x2bc   : > { %v3113_v0 = vpack.c.bf16 %v1488_v39, %v1486_v38  ;;  %v1531_v38 = vld [vmem:[#allocation8 + $0x5c8] sm:$0xff]  ;;  %v1533_v39 = vld [vmem:[#allocation8 + $0x5d8] sm:$0xff] }
 0x2bd   : > { %v3155_v41 = vpack.c.bf16 %v1533_v39, %v1531_v38 }
 0x2be   : > { %3082 = vmatpush1.bf16.msra.mxu0 %v3081_v45  ;;  %v1495_v45 = vld [vmem:[#allocation8 + $0x4a8] sm:$0xff] }
 0x2bf   : > { %3084 = vmatprep.subr.bf16.mxu0 %v3083_v49  ;;  %v3119_v48 = vpack.c.bf16 %v1497_v46, %v1495_v45  ;;  %v1494_v49 = vld [vmem:[#allocation8 + $0x4a0] sm:$0xff]  ;;  %v3159_v46 = vpack.c.bf16 %v1537_v44, %v1535_v43 }
 0x2c0   : > { %v3121_v53 = vpack.c.bf16 %v1496_v50, %v1494_v49  ;;  %v1469_v49 = vld [vmem:[#allocation4] sm:$0xfc]  ;;  %v1471_v50 = vld [vmem:[#allocation4 + $0x10] sm:$0x3] }
 0x2c1   : > { %v1542_v52 = vrot.slane %v1469_v49, 2  ;;  %v1653_v44 = vld [vmem:[#allocation10 + $0x20] sm:$0xff]  ;;  %v1660_v49 = vld [vmem:[#allocation10 + $0x58] sm:$0xff] }
 0x2c2   : > { %3086 = vmatpush1.bf16.msra.mxu0 %v3085_v55  ;;  %v1498_v55 = vld [vmem:[#allocation8 + $0x4c0] sm:$0xff] }
 0x2c3   : > { %3088 = vmatprep.subr.bf16.mxu0 %v3087_v56  ;;  %v1500_v56 = vld [vmem:[#allocation8 + $0x4d0] sm:$0xff] }
 0x2c4   : > { %v3125_v59 = vpack.c.bf16 %v1500_v56, %v1498_v55  ;;  %v1767_v55 = vld [vmem:[#allocation10 + $0x388] sm:$0xff]  ;;  %v1769_v56 = vld [vmem:[#allocation10 + $0x398] sm:$0xff] }
 0x2c5   : > { %v3211_v57 = vpack.c.bf16 %v1769_v56, %v1767_v55  ;;  %v1659_v55 = vld [vmem:[#allocation10 + $0x50] sm:$0xff] }
 0x2c6   : > { %3090 = vmatpush1.bf16.msra.mxu0 %v3089_v61  ;;  %v1502_v61 = vld [vmem:[#allocation8 + $0x4e0] sm:$0xff] }
 0x2c7   : > { %3092 = vmatprep.subr.bf16.mxu0 %v3091_v62  ;;  %v1504_v62 = vld [vmem:[#allocation8 + $0x4f0] sm:$0xff]  ;;  %3212 = vmatprep.subr.bf16.mxu1 %v3211_v57  ;;  %v2117_v57 = vld [vmem:[%s4364_s9 + $0x8] sm:$0xff] }
 0x2c8   : > { %v3129_v3 = vpack.c.bf16 %v1504_v62, %v1502_v61  ;;  %v1771_v61 = vld [vmem:[#allocation10 + $0x3a8] sm:$0xff]  ;;  %v1773_v62 = vld [vmem:[#allocation10 + $0x3b8] sm:$0xff] }
 0x2c9   : > { %v3215_v63 = vpack.c.bf16 %v1773_v62, %v1771_v61  ;;  %v2134_v61 = vld [vmem:[%s4364_s9 + $0x90] sm:$0xff]  ;;  %v2135_v62 = vld [vmem:[%s4364_s9 + $0x98] sm:$0xff] }
 0x2ca   : > { %3094 = vmatpush1.bf16.msra.mxu0 %v3093_v5  ;;  %v1506_v5 = vld [vmem:[#allocation8 + $0x500] sm:$0xff] }
 0x2cb   : > { %3096 = vmatprep.subr.bf16.mxu0 %v3095_v6  ;;  %v1508_v6 = vld [vmem:[#allocation8 + $0x510] sm:$0xff] }
 0x2cc   : > { %v3133_v9 = vpack.c.bf16 %v1508_v6, %v1506_v5  ;;  %v1777_v6 = vld [vmem:[#allocation10 + $0x3d8] sm:$0xff] }
 0x2ce   : > { %3098 = vmatpush1.bf16.msra.mxu0 %v3097_v1  ;;  %v1510_v1 = vld [vmem:[#allocation8 + $0x520] sm:$0xff] }
 0x2cf   : > { %3100 = vmatprep.subr.bf16.mxu0 %v3099_v13  ;;  %v1517_v13 = vld [vmem:[#allocation8 + $0x558] sm:$0xff]  ;;  %v3137_v14 = vpack.c.bf16 %v1512_v11, %v1510_v1  ;;  %v3221_v11 = vpack.c.bf16 %v1776_v8, %v1774_v7  ;;  %v1661_v8 = vld [vmem:[#allocation10 + $0x60] sm:$0xff] }
 0x2d0   : > { %v3139_v15 = vpack.c.bf16 %v1517_v13, %v1515_v12  ;;  %v1781_v1 = vld [vmem:[#allocation10 + $0x3f8] sm:$0xff]  ;;  %v1778_v13 = vld [vmem:[#allocation10 + $0x3e0] sm:$0xff] }
 0x2d1   : > { %1463 = vmatmul.mubr.f32.vlgmr.msra.gmra.mrb[4].mxu0 %v1180_v24  ;;  %v1523_v24 = vld [vmem:[#allocation8 + $0x588] sm:$0xff] }
 0x2d2   : > { %3102 = vmatpush1.bf16.msra.mxu0 %v3101_v20  ;;  %1614 = vmatprep.mubr.f32.mxu0 %v1547_v27  ;;  %v3141_v20 = vpack.c.bf16 %v1516_v17, %v1514_v16  ;;  %v3147_v27 = vpack.c.bf16 %v1525_v25, %v1523_v24  ;;  %v1650_v16 = vld [vmem:[#allocation10 + $0x8] sm:$0xff]  ;;  %v1652_v17 = vld [vmem:[#allocation10 + $0x18] sm:$0xff] }
 0x2d3   : > { %3104 = vmatprep.subr.bf16.mxu0 %v3103_v21  ;;  %v3143_v21 = vpack.c.bf16 %v1521_v19, %v1519_v18  ;;  %v3227_v18 = vpack.c.bf16 %v1652_v17, %v1650_v16  ;;  %v1623_v19 = vld [vmem:[%s4361_s6] sm:$0x3]  ;;  %v2138_v16 = vld [vmem:[%s4364_s9 + $0xb0] sm:$0xff]  ;;  %v2139_v17 = vld [vmem:[%s4364_s9 + $0xb8] sm:$0xff] }
 0x2d6   : > { %3106 = vmatpush1.bf16.msra.mxu0 %v3105_v28  ;;  %v1522_v28 = vld [vmem:[#allocation8 + $0x580] sm:$0xff] }
 0x2d7   : > { %3108 = vmatprep.subr.bf16.mxu0 %v3107_v29  ;;  %v1524_v29 = vld [vmem:[#allocation8 + $0x590] sm:$0xff] }
 0x2d8   : > { %v3149_v34 = vpack.c.bf16 %v1524_v29, %v1522_v28  ;;  %v1649_v28 = vld [vmem:[#allocation10] sm:$0xff]  ;;  %v1651_v29 = vld [vmem:[#allocation10 + $0x10] sm:$0xff] }
 0x2da   : > { %3110 = vmatpush1.bf16.msra.mxu0 %v3109_v36  ;;  %v1526_v36 = vld [vmem:[#allocation8 + $0x5a0] sm:$0xff] }
 0x2db   : > { %3112 = vmatprep.subr.bf16.mxu0 %v3111_v37  ;;  %v1528_v37 = vld [vmem:[#allocation8 + $0x5b0] sm:$0xff] }
 0x2dc   : > { %v3153_v40 = vpack.c.bf16 %v1528_v37, %v1526_v36 }
 0x2de   : > { %3114 = vmatpush1.bf16.msra.mxu0 %v3113_v0  ;;  %v1530_v0 = vld [vmem:[#allocation8 + $0x5c0] sm:$0xff] }
 0x2df   : > { %3116 = vmatprep.subr.bf16.mxu0 %v3115_v42  ;;  %v1532_v42 = vld [vmem:[#allocation8 + $0x5d0] sm:$0xff] }
 0x2e0   : > { %v3157_v45 = vpack.c.bf16 %v1532_v42, %v1530_v0  ;;  %v3229_v0 = vpack.c.bf16 %v1651_v29, %v1649_v28  ;;  %v1670_v28 = vld [vmem:[#allocation10 + $0xa8] sm:$0xff]  ;;  %v1672_v29 = vld [vmem:[#allocation10 + $0xb8] sm:$0xff] }
 0x2e2   : > { %3118 = vmatpush1.bf16.msra.mxu0 %v3117_v47  ;;  %v1534_v47 = vld [vmem:[#allocation8 + $0x5e0] sm:$0xff] }
 0x2e3   : > { %3120 = vmatprep.subr.bf16.mxu0 %v3119_v48  ;;  %v1536_v48 = vld [vmem:[#allocation8 + $0x5f0] sm:$0xff] }
 0x2e4   : > { %v3161_v51 = vpack.c.bf16 %v1536_v48, %v1534_v47  ;;  %v1658_v48 = vld [vmem:[#allocation10 + $0x48] sm:$0xff] }
 0x2e6   : > { %3122 = vmatpush1.bf16.msra.mxu0 %v3121_v53  ;;  %v1543_v53 = vrot.slane %v1471_v50, 2  ;;  %v2132_v50 = vld [vmem:[%s4364_s9 + $0x80] sm:$0xff] }
 0x2e7   : > { %3124 = vmatprep.subr.bf16.mxu0 %v3123_v54 }
 0x2e8   : > { %v1544_v54 = vsel %vm1074_vm4, %v1542_v52, %v1543_v53  ;;  %v2116_v52 = vld [vmem:[%s4364_s9] sm:$0xff] }
 0x2ea   : > { %3126 = vmatpush1.bf16.msra.mxu0 %v3125_v59  ;;  %v1768_v59 = vld [vmem:[#allocation10 + $0x390] sm:$0xff] }
 0x2eb   : > { %3128 = vmatprep.subr.bf16.mxu0 %v3127_v60  ;;  %v3213_v60 = vpack.c.bf16 %v1768_v59, %v1766_v58  ;;  %v3235_v58 = vpack.c.bf16 %v1660_v49, %v1658_v48  ;;  %v1662_v59 = vld [vmem:[#allocation10 + $0x68] sm:$0xff] }
 0x2ed   : > { %3214 = vmatpush1.bf16.msra.mxu1 %v3213_v60  ;;  %v3389_v60 = vpack.c.bf16 %v2117_v57, %v2116_v52  ;;  %v1682_v52 = vld [vmem:[#allocation10 + $0x108] sm:$0xff]  ;;  %v1683_v57 = vld [vmem:[#allocation10 + $0x110] sm:$0xff] }
 0x2ee   : > { %3130 = vmatpush1.bf16.msra.mxu0 %v3129_v3  ;;  %v1772_v3 = vld [vmem:[#allocation10 + $0x3b0] sm:$0xff]  ;;  %3216 = vmatprep.subr.bf16.mxu1 %v3215_v63  ;;  %v1664_v63 = vld [vmem:[#allocation10 + $0x78] sm:$0xff] }
 0x2ef   : > { %3132 = vmatprep.subr.bf16.mxu0 %v3131_v4  ;;  %v1775_v4 = vld [vmem:[#allocation10 + $0x3c8] sm:$0xff]  ;;  %v3217_v5 = vpack.c.bf16 %v1772_v3, %v1770_v2  ;;  %v3391_v2 = vpack.c.bf16 %v2135_v62, %v2134_v61  ;;  %v2118_v3 = vld [vmem:[%s4364_s9 + $0x10] sm:$0xff] }
 0x2f0   : > { %v1685_v62 = vld [vmem:[#allocation10 + $0x120] sm:$0xff] }
 0x2f1   : > { %3218 = vmatpush1.bf16.msra.mxu1 %v3217_v5 }
 0x2f2   : > { %3134 = vmatpush1.bf16.msra.mxu0 %v3133_v9  ;;  %v3219_v9 = vpack.c.bf16 %v1777_v6, %v1775_v4  ;;  %v2119_v4 = vld [vmem:[%s4364_s9 + $0x18] sm:$0xff]  ;;  %v2136_v6 = vld [vmem:[%s4364_s9 + $0xa0] sm:$0xff] }
 0x2f3   : > { %3136 = vmatprep.subr.bf16.mxu0 %v3135_v10  ;;  %v1779_v10 = vld [vmem:[#allocation10 + $0x3e8] sm:$0xff]  ;;  %v3393_v5 = vpack.c.bf16 %v2119_v4, %v2118_v3  ;;  %v1692_v3 = vld [vmem:[#allocation10 + $0x158] sm:$0xff] }
 0x2f4   : > { %3220 = vmatprep.subr.bf16.mxu1 %v3219_v9  ;;  %v3223_v12 = vpack.c.bf16 %v1781_v1, %v1779_v10  ;;  %v1663_v9 = vld [vmem:[#allocation10 + $0x70] sm:$0xff]  ;;  %v2137_v10 = vld [vmem:[%s4364_s9 + $0xa8] sm:$0xff]  ;;  %v3239_v1 = vpack.c.bf16 %v1664_v63, %v1662_v59 }
 0x2f5   : > { %3222 = vmatpush1.bf16.msra.mxu1 %v3221_v11  ;;  %v1666_v11 = vld [vmem:[#allocation10 + $0x88] sm:$0xff]  ;;  %v1688_v59 = vld [vmem:[#allocation10 + $0x138] sm:$0xff]  ;;  %v1687_v63 = vld [vmem:[#allocation10 + $0x130] sm:$0xff] }
 0x2f6   : > { %3138 = vmatpush1.bf16.msra.mxu0 %v3137_v14  ;;  %v1780_v14 = vld [vmem:[#allocation10 + $0x3f0] sm:$0xff]  ;;  %3224 = vmatprep.subr.bf16.mxu1 %v3223_v12  ;;  %v3395_v12 = vpack.c.bf16 %v2137_v10, %v2136_v6  ;;  %v3265_v4 = vpack.c.bf16 %v1687_v63, %v1685_v62  ;;  %v1689_v6 = vld [vmem:[#allocation10 + $0x140] sm:$0xff]  ;;  %v1954_v62 = vld [vmem:[#allocation10 + $0x468] sm:$0xff] }
 0x2f7   : > { %3140 = vmatprep.subr.bf16.mxu0 %v3139_v15  ;;  %v3225_v15 = vpack.c.bf16 %v1780_v14, %v1778_v13  ;;  %v2120_v13 = vld [vmem:[%s4364_s9 + $0x20] sm:$0xff]  ;;  %v2121_v14 = vld [vmem:[%s4364_s9 + $0x28] sm:$0xff] }
 0x2f8   : > { %v1956_v63 = vld [vmem:[#allocation10 + $0x478] sm:$0xff] }
 0x2f9   : > { %3226 = vmatpush1.bf16.msra.mxu1 %v3225_v15  ;;  %v1668_v15 = vld [vmem:[#allocation10 + $0x98] sm:$0xff] }
 0x2fa   : > { %3142 = vmatpush1.bf16.msra.mxu0 %v3141_v20  ;;  %3228 = vmatprep.subr.bf16.mxu1 %v3227_v18  ;;  %v1628_v20 = vrot.slane %v1623_v19, %v3976_v31  ;;  %v3397_v18 = vpack.c.bf16 %v2121_v14, %v2120_v13  ;;  %v1698_v13 = vld [vmem:[#allocation10 + $0x188] sm:$0xff]  ;;  %v1700_v14 = vld [vmem:[#allocation10 + $0x198] sm:$0xff] }
 0x2fb   : > { %3144 = vmatprep.subr.bf16.mxu0 %v3143_v21  ;;  %v1632_v21 = vrot.slane %v1623_v19, %v3981_v33  ;;  %v3241_v19 = vpack.c.bf16 %v1663_v9, %v1661_v8  ;;  %v1694_v8 = vld [vmem:[#allocation10 + $0x168] sm:$0xff]  ;;  %v1696_v9 = vld [vmem:[#allocation10 + $0x178] sm:$0xff] }
 0x2fe   : > { %3146 = vmatpush1.bf16.msra.mxu0 %v3145_v26 }
 0x2ff   : > { %3148 = vmatprep.subr.bf16.mxu0 %v3147_v27 }
 0x302   : > { %3150 = vmatpush1.bf16.msra.mxu0 %v3149_v34 }
 0x303   : > { %3152 = vmatprep.subr.bf16.mxu0 %v3151_v35  ;;  %v1656_v35 = vld [vmem:[#allocation10 + $0x38] sm:$0xff] }
 0x304   : > { %v3231_v43 = vpack.c.bf16 %v1656_v35, %v1654_v30  ;;  %v2124_v35 = vld [vmem:[%s4364_s9 + $0x40] sm:$0xff] }
 0x306   : > { %3154 = vmatpush1.bf16.msra.mxu0 %v3153_v40 }
 0x307   : > { %3156 = vmatprep.subr.bf16.mxu0 %v3155_v41 }
 0x30a   : > { %3158 = vmatpush1.bf16.msra.mxu0 %v3157_v45  ;;  %v1655_v45 = vld [vmem:[#allocation10 + $0x30] sm:$0xff] }
 0x30b   : > { %3160 = vmatprep.subr.bf16.mxu0 %v3159_v46  ;;  %v3233_v53 = vpack.c.bf16 %v1655_v45, %v1653_v44  ;;  %v1673_v44 = vld [vmem:[#allocation10 + $0xc0] sm:$0xff]  ;;  %v1675_v45 = vld [vmem:[#allocation10 + $0xd0] sm:$0xff] }
 0x30c   : > { %v3253_v48 = vpack.c.bf16 %v1675_v45, %v1673_v44  ;;  %v1941_v44 = vld [vmem:[#allocation10 + $0x400] sm:$0xff]  ;;  %v1943_v45 = vld [vmem:[#allocation10 + $0x410] sm:$0xff] }
 0x30e   : > { %3162 = vmatpush1.bf16.msra.mxu0 %v3161_v51  ;;  %v2133_v51 = vld [vmem:[%s4364_s9 + $0x88] sm:$0xff] }
 0x30f   : > { %v3387_v56 = vpack.c.bf16 %v2133_v51, %v2132_v50  ;;  %v1677_v50 = vld [vmem:[#allocation10 + $0xe0] sm:$0xff]  ;;  %v1679_v51 = vld [vmem:[#allocation10 + $0xf0] sm:$0xff] }
 0x311   : > { %1615 = vmatmul.mubr.f32.vlgmr.msra.gmra.mrb[4].mxu0 %v1544_v54  ;;  %v1657_v54 = vld [vmem:[#allocation10 + $0x40] sm:$0xff]  ;;  %3388 = vmatprep.subr.bf16.mxu0 %v3387_v56 }
 0x312   : > { %3390 = vmatpush3.bf16.msra.mxu0 %v3389_v60  ;;  %v3237_v7 = vpack.c.bf16 %v1659_v55, %v1657_v54  ;;  %v3257_v54 = vpack.c.bf16 %v1679_v51, %v1677_v50  ;;  %v1681_v56 = vld [vmem:[#allocation10 + $0x100] sm:$0xff]  ;;  %v3293_v50 = vpack.c.bf16 %v1943_v45, %v1941_v44 }
 0x313   : > { %3392 = vmatprep.subr.bf16.mxu0 %v3391_v2  ;;  %v3261_v60 = vpack.c.bf16 %v1683_v57, %v1681_v56  ;;  %v1690_v2 = vld [vmem:[#allocation10 + $0x148] sm:$0xff]  ;;  %v1952_v56 = vld [vmem:[#allocation10 + $0x458] sm:$0xff] }
 0x316   : > { %3394 = vmatpush3.bf16.msra.mxu0 %v3393_v5  ;;  %v3267_v5 = vpack.c.bf16 %v1692_v3, %v1690_v2  ;;  %v3303_v3 = vpack.c.bf16 %v1956_v63, %v1954_v62 }
 0x317   : > { %3396 = vmatprep.subr.bf16.mxu0 %v3395_v12  ;;  %v1695_v12 = vld [vmem:[#allocation10 + $0x170] sm:$0xff] }
 0x31a   : > { %3398 = vmatpush3.bf16.msra.mxu0 %v3397_v18  ;;  %v1699_v18 = vld [vmem:[#allocation10 + $0x190] sm:$0xff] }
 0x3e4   : > { %v1616_v22 = vpop.f32.mrb[4].mxu0 }
 0x3e5   : > { %v1635_v23 = vadd.f32 %v1628_v20, %v1616_v22  ;;  %v1618_v24 = vpop.f32.mrb[5].mxu0  ;;  %v1665_v20 = vld [vmem:[#allocation10 + $0x80] sm:$0xff] }
 0x3e6   : > { %v1636_v25 = vadd.f32 %v1632_v21, %v1618_v24  ;;  %v3399_v21 = vpack.c.bf16 %v2139_v17, %v2138_v16  ;;  %v2122_v22 = vld [vmem:[%s4364_s9 + $0x30] sm:$0xff]  ;;  %v3243_v24 = vpack.c.bf16 %v1668_v15, %v1666_v11  ;;  %v3275_v16 = vpack.c.bf16 %v1700_v14, %v1698_v13 }
 0x3e7   : > { %v1639_v26 = vrot.slane %v1635_v23, 7  ;;  %v2123_v23 = vld [vmem:[%s4364_s9 + $0x38] sm:$0xff]  ;;  %v1693_v11 = vld [vmem:[#allocation10 + $0x160] sm:$0xff] }
 0x3e8   : > { %v1640_v27 = vrot.slane %v1636_v25, 7  ;;  %v1667_v25 = vld [vmem:[#allocation10 + $0x90] sm:$0xff]  ;;  %v3401_v30 = vpack.c.bf16 %v2123_v23, %v2122_v22  ;;  %3400 = vmatprep.subr.bf16.mxu0 %v3399_v21  ;;  %v3273_v15 = vpack.c.bf16 %v1695_v12, %v1693_v11  ;;  %v1697_v17 = vld [vmem:[#allocation10 + $0x180] sm:$0xff]  ;;  %v1962_v11 = vld [vmem:[#allocation10 + $0x4a8] sm:$0xff] }
 0x3e9   : > { %1643 = vst [vmem:[#allocation3] sm:$0xfe] %v1639_v26  ;;  %1645 = vst [vmem:[#allocation3 + $0x10] sm:$0x1] %v1639_v26  ;;  %v2140_v26 = vld [vmem:[%s4364_s9 + $0xc0] sm:$0xff]  ;;  %v3277_v21 = vpack.c.bf16 %v1699_v18, %v1697_v17  ;;  %v1701_v23 = vld [vmem:[#allocation10 + $0x1a0] sm:$0xff] }
 0x3ea   : > { %1644 = vst [vmem:[#allocation3 + $0x8] sm:$0xfe] %v1640_v27  ;;  %1646 = vst [vmem:[#allocation3 + $0x18] sm:$0x1] %v1640_v27  ;;  %v2141_v27 = vld [vmem:[%s4364_s9 + $0xc8] sm:$0xff]  ;;  %3402 = vmatpush3.bf16.msra.mxu0 %v3401_v30  ;;  %v1707_v30 = vld [vmem:[#allocation10 + $0x1d0] sm:$0xff] }
 0x3eb   : > { %v1964_v12 = vld [vmem:[#allocation10 + $0x4b8] sm:$0xff]  ;;  %v1966_v17 = vld [vmem:[#allocation10 + $0x4c8] sm:$0xff] }
 0x3ec   : > { %v3311_v14 = vpack.c.bf16 %v1964_v12, %v1962_v11  ;;  %v1968_v18 = vld [vmem:[#allocation10 + $0x4d8] sm:$0xff] }
 0x3f0   : > { %v1713_v32 = vld [vmem:[#allocation3] sm:$0xfe]  ;;  %v1715_v34 = vld [vmem:[#allocation3 + $0x10] sm:$0x1] }
 0x3f1   : > { %v1714_v36 = vld [vmem:[#allocation3 + $0x8] sm:$0xfe]  ;;  %v1716_v37 = vld [vmem:[#allocation3 + $0x18] sm:$0x1]  ;;  %v1786_v38 = vrot.slane %v1713_v32, 1  ;;  %v1787_v39 = vrot.slane %v1715_v34, 1  ;;  %v3245_v32 = vpack.c.bf16 %v1667_v25, %v1665_v20  ;;  %v3403_v34 = vpack.c.bf16 %v2141_v27, %v2140_v26 }
 0x3f2   : > { %v1789_v40 = vrot.slane %v1714_v36, 1  ;;  %v1790_v41 = vrot.slane %v1716_v37, 1  ;;  %v1648_v47 = vld [vmem:[#allocation3 + $0x8] sm:$0xff]  ;;  %v2125_v36 = vld [vmem:[%s4364_s9 + $0x48] sm:$0xff]  ;;  %v3247_v37 = vpack.c.bf16 %v1672_v29, %v1670_v28  ;;  %v1705_v29 = vld [vmem:[#allocation10 + $0x1c0] sm:$0xff] }
 0x3f3   : > { %v1788_v46 = vsel %vm850_vm3, %v1786_v38, %v1787_v39  ;;  %v1669_v38 = vld [vmem:[#allocation10 + $0xa0] sm:$0xff]  ;;  %v1671_v39 = vld [vmem:[#allocation10 + $0xb0] sm:$0xff]  ;;  %3404 = vmatprep.subr.bf16.mxu0 %v3403_v34  ;;  %v1704_v20 = vld [vmem:[#allocation10 + $0x1b8] sm:$0xff] }
 0x3f4   : > { %v1791_v42 = vsel %vm850_vm3, %v1789_v40, %v1790_v41  ;;  %v1674_v40 = vld [vmem:[#allocation10 + $0xc8] sm:$0xff]  ;;  %v1676_v41 = vld [vmem:[#allocation10 + $0xd8] sm:$0xff] }
 0x3f5   : > { %1858 = vmatprep.mubr.f32.mxu1 %v1791_v42  ;;  %v3249_v42 = vpack.c.bf16 %v1671_v39, %v1669_v38  ;;  %v1706_v25 = vld [vmem:[#allocation10 + $0x1c8] sm:$0xff]  ;;  %v1708_v26 = vld [vmem:[#allocation10 + $0x1d8] sm:$0xff]  ;;  %v1711_v38 = vld [vmem:[#allocation10 + $0x1f0] sm:$0xff] }
 0x3f6   : > { %1859 = vmatmul.mubr.f32.vlgmr.msra.gmra.mrb[2].mxu1 %v1788_v46  ;;  %v1678_v46 = vld [vmem:[#allocation10 + $0xe8] sm:$0xff]  ;;  %v3283_v28 = vpack.c.bf16 %v1708_v26, %v1706_v25  ;;  %v1712_v34 = vld [vmem:[#allocation10 + $0x1f8] sm:$0xff] }
 0x3f7   : > { %3230 = vmatpush1.bf16.msra.mxu1 %v3229_v0  ;;  %1929 = vmatprep.mubr.f32.mxu1 %v1648_v47  ;;  %v3405_v0 = vpack.c.bf16 %v2125_v36, %v2124_v35  ;;  %v1680_v47 = vld [vmem:[#allocation10 + $0xf8] sm:$0xff]  ;;  %v3285_v35 = vpack.c.bf16 %v1707_v30, %v1705_v29  ;;  %v1942_v39 = vld [vmem:[#allocation10 + $0x408] sm:$0xff] }
 0x3f8   : > { %3232 = vmatprep.subr.bf16.mxu1 %v3231_v43  ;;  %v3251_v43 = vpack.c.bf16 %v1676_v41, %v1674_v40  ;;  %v3255_v49 = vpack.c.bf16 %v1680_v47, %v1678_v46  ;;  %v1944_v40 = vld [vmem:[#allocation10 + $0x418] sm:$0xff]  ;;  %v1946_v46 = vld [vmem:[#allocation10 + $0x428] sm:$0xff] }
 0x3f9   : > { %3406 = vmatpush3.bf16.msra.mxu0 %v3405_v0  ;;  %v1937_v0 = vld [vmem:[#allocation3 + $0x8] sm:$0xfc]  ;;  %v1948_v47 = vld [vmem:[#allocation10 + $0x438] sm:$0xff] }
 0x3fa   : > { %v3295_v51 = vpack.c.bf16 %v1948_v47, %v1946_v46  ;;  %v1974_v29 = vld [vmem:[#allocation10 + $0x508] sm:$0xff]  ;;  %v1976_v30 = vld [vmem:[#allocation10 + $0x518] sm:$0xff]  ;;  %v1981_v46 = vld [vmem:[#allocation10 + $0x540] sm:$0xff] }
 0x3fb   : > { %3234 = vmatpush1.bf16.msra.mxu1 %v3233_v53  ;;  %v1684_v53 = vld [vmem:[#allocation10 + $0x118] sm:$0xff]  ;;  %v1983_v47 = vld [vmem:[#allocation10 + $0x550] sm:$0xff] }
 0x3fc   : > { %3236 = vmatprep.subr.bf16.mxu1 %v3235_v58  ;;  %v3259_v55 = vpack.c.bf16 %v1684_v53, %v1682_v52  ;;  %v1686_v58 = vld [vmem:[#allocation10 + $0x128] sm:$0xff]  ;;  %v1945_v52 = vld [vmem:[#allocation10 + $0x420] sm:$0xff]  ;;  %v1947_v53 = vld [vmem:[#allocation10 + $0x430] sm:$0xff] }
 0x3fd   : > { %v3263_v61 = vpack.c.bf16 %v1688_v59, %v1686_v58  ;;  %v3297_v58 = vpack.c.bf16 %v1947_v53, %v1945_v52  ;;  %v1985_v52 = vld [vmem:[#allocation10 + $0x560] sm:$0xff]  ;;  %v1987_v53 = vld [vmem:[#allocation10 + $0x570] sm:$0xff] }
 0x3ff   : > { %3238 = vmatpush1.bf16.msra.mxu1 %v3237_v7  ;;  %v1691_v7 = vld [vmem:[#allocation10 + $0x150] sm:$0xff] }
 0x400   : > { %3240 = vmatprep.subr.bf16.mxu1 %v3239_v1  ;;  %v3269_v10 = vpack.c.bf16 %v1691_v7, %v1689_v6  ;;  %v3271_v1 = vpack.c.bf16 %v1696_v9, %v1694_v8  ;;  %v1958_v6 = vld [vmem:[#allocation10 + $0x488] sm:$0xff]  ;;  %v1960_v7 = vld [vmem:[#allocation10 + $0x498] sm:$0xff] }
 0x401   : > { %v3307_v9 = vpack.c.bf16 %v1960_v7, %v1958_v6 }
 0x403   : > { %3242 = vmatpush1.bf16.msra.mxu1 %v3241_v19  ;;  %v1702_v19 = vld [vmem:[#allocation10 + $0x1a8] sm:$0xff] }
 0x404   : > { %3244 = vmatprep.subr.bf16.mxu1 %v3243_v24  ;;  %v3279_v22 = vpack.c.bf16 %v1704_v20, %v1702_v19  ;;  %v1703_v24 = vld [vmem:[#allocation10 + $0x1b0] sm:$0xff]  ;;  %v3315_v20 = vpack.c.bf16 %v1968_v18, %v1966_v17  ;;  %v1936_v17 = vld [vmem:[#allocation3] sm:$0xfc] }
 0x405   : > { %v3281_v27 = vpack.c.bf16 %v1703_v24, %v1701_v23  ;;  %v1970_v23 = vld [vmem:[#allocation10 + $0x4e8] sm:$0xff]  ;;  %v1972_v24 = vld [vmem:[#allocation10 + $0x4f8] sm:$0xff]  ;;  %v1938_v18 = vld [vmem:[#allocation3 + $0x10] sm:$0x3] }
 0x406   : > { %v3319_v26 = vpack.c.bf16 %v1972_v24, %v1970_v23  ;;  %v2009_v23 = vrot.slane %v1936_v17, 2  ;;  %v2010_v24 = vrot.slane %v1938_v18, 2  ;;  %v2131_v17 = vld [vmem:[%s4364_s9 + $0x78] sm:$0xff]  ;;  %v2623_v18 = vld [vmem:[%s4364_s9 + $0x1f0] sm:$0xff] }
 0x407   : > { %3246 = vmatpush1.bf16.msra.mxu1 %v3245_v32  ;;  %v1710_v32 = vld [vmem:[#allocation10 + $0x1e8] sm:$0xff] }
 0x408   : > { %3248 = vmatprep.subr.bf16.mxu1 %v3247_v37  ;;  %v3287_v36 = vpack.c.bf16 %v1712_v34, %v1710_v32  ;;  %v1709_v37 = vld [vmem:[#allocation10 + $0x1e0] sm:$0xff]  ;;  %v3323_v34 = vpack.c.bf16 %v1976_v30, %v1974_v29  ;;  %v2596_v30 = vld [vmem:[%s4364_s9 + $0x118] sm:$0xff] }
 0x409   : > { %v3289_v41 = vpack.c.bf16 %v1711_v38, %v1709_v37  ;;  %v1978_v37 = vld [vmem:[#allocation10 + $0x528] sm:$0xff]  ;;  %v1980_v38 = vld [vmem:[#allocation10 + $0x538] sm:$0xff]  ;;  %v2595_v29 = vld [vmem:[%s4364_s9 + $0x110] sm:$0xff] }
 0x40b   : > { %3250 = vmatpush1.bf16.msra.mxu1 %v3249_v42  ;;  %v1939_v42 = vld [vmem:[#allocation3 + $0x18] sm:$0x3] }
 0x40c   : > { %3252 = vmatprep.subr.bf16.mxu1 %v3251_v43  ;;  %v3291_v43 = vpack.c.bf16 %v1944_v40, %v1942_v39  ;;  %v3327_v40 = vpack.c.bf16 %v1980_v38, %v1978_v37  ;;  %v2597_v38 = vld [vmem:[%s4364_s9 + $0x120] sm:$0xff] }
 0x40f   : > { %3254 = vmatpush1.bf16.msra.mxu1 %v3253_v48  ;;  %v2012_v48 = vrot.slane %v1937_v0, 2  ;;  %v1979_v0 = vld [vmem:[#allocation10 + $0x530] sm:$0xff] }
 0x410   : > { %3256 = vmatprep.subr.bf16.mxu1 %v3255_v49  ;;  %v2013_v49 = vrot.slane %v1939_v42, 2  ;;  %v1982_v42 = vld [vmem:[#allocation10 + $0x548] sm:$0xff] }
 0x412   : > { %v2014_v57 = vsel %vm1074_vm4, %v2012_v48, %v2013_v49  ;;  %v1986_v48 = vld [vmem:[#allocation10 + $0x568] sm:$0xff]  ;;  %v1988_v49 = vld [vmem:[#allocation10 + $0x578] sm:$0xff] }
 0x413   : > { %3258 = vmatpush1.bf16.msra.mxu1 %v3257_v54  ;;  %v1647_v54 = vld [vmem:[#allocation3] sm:$0xff] }
 0x414   : > { %3260 = vmatprep.subr.bf16.mxu1 %v3259_v55  ;;  %v1950_v55 = vld [vmem:[#allocation10 + $0x448] sm:$0xff] }
 0x415   : > { %v3299_v59 = vpack.c.bf16 %v1952_v56, %v1950_v55  ;;  %v1992_v55 = vld [vmem:[#allocation10 + $0x598] sm:$0xff]  ;;  %v3337_v56 = vpack.c.bf16 %v1987_v53, %v1985_v52 }
 0x416   : > { %v2602_v52 = vld [vmem:[%s4364_s9 + $0x148] sm:$0xff] }
 0x417   : > { %3262 = vmatpush1.bf16.msra.mxu1 %v3261_v60  ;;  %v1949_v60 = vld [vmem:[#allocation10 + $0x440] sm:$0xff] }
 0x418   : > { %3264 = vmatprep.subr.bf16.mxu1 %v3263_v61  ;;  %v1951_v61 = vld [vmem:[#allocation10 + $0x450] sm:$0xff] }
 0x419   : > { %v3301_v2 = vpack.c.bf16 %v1951_v61, %v1949_v60  ;;  %v1994_v60 = vld [vmem:[#allocation10 + $0x5a8] sm:$0xff]  ;;  %v1996_v61 = vld [vmem:[#allocation10 + $0x5b8] sm:$0xff] }
 0x41a   : > { %v3343_v63 = vpack.c.bf16 %v1996_v61, %v1994_v60  ;;  %v2144_v60 = vld [vmem:[%s4364_s9 + $0xe0] sm:$0xff] }
 0x41b   : > { %3266 = vmatpush1.bf16.msra.mxu1 %v3265_v4  ;;  %v1953_v4 = vld [vmem:[#allocation10 + $0x460] sm:$0xff] }
 0x41c   : > { %3268 = vmatprep.subr.bf16.mxu1 %v3267_v5  ;;  %v1955_v5 = vld [vmem:[#allocation10 + $0x470] sm:$0xff] }
 0x41d   : > { %v3305_v8 = vpack.c.bf16 %v1955_v5, %v1953_v4  ;;  %v1998_v4 = vld [vmem:[#allocation10 + $0x5c8] sm:$0xff]  ;;  %v2000_v5 = vld [vmem:[#allocation10 + $0x5d8] sm:$0xff] }
 0x41e   : > { %v3347_v7 = vpack.c.bf16 %v2000_v5, %v1998_v4  ;;  %v2128_v5 = vld [vmem:[%s4364_s9 + $0x60] sm:$0xff] }
 0x41f   : > { %3270 = vmatpush1.bf16.msra.mxu1 %v3269_v10  ;;  %v1957_v10 = vld [vmem:[#allocation10 + $0x480] sm:$0xff] }
 0x420   : > { %3272 = vmatprep.subr.bf16.mxu1 %v3271_v1  ;;  %v1959_v1 = vld [vmem:[#allocation10 + $0x490] sm:$0xff] }
 0x421   : > { %v3309_v13 = vpack.c.bf16 %v1959_v1, %v1957_v10  ;;  %v2002_v10 = vld [vmem:[#allocation10 + $0x5e8] sm:$0xff]  ;;  %v2004_v1 = vld [vmem:[#allocation10 + $0x5f8] sm:$0xff] }
 0x422   : > { %v3351_v12 = vpack.c.bf16 %v2004_v1, %v2002_v10  ;;  %v2146_v10 = vld [vmem:[%s4364_s9 + $0xf0] sm:$0xff]  ;;  %v2147_v1 = vld [vmem:[%s4364_s9 + $0xf8] sm:$0xff] }
 0x423   : > { %3274 = vmatpush1.bf16.msra.mxu1 %v3273_v15  ;;  %v1961_v15 = vld [vmem:[#allocation10 + $0x4a0] sm:$0xff] }
 0x424   : > { %3276 = vmatprep.subr.bf16.mxu1 %v3275_v16  ;;  %v1963_v16 = vld [vmem:[#allocation10 + $0x4b0] sm:$0xff] }
 0x425   : > { %v3313_v19 = vpack.c.bf16 %v1963_v16, %v1961_v15  ;;  %v2609_v15 = vld [vmem:[%s4364_s9 + $0x180] sm:$0xff]  ;;  %v2610_v16 = vld [vmem:[%s4364_s9 + $0x188] sm:$0xff] }
 0x427   : > { %3278 = vmatpush1.bf16.msra.mxu1 %v3277_v21  ;;  %v1965_v21 = vld [vmem:[#allocation10 + $0x4c0] sm:$0xff] }
 0x428   : > { %3280 = vmatprep.subr.bf16.mxu1 %v3279_v22  ;;  %v1967_v22 = vld [vmem:[#allocation10 + $0x4d0] sm:$0xff] }
 0x429   : > { %v3317_v25 = vpack.c.bf16 %v1967_v22, %v1965_v21  ;;  %v2593_v21 = vld [vmem:[%s4364_s9 + $0x100] sm:$0xff]  ;;  %v2594_v22 = vld [vmem:[%s4364_s9 + $0x108] sm:$0xff] }
 0x42b   : > { %3282 = vmatpush1.bf16.msra.mxu1 %v3281_v27  ;;  %v1969_v27 = vld [vmem:[#allocation10 + $0x4e0] sm:$0xff] }
 0x42c   : > { %3284 = vmatprep.subr.bf16.mxu1 %v3283_v28  ;;  %v1971_v28 = vld [vmem:[#allocation10 + $0x4f0] sm:$0xff] }
 0x42d   : > { %v3321_v32 = vpack.c.bf16 %v1971_v28, %v1969_v27  ;;  %v3357_v27 = vpack.c.bf16 %v2594_v22, %v2593_v21  ;;  %v2641_v22 = vld [vmem:[%s4364_s9 + $0x280] sm:$0xff] }
 0x42f   : > { %3286 = vmatpush1.bf16.msra.mxu1 %v3285_v35  ;;  %v1973_v35 = vld [vmem:[#allocation10 + $0x500] sm:$0xff] }
 0x430   : > { %3288 = vmatprep.subr.bf16.mxu1 %v3287_v36  ;;  %v1975_v36 = vld [vmem:[#allocation10 + $0x510] sm:$0xff] }
 0x431   : > { %v3325_v39 = vpack.c.bf16 %v1975_v36, %v1973_v35  ;;  %v2614_v35 = vld [vmem:[%s4364_s9 + $0x1a8] sm:$0xff]  ;;  %v3361_v36 = vpack.c.bf16 %v2596_v30, %v2595_v29 }
 0x433   : > { %3290 = vmatpush1.bf16.msra.mxu1 %v3289_v41  ;;  %v1977_v41 = vld [vmem:[#allocation10 + $0x520] sm:$0xff] }
 0x434   : > { %3292 = vmatprep.subr.bf16.mxu1 %v3291_v43  ;;  %v1984_v43 = vld [vmem:[#allocation10 + $0x558] sm:$0xff]  ;;  %v3329_v44 = vpack.c.bf16 %v1979_v0, %v1977_v41  ;;  %v2616_v41 = vld [vmem:[%s4364_s9 + $0x1b8] sm:$0xff] }
 0x435   : > { %v3331_v45 = vpack.c.bf16 %v1984_v43, %v1982_v42  ;;  %v2599_v43 = vld [vmem:[%s4364_s9 + $0x130] sm:$0xff] }
 0x436   : > { %1930 = vmatmul.mubr.f32.vlgmr.msra.gmra.mrb[2].mxu1 %v1647_v54  ;;  %v1990_v54 = vld [vmem:[#allocation10 + $0x588] sm:$0xff] }
 0x437   : > { %3294 = vmatpush1.bf16.msra.mxu1 %v3293_v50  ;;  %2081 = vmatprep.mubr.f32.mxu1 %v2014_v57  ;;  %v3333_v50 = vpack.c.bf16 %v1983_v47, %v1981_v46  ;;  %v3339_v57 = vpack.c.bf16 %v1992_v55, %v1990_v54  ;;  %v2617_v46 = vld [vmem:[%s4364_s9 + $0x1c0] sm:$0xff]  ;;  %v2618_v47 = vld [vmem:[%s4364_s9 + $0x1c8] sm:$0xff]  ;;  %v2126_v55 = vld [vmem:[%s4364_s9 + $0x50] sm:$0xff] }
 0x438   : > { %3296 = vmatprep.subr.bf16.mxu1 %v3295_v51  ;;  %v3335_v51 = vpack.c.bf16 %v1988_v49, %v1986_v48  ;;  %v2142_v48 = vld [vmem:[%s4364_s9 + $0xd0] sm:$0xff]  ;;  %v3371_v49 = vpack.c.bf16 %v2618_v47, %v2617_v46  ;;  %v2645_v46 = vld [vmem:[%s4364_s9 + $0x2a0] sm:$0xff]  ;;  %v2646_v47 = vld [vmem:[%s4364_s9 + $0x2a8] sm:$0xff] }
 0x43b   : > { %3298 = vmatpush1.bf16.msra.mxu1 %v3297_v58  ;;  %v1989_v58 = vld [vmem:[#allocation10 + $0x580] sm:$0xff] }
 0x43c   : > { %3300 = vmatprep.subr.bf16.mxu1 %v3299_v59  ;;  %v1991_v59 = vld [vmem:[#allocation10 + $0x590] sm:$0xff] }
 0x43d   : > { %v3341_v62 = vpack.c.bf16 %v1991_v59, %v1989_v58  ;;  %v2619_v58 = vld [vmem:[%s4364_s9 + $0x1d0] sm:$0xff]  ;;  %v2620_v59 = vld [vmem:[%s4364_s9 + $0x1d8] sm:$0xff] }
 0x43e   : > { %v3375_v61 = vpack.c.bf16 %v2620_v59, %v2619_v58 }
 0x43f   : > { %3302 = vmatpush1.bf16.msra.mxu1 %v3301_v2  ;;  %v1993_v2 = vld [vmem:[#allocation10 + $0x5a0] sm:$0xff] }
 0x440   : > { %3304 = vmatprep.subr.bf16.mxu1 %v3303_v3  ;;  %v1995_v3 = vld [vmem:[#allocation10 + $0x5b0] sm:$0xff] }
 0x441   : > { %v3345_v6 = vpack.c.bf16 %v1995_v3, %v1993_v2  ;;  %v2604_v2 = vld [vmem:[%s4364_s9 + $0x158] sm:$0xff] }
 0x443   : > { %3306 = vmatpush1.bf16.msra.mxu1 %v3305_v8  ;;  %v1997_v8 = vld [vmem:[#allocation10 + $0x5c0] sm:$0xff] }
 0x444   : > { %3308 = vmatprep.subr.bf16.mxu1 %v3307_v9  ;;  %v1999_v9 = vld [vmem:[#allocation10 + $0x5d0] sm:$0xff] }
 0x445   : > { %v3349_v11 = vpack.c.bf16 %v1999_v9, %v1997_v8  ;;  %v2622_v9 = vld [vmem:[%s4364_s9 + $0x1e8] sm:$0xff] }
 0x447   : > { %3310 = vmatpush1.bf16.msra.mxu1 %v3309_v13  ;;  %v2001_v13 = vld [vmem:[#allocation10 + $0x5e0] sm:$0xff] }
 0x448   : > { %3312 = vmatprep.subr.bf16.mxu1 %v3311_v14  ;;  %v2003_v14 = vld [vmem:[#allocation10 + $0x5f0] sm:$0xff] }
 0x44b   : > { %3314 = vmatpush1.bf16.msra.mxu1 %v3313_v19  ;;  %v3353_v19 = vpack.c.bf16 %v2003_v14, %v2001_v13  ;;  %v2605_v13 = vld [vmem:[%s4364_s9 + $0x160] sm:$0xff]  ;;  %v2606_v14 = vld [vmem:[%s4364_s9 + $0x168] sm:$0xff] }
 0x44c   : > { %3316 = vmatprep.subr.bf16.mxu1 %v3315_v20  ;;  %v3355_v20 = vpack.c.bf16 %v2610_v16, %v2609_v15  ;;  %v2130_v15 = vld [vmem:[%s4364_s9 + $0x70] sm:$0xff]  ;;  %v3381_v16 = vpack.c.bf16 %v2606_v14, %v2605_v13  ;;  %v2633_v14 = vld [vmem:[%s4364_s9 + $0x240] sm:$0xff] }
 0x44f   : > { %3318 = vmatpush1.bf16.msra.mxu1 %v3317_v25  ;;  %v2611_v25 = vld [vmem:[%s4364_s9 + $0x190] sm:$0xff] }
 0x450   : > { %3320 = vmatprep.subr.bf16.mxu1 %v3319_v26  ;;  %v2612_v26 = vld [vmem:[%s4364_s9 + $0x198] sm:$0xff] }
 0x451   : > { %v3359_v28 = vpack.c.bf16 %v2612_v26, %v2611_v25  ;;  %v2608_v26 = vld [vmem:[%s4364_s9 + $0x178] sm:$0xff] }
 0x453   : > { %3322 = vmatpush1.bf16.msra.mxu1 %v3321_v32  ;;  %v2011_v32 = vsel %vm1074_vm4, %v2009_v23, %v2010_v24  ;;  %v2642_v23 = vld [vmem:[%s4364_s9 + $0x288] sm:$0xff]  ;;  %v2607_v24 = vld [vmem:[%s4364_s9 + $0x170] sm:$0xff] }
 0x454   : > { %3324 = vmatprep.subr.bf16.mxu1 %v3323_v34  ;;  %v2613_v34 = vld [vmem:[%s4364_s9 + $0x1a0] sm:$0xff]  ;;  %v3419_v25 = vpack.c.bf16 %v2642_v23, %v2641_v22  ;;  %v2654_v23 = vld [vmem:[%s4364_s9 + $0x2e8] sm:$0xff] }
 0x455   : > { %v3363_v37 = vpack.c.bf16 %v2614_v35, %v2613_v34  ;;  %v2653_v22 = vld [vmem:[%s4364_s9 + $0x2e0] sm:$0xff] }
 0x457   : > { %3326 = vmatpush1.bf16.msra.mxu1 %v3325_v39  ;;  %v2598_v39 = vld [vmem:[%s4364_s9 + $0x128] sm:$0xff] }
 0x458   : > { %3328 = vmatprep.subr.bf16.mxu1 %v3327_v40  ;;  %v2615_v40 = vld [vmem:[%s4364_s9 + $0x1b0] sm:$0xff]  ;;  %v3365_v0 = vpack.c.bf16 %v2598_v39, %v2597_v38  ;;  %v2625_v39 = vld [vmem:[%s4364_s9 + $0x200] sm:$0xff] }
 0x459   : > { %v3367_v42 = vpack.c.bf16 %v2616_v41, %v2615_v40  ;;  %v2644_v40 = vld [vmem:[%s4364_s9 + $0x298] sm:$0xff]  ;;  %v2627_v41 = vld [vmem:[%s4364_s9 + $0x210] sm:$0xff] }
 0x45b   : > { %3330 = vmatpush1.bf16.msra.mxu1 %v3329_v44  ;;  %v2600_v44 = vld [vmem:[%s4364_s9 + $0x138] sm:$0xff] }
 0x45c   : > { %3332 = vmatprep.subr.bf16.mxu1 %v3331_v45  ;;  %v3369_v45 = vpack.c.bf16 %v2600_v44, %v2599_v43 }
 0x45f   : > { %3334 = vmatpush1.bf16.msra.mxu1 %v3333_v50  ;;  %v2143_v50 = vld [vmem:[%s4364_s9 + $0xd8] sm:$0xff] }
 0x460   : > { %3336 = vmatprep.subr.bf16.mxu1 %v3335_v51  ;;  %v2601_v51 = vld [vmem:[%s4364_s9 + $0x140] sm:$0xff]  ;;  %v3407_v53 = vpack.c.bf16 %v2143_v50, %v2142_v48 }
 0x461   : > { %v3373_v54 = vpack.c.bf16 %v2602_v52, %v2601_v51 }
 0x462   : > { %3408 = vmatprep.subr.bf16.mxu0 %v3407_v53 }
 0x463   : > { %3338 = vmatpush1.bf16.msra.mxu1 %v3337_v56  ;;  %v2127_v56 = vld [vmem:[%s4364_s9 + $0x58] sm:$0xff] }
 0x464   : > { %3340 = vmatprep.subr.bf16.mxu1 %v3339_v57  ;;  %v3409_v57 = vpack.c.bf16 %v2127_v56, %v2126_v55 }
 0x466   : > { %3410 = vmatpush3.bf16.msra.mxu0 %v3409_v57 }
 0x467   : > { %3342 = vmatpush1.bf16.msra.mxu1 %v3341_v62  ;;  %v2145_v62 = vld [vmem:[%s4364_s9 + $0xe8] sm:$0xff] }
 0x468   : > { %3344 = vmatprep.subr.bf16.mxu1 %v3343_v63  ;;  %v2603_v63 = vld [vmem:[%s4364_s9 + $0x150] sm:$0xff]  ;;  %v3411_v3 = vpack.c.bf16 %v2145_v62, %v2144_v60 }
 0x469   : > { %v3377_v4 = vpack.c.bf16 %v2604_v2, %v2603_v63  ;;  %v3427_v2 = vpack.c.bf16 %v2646_v47, %v2645_v46 }
 0x46a   : > { %3412 = vmatprep.subr.bf16.mxu0 %v3411_v3  ;;  %v2629_v3 = vld [vmem:[%s4364_s9 + $0x220] sm:$0xff] }
 0x46b   : > { %3346 = vmatpush1.bf16.msra.mxu1 %v3345_v6  ;;  %v2129_v6 = vld [vmem:[%s4364_s9 + $0x68] sm:$0xff] }
 0x46c   : > { %3348 = vmatprep.subr.bf16.mxu1 %v3347_v7  ;;  %v2621_v7 = vld [vmem:[%s4364_s9 + $0x1e0] sm:$0xff]  ;;  %v3413_v8 = vpack.c.bf16 %v2129_v6, %v2128_v5  ;;  %v2647_v5 = vld [vmem:[%s4364_s9 + $0x2b0] sm:$0xff]  ;;  %v2648_v6 = vld [vmem:[%s4364_s9 + $0x2b8] sm:$0xff] }
 0x46e   : > { %3414 = vmatpush3.bf16.msra.mxu0 %v3413_v8  ;;  %v3431_v8 = vpack.c.bf16 %v2648_v6, %v2647_v5 }
 0x46f   : > { %3350 = vmatpush1.bf16.msra.mxu1 %v3349_v11  ;;  %v3379_v11 = vpack.c.bf16 %v2622_v9, %v2621_v7  ;;  %v2631_v9 = vld [vmem:[%s4364_s9 + $0x230] sm:$0xff] }
 0x470   : > { %3352 = vmatprep.subr.bf16.mxu1 %v3351_v12  ;;  %v3415_v12 = vpack.c.bf16 %v2147_v1, %v2146_v10  ;;  %v2632_v10 = vld [vmem:[%s4364_s9 + $0x238] sm:$0xff]  ;;  %v2649_v1 = vld [vmem:[%s4364_s9 + $0x2c0] sm:$0xff] }
 0x472   : > { %3416 = vmatprep.subr.bf16.mxu0 %v3415_v12  ;;  %v3433_v12 = vpack.c.bf16 %v2632_v10, %v2631_v9 }
 0x473   : > { %3354 = vmatpush1.bf16.msra.mxu1 %v3353_v19  ;;  %v2624_v19 = vld [vmem:[%s4364_s9 + $0x1f8] sm:$0xff] }
 0x474   : > { %3356 = vmatprep.subr.bf16.mxu1 %v3355_v20  ;;  %v3417_v20 = vpack.c.bf16 %v2131_v17, %v2130_v15  ;;  %v3383_v21 = vpack.c.bf16 %v2624_v19, %v2623_v18  ;;  %v2634_v15 = vld [vmem:[%s4364_s9 + $0x248] sm:$0xff]  ;;  %v2652_v17 = vld [vmem:[%s4364_s9 + $0x2d8] sm:$0xff] }
 0x475   : > { %v3437_v18 = vpack.c.bf16 %v2634_v15, %v2633_v14 }
 0x476   : > { %2082 = vmatmul.mubr.f32.vlgmr.msra.gmra.mrb[2].mxu1 %v2011_v32  ;;  %3418 = vmatpush3.bf16.msra.mxu0 %v3417_v20  ;;  %v2635_v20 = vld [vmem:[%s4364_s9 + $0x250] sm:$0xff] }
 0x477   : > { %3358 = vmatpush3.bf16.msra.mxu1 %v3357_v27  ;;  %v3385_v27 = vpack.c.bf16 %v2608_v26, %v2607_v24  ;;  %3420 = vmatprep.subr.bf16.mxu0 %v3419_v25  ;;  %v3443_v25 = vpack.c.bf16 %v2654_v23, %v2653_v22  ;;  %v2637_v26 = vld [vmem:[%s4364_s9 + $0x260] sm:$0xff] }
 0x478   : > { %3360 = vmatprep.subr.bf16.mxu1 %v3359_v28  ;;  %v2090_v28 = vld [vmem:[%s4363_s8] sm:$0x3] }
 0x479   : > { %v2095_v29 = vrot.slane %v2090_v28, %v3976_v31  ;;  %v2099_v30 = vrot.slane %v2090_v28, %v3981_v33  ;;  %v2626_v31 = vld [vmem:[%s4364_s9 + $0x208] sm:$0xff]  ;;  %v2643_v33 = vld [vmem:[%s4364_s9 + $0x290] sm:$0xff] }
 0x47a   : > { %v3421_v43 = vpack.c.bf16 %v2626_v31, %v2625_v39  ;;  %v3423_v52 = vpack.c.bf16 %v2644_v40, %v2643_v33  ;;  %v2655_v28 = vld [vmem:[%s4364_s9 + $0x2f0] sm:$0xff] }
 0x47b   : > { %3362 = vmatpush3.bf16.msra.mxu1 %v3361_v36 }
 0x47c   : > { %3364 = vmatprep.subr.bf16.mxu1 %v3363_v37 }
 0x47f   : > { %3366 = vmatpush3.bf16.msra.mxu1 %v3365_v0  ;;  %v2628_v0 = vld [vmem:[%s4364_s9 + $0x218] sm:$0xff] }
 0x480   : > { %3368 = vmatprep.subr.bf16.mxu1 %v3367_v42 }
 0x483   : > { %3370 = vmatpush3.bf16.msra.mxu1 %v3369_v45 }
 0x484   : > { %3372 = vmatprep.subr.bf16.mxu1 %v3371_v49 }
 0x487   : > { %3374 = vmatpush3.bf16.msra.mxu1 %v3373_v54 }
 0x488   : > { %3376 = vmatprep.subr.bf16.mxu1 %v3375_v61  ;;  %v3425_v61 = vpack.c.bf16 %v2628_v0, %v2627_v41 }
 0x48b   : > { %3378 = vmatpush3.bf16.msra.mxu1 %v3377_v4  ;;  %v2630_v4 = vld [vmem:[%s4364_s9 + $0x228] sm:$0xff] }
 0x48c   : > { %3380 = vmatprep.subr.bf16.mxu1 %v3379_v11  ;;  %v3429_v7 = vpack.c.bf16 %v2630_v4, %v2629_v3  ;;  %v2650_v11 = vld [vmem:[%s4364_s9 + $0x2c8] sm:$0xff] }
 0x48d   : > { %v3435_v13 = vpack.c.bf16 %v2650_v11, %v2649_v1 }
 0x48f   : > { %3382 = vmatpush3.bf16.msra.mxu1 %v3381_v16  ;;  %v2651_v16 = vld [vmem:[%s4364_s9 + $0x2d0] sm:$0xff] }
 0x490   : > { %3384 = vmatprep.subr.bf16.mxu1 %v3383_v21  ;;  %v3439_v19 = vpack.c.bf16 %v2652_v17, %v2651_v16  ;;  %v2636_v21 = vld [vmem:[%s4364_s9 + $0x258] sm:$0xff] }
 0x491   : > { %v3441_v24 = vpack.c.bf16 %v2636_v21, %v2635_v20 }
 0x493   : > { %3386 = vmatpush3.bf16.msra.mxu1 %v3385_v27  ;;  %v2638_v27 = vld [vmem:[%s4364_s9 + $0x268] sm:$0xff] }
 0x549   : > { %v2083_v32 = vpop.f32.mrb[2].mxu1 }
 0x54a   : > { %v2102_v34 = vadd.f32 %v2095_v29, %v2083_v32  ;;  %v2085_v35 = vpop.f32.mrb[3].mxu1  ;;  %v2656_v29 = vld [vmem:[%s4364_s9 + $0x2f8] sm:$0xff] }
 0x54b   : > { %v2103_v36 = vadd.f32 %v2099_v30, %v2085_v35  ;;  %v3445_v30 = vpack.c.bf16 %v2638_v27, %v2637_v26  ;;  %v3447_v32 = vpack.c.bf16 %v2656_v29, %v2655_v28  ;;  %v2640_v35 = vld [vmem:[%s4364_s9 + $0x278] sm:$0xff] }
 0x54c   : > { %v2106_v37 = vrot.slane %v2102_v34, 7  ;;  %v2639_v34 = vld [vmem:[%s4364_s9 + $0x270] sm:$0xff] }
 0x54d   : > { %v2107_v38 = vrot.slane %v2103_v36, 7 }
 0x54e   : > { %2110 = vst [vmem:[#allocation4] sm:$0xfe] %v2106_v37  ;;  %2112 = vst [vmem:[#allocation4 + $0x10] sm:$0x1] %v2106_v37 }
 0x54f   : > { %2111 = vst [vmem:[#allocation4 + $0x8] sm:$0xfe] %v2107_v38  ;;  %2113 = vst [vmem:[#allocation4 + $0x18] sm:$0x1] %v2107_v38  ;;  %v3449_v38 = vpack.c.bf16 %v2640_v35, %v2639_v34 }
 0x555   : > { %v2114_v42 = vld [vmem:[#allocation4] sm:$0xff]  ;;  %v2150_v45 = vld [vmem:[#allocation4 + $0x10] sm:$0x1] }
 0x556   : > { %v2148_v44 = vld [vmem:[#allocation4] sm:$0xfe]  ;;  %v2115_v48 = vld [vmem:[#allocation4 + $0x8] sm:$0xff]  ;;  %v2151_v50 = vld [vmem:[#allocation4 + $0x18] sm:$0x1]  ;;  %v2190_v59 = vrot.slane %v2150_v45, 1 }
 0x557   : > { %v2149_v49 = vld [vmem:[#allocation4 + $0x8] sm:$0xfe]  ;;  %v2189_v51 = vrot.slane %v2148_v44, 1  ;;  %2331 = vmatprep.mubr.f32.mxu0 %v2115_v48  ;;  %v2193_v54 = vrot.slane %v2151_v50, 1  ;;  %v2340_v56 = vld [vmem:[#allocation4 + $0x18] sm:$0x3] }
 0x558   : > { %v2192_v53 = vrot.slane %v2149_v49, 1  ;;  %v2338_v55 = vld [vmem:[#allocation4 + $0x8] sm:$0xfc]  ;;  %2332 = vmatmul.mubr.f32.vlgmr.msra.gmra.mrb[6].mxu0 %v2114_v42  ;;  %v2382_v58 = vrot.slane %v2340_v56, 2  ;;  %v2337_v36 = vld [vmem:[#allocation4] sm:$0xfc] }
 0x559   : > { %v2381_v57 = vrot.slane %v2338_v55, 2  ;;  %3422 = vmatpush3.bf16.msra.mxu0 %v3421_v43  ;;  %v2191_v63 = vsel %vm850_vm3, %v2189_v51, %v2190_v59  ;;  %v2339_v37 = vld [vmem:[#allocation4 + $0x10] sm:$0x3]  ;;  %v2378_v39 = vrot.slane %v2337_v36, 2 }
 0x55a   : > { %v2194_v60 = vsel %vm850_vm3, %v2192_v53, %v2193_v54  ;;  %3424 = vmatprep.subr.bf16.mxu0 %v3423_v52  ;;  %v2379_v31 = vrot.slane %v2339_v37, 2  ;;  %v2657_v49 = vld [vmem:[%s4365_s10] ss:$0 sm:$0xff] }
 0x55b   : > { %2261 = vmatprep.mubr.f32.mxu1 %v2194_v60  ;;  %v2383_v62 = vsel %vm1074_vm4, %v2381_v57, %v2382_v58 }
 0x55c   : > { %2450 = vmatprep.mubr.f32.mxu0 %v2383_v62  ;;  %2262 = vmatmul.mubr.f32.vlgmr.msra.gmra.mrb[4].mxu1 %v2191_v63  ;;  %v2380_v33 = vsel %vm1074_vm4, %v2378_v39, %v2379_v31 }
 0x55d   : > { %3426 = vmatpush3.bf16.msra.mxu0 %v3425_v61 }
 0x55e   : > { %3428 = vmatprep.subr.bf16.mxu0 %v3427_v2 }
 0x561   : > { %3430 = vmatpush3.bf16.msra.mxu0 %v3429_v7 }
 0x562   : > { %3432 = vmatprep.subr.bf16.mxu0 %v3431_v8 }
 0x565   : > { %3434 = vmatpush3.bf16.msra.mxu0 %v3433_v12 }
 0x566   : > { %3436 = vmatprep.subr.bf16.mxu0 %v3435_v13 }
 0x569   : > { %3438 = vmatpush3.bf16.msra.mxu0 %v3437_v18 }
 0x56a   : > { %3440 = vmatprep.subr.bf16.mxu0 %v3439_v19 }
 0x56d   : > { %3442 = vmatpush3.bf16.msra.mxu0 %v3441_v24 }
 0x56e   : > { %3444 = vmatprep.subr.bf16.mxu0 %v3443_v25 }
 0x571   : > { %3446 = vmatpush3.bf16.msra.mxu0 %v3445_v30 }
 0x572   : > { %3448 = vmatprep.subr.bf16.mxu0 %v3447_v32 }
 0x575   : > { %3450 = vmatpush3.bf16.msra.mxu0 %v3449_v38 }
 0x578   : > { %2451 = vmatmul.mubr.f32.vlgmr.msra.gmra.mrb[8].mxu0 %v2380_v33 }
 0x62b   : > { %v2729_v40 = vpop.f32.mrb[6].mxu0 }
 0x62c   : > { %v2730_v41 = vpop.f32.mrb[7].mxu0 }
 0x62d   : > { %v2731_v0 = vadd.f32 %v2730_v41, %v2729_v40 }
 0x62f   : > { %v2694_v42 = vpop.f32.mrb[4].mxu1 }
 0x630   : > { %v2695_v43 = vpop.f32.mrb[5].mxu1 }
 0x631   : > { %v2696_v44 = vadd.f32 %v2695_v43, %v2694_v42 }
 0x633   : > { %v2334_v45 = vadd.f32 %v2731_v0, %v2696_v44 }
 0x64b   : > { %v2764_v46 = vpop.f32.mrb[8].mxu0 }
 0x64c   : > { %v2765_v47 = vpop.f32.mrb[9].mxu0 }
 0x64d   : > { %v2766_v48 = vadd.f32 %v2765_v47, %v2764_v46 }
 0x64f   : > { %v2456_v50 = vadd.f32 %v2766_v48, %v2334_v45 }
 0x651   : > { %v2464_v51 = vadd.f32 %v2657_v49, %v2456_v50 }
 0x653   : > { %2465 = vst.msk [vmem:[%s421_s19] sm:$0xff] %vm430_vm2, %v2464_v51 }
 0x654   : > { %3637 = shalt.err (!%p3634_p9)
}
 0x655   : > { %s3638_s24 = scalar_lea.hbm %s4312_s29, 128  ;;  %s3642_s25 = scalar_lea.hbm %s4394_s23, 256 }
 0x656   : > { %p3639_p2 = scmp.ne.s32.totalorder %s4312_s29, %s3638_s24  ;;  %p3643_p5 = scmp.lt.u32.totalorder %s4312_s29, %s4394_s23 }
 0x657   : > { %p3644_p10 = scmp.lt.u32.totalorder %s3642_s25, %s3638_s24  ;;  %p3646_p12 = scmp.lt.u32.totalorder %s3638_s24, %s4312_s29 }
 0x658   : > { %p3640_p0 = pnand %p3639_p2, %p4395_p7 }
 0x659   : > { %p3645_p4 = por %p3644_p10, %p3643_p5 }
 0x65a   : > { %p3641_p3 = pneg %p3640_p0 }
 0x65b   : > { %p3647_p8 = por %p3646_p12, %p3645_p4 }
 0x65d   : > { %p3648_p11 = pnand %p3647_p8, %p3641_p3 }
 0x65f   : > { %3651 = shalt.err (!%p3648_p11)
}
 0x660   : > { %3479 = dma.vmem_to_hbm [thread:$0]  (%p4395_p7), %s4314_s12, 128, %s4312_s29, %s2467_s13  }
 0x661 PF: > { %s4396_s16 = sld [smem:[#allocation17_spill]]  ;;  %s4397_s19 = sld [smem:[#allocation15_spill]] }
 0x662   : > { %s4398_s15 = sld [smem:[#allocation20_spill]] }
 0x667   : > { %p3501_p13 = scmp.ge.s32.totalorder %s4396_s16, 2  ;;  %s2492_s11 = sand.u32 1, %s4397_s19  }
 0x668   : > { %p4399_p1 = scmp.ne.s32.totalorder %s4398_s15, 0  ;;  %s2493_s22 = scalar_lea.sflag [#allocation7], %s2492_s11 }
 0x66a   : > { %p3492_p6 = pnand %p3501_p13, %p4399_p1 }
 0x66c   : > { %3677 = dma.done.wait (!%p3492_p6), %s2493_s22, 128  }
 0x66d   : > { %3679 = vsyncadd (!%p3492_p6), %s2493_s22, 4294967168  ;;  %s4400_s20 = sld [smem:[#allocation18_spill]]  ;;  %s4401_s21 = sld [smem:[#allocation16_spill]] }
 0x66e   : > { %s4402_s19 = sld [smem:[#allocation19_spill]]  ;;  %s4403_s17 = smov %s3686_s18 }
 0x673   : > { %p23_p9 = scmp.ge.s32.totalorder %s4400_s20, 4   ;;  %s4404_s18 = smov %s4401_s21 }
 0x675   :  { %25 = sbr.rel (!%p23_p9) target bundleno = 7 (0x7), region = 124 }
 0x67c   :  { %2498 = vsyncpa [#allocation6], 1 }
 0x67d   :  { %2500 = vsyncpa [#allocation6 + $0x1], 1 }
 0x67e   :  { %2501 = vsyncpa [#allocation9], 1 }
 0x67f   :  { %2502 = vsyncpa [#allocation7], 1 }
 0x680   :  { %2504 = vsyncpa [#allocation7 + $0x1], 1 }

</bundles_post_ra>
